<compile_context>
chip_gen: v5e
topology: v5e:2x2
jax: 0.10.0
libtpu: 0.0.40
codegen_flags: <defaults>
</compile_context>

<pallas_src>
import functools

import numpy as np
import jax
import jax.numpy as jnp
from jax.experimental import pallas as pl
from jax.experimental.pallas import tpu as pltpu


def _make_tap_masks(H, W):
    """(9, H*W) f32: masks[kh*3+kw, h*W+w] = 1 iff pixel (h+kh-1, w+kw-1)
    lies inside the image.  These masks are what make the flat circular shift
    correct: any tap whose flat shift would wrap to another row, another
    image, or off the end of the flat vector is zeroed here."""
    hh, ww = np.meshgrid(np.arange(H), np.arange(W), indexing="ij")
    masks = np.zeros((9, H * W), np.float32)
    for kh in range(3):
        for kw in range(3):
            dh, dw = kh - 1, kw - 1
            valid = ((hh + dh >= 0) & (hh + dh < H) &
                     (ww + dw >= 0) & (ww + dw < W))
            masks[kh * 3 + kw] = valid.reshape(-1).astype(np.float32)
    return masks


def _res_conv_block_kernel(x_ref, mask_ref, w1_ref, b1_ref, w2_ref, b2_ref,
                           out_ref, *, B, C, H, W):
    """One block of B images per grid step.

    x_ref/out_ref: (B*C, H*W)   -- images stacked along sublanes, pixels in lanes
    mask_ref:      (9, H*W)     -- per-tap border masks
    w*_ref:        (C, 9*C)     -- column (kh*3+kw)*C + ci == w[:, ci, kh, kw]
    b*_ref:        (C, 1)
    """
    P = H * W

    def taps_of(inp):
        # Nine shifted (and border-masked) windows, shared by all images and
        # all input channels of the tile.  pltpu.roll is a circular lane
        # rotation (XLU); the masks zero every wrapped / out-of-image tap.
        taps = []
        for kh in range(3):
            for kw in range(3):
                t = kh * 3 + kw
                d = (kh - 1) * W + (kw - 1)         # flat pixel shift of tap t
                if d == 0:
                    taps.append(inp)                # center tap: mask all ones
                else:
                    rolled = pltpu.roll(inp, shift=(-d) % P, axis=1)
                    taps.append(rolled * mask_ref[t:t + 1, :])
        return taps

    def conv3x3_bias(taps, w_ref, b_ref):
        # Channel mix per image: (C,1) x (1,P) outer-product FMAs on the VPU.
        outs = []
        for b in range(B):
            acc = jnp.broadcast_to(b_ref[...], (C, P))   # start at the bias
            base = b * C
            for t in range(9):
                tap = taps[t]
                for ci in range(C):
                    j = t * C + ci
                    acc = acc + w_ref[:, j:j + 1] * tap[base + ci:base + ci + 1, :]
            outs.append(acc)
        return jnp.concatenate(outs, axis=0) if B > 1 else outs[0]

    xv = x_ref[...].astype(jnp.float32)                  # (B*C, P), on-chip

    # y1 = relu(conv1(x) + b1) + x   (residual reuses the in-register input)
    y1 = jnp.maximum(conv3x3_bias(taps_of(xv), w1_ref, b1_ref), 0.0) + xv

    # y2 = relu(conv2(y1) + b2)
    y2 = jnp.maximum(conv3x3_bias(taps_of(y1), w2_ref, b2_ref), 0.0)

    out_ref[...] = y2.astype(out_ref.dtype)              # lane-dense full store


def _pick_images_per_step(N, C, max_rows=32):
    """Images per grid step: fill the 8-sublane vreg, keep >=2 grid steps when
    the batch allows (v7x has 2 TensorCores), and bound the unrolled loop."""
    cands = [b for b in range(1, N + 1)
             if N % b == 0 and (b * C) % 8 == 0 and b * C <= max_rows]
    if not cands:
        return N                      # block == full array (allowed by Mosaic)
    multi = [b for b in cands if N // b >= 2]
    return max(multi) if multi else max(cands)


@jax.jit
def res_conv_block(x_nchw, w1_oihw, b1, w2_oihw, b2):
    """ResConvBLock.forward.  x: (N, C, H, W); weights OIHW like PyTorch."""
    N, C, H, W = x_nchw.shape
    P = H * W

    B_blk = _pick_images_per_step(N, C)
    R = B_blk * C
    grid = (N // B_blk,)

    # Free, contiguous reshape: images stacked along sublanes, pixels in lanes.
    x_flat = x_nchw.reshape(N * C, P)

    # Weights as (C_out, 9*C_in): column (kh*3+kw)*C+ci = w[:, ci, kh, kw].
    w1m = jnp.transpose(w1_oihw, (0, 2, 3, 1)).reshape(C, 9 * C).astype(jnp.float32)
    w2m = jnp.transpose(w2_oihw, (0, 2, 3, 1)).reshape(C, 9 * C).astype(jnp.float32)
    b1c = b1.reshape(C, 1).astype(jnp.float32)
    b2c = b2.reshape(C, 1).astype(jnp.float32)
    masks = jnp.asarray(_make_tap_masks(H, W))

    kernel = functools.partial(_res_conv_block_kernel, B=B_blk, C=C, H=H, W=W)

    flops = 2 * 2 * 9 * C * C * P * N                    # 2 convs, mul+add
    bytes_accessed = 4 * (2 * N * C * P + 9 * P + 2 * (9 * C * C + C))

    out_flat = pl.pallas_call(
        kernel,
        out_shape=jax.ShapeDtypeStruct((N * C, P), x_nchw.dtype),
        grid=grid,
        in_specs=[
            pl.BlockSpec((R, P), lambda n: (n, 0)),       # x tile (B_blk images)
            pl.BlockSpec((9, P), lambda n: (0, 0)),       # tap masks
            pl.BlockSpec((C, 9 * C), lambda n: (0, 0)),   # w1
            pl.BlockSpec((C, 1), lambda n: (0, 0)),       # b1
            pl.BlockSpec((C, 9 * C), lambda n: (0, 0)),   # w2
            pl.BlockSpec((C, 1), lambda n: (0, 0)),       # b2
        ],
        out_specs=pl.BlockSpec((R, P), lambda n: (n, 0)),
        compiler_params=pltpu.CompilerParams(
            dimension_semantics=("parallel",)),           # v7x: 2 TCs when grid>1
        cost_estimate=pl.CostEstimate(
            flops=flops, transcendentals=0, bytes_accessed=bytes_accessed),
    )(x_flat, masks, w1m, b1c, w2m, b2c)

    return out_flat.reshape(N, C, H, W)


def init_res_conv_block_params(key, d=4, f=3):
    """Deterministic synthetic params, PyTorch Conv2d layout (OIHW) + bias."""
    k1, k2, k3, k4 = jax.random.split(key, 4)
    scale = 1.0 / (d * f * f) ** 0.5
    w1 = jax.random.uniform(k1, (d, d, f, f), jnp.float32, -scale, scale)
    b1 = jax.random.uniform(k2, (d,), jnp.float32, -scale, scale)
    w2 = jax.random.uniform(k3, (d, d, f, f), jnp.float32, -scale, scale)
    b2 = jax.random.uniform(k4, (d,), jnp.float32, -scale, scale)
    return w1, b1, w2, b2


def _reference(x, w1, b1, w2, b2):
    """Pure-JAX reference (lax conv, NCHW/OIHW) for a correctness check."""
    def conv_relu(x, w, b):
        y = jax.lax.conv_general_dilated(
            x, w, window_strides=(1, 1), padding="SAME",
            dimension_numbers=("NCHW", "OIHW", "NCHW"))
        return jax.nn.relu(y + b[None, :, None, None])
    y = conv_relu(x, w1, b1) + x
    return conv_relu(y, w2, b2)


if __name__ == "__main__":
    key = jax.random.PRNGKey(0)
    kx, kp = jax.random.split(key)

    N, d, H, W = 2, 4, 16, 16
    x = jax.random.normal(kx, (N, d, H, W), jnp.float32)
    w1, b1, w2, b2 = init_res_conv_block_params(kp, d=d, f=3)

    out = jax.block_until_ready(res_conv_block(x, w1, b1, w2, b2))

    ref = _reference(x, w1, b1, w2, b2)
    assert out.shape == (N, d, H, W)
    assert jnp.allclose(out, ref, atol=1e-4, rtol=1e-4)

    print("KERNEL_OK")
</pallas_src>

<mosaic_0001>
module attributes {stable_mosaic.version = 11 : i64} {
  func.func @_res_conv_block_kernel(%arg0: i32, %arg1: memref<8x256xf32, #tpu.memory_space<vmem>>, %arg2: memref<9x256xf32, #tpu.memory_space<vmem>>, %arg3: memref<4x36xf32, #tpu.memory_space<vmem>>, %arg4: memref<4x1xf32, #tpu.memory_space<vmem>>, %arg5: memref<4x36xf32, #tpu.memory_space<vmem>>, %arg6: memref<4x1xf32, #tpu.memory_space<vmem>>, %arg7: memref<8x256xf32, #tpu.memory_space<vmem>>) attributes {dimension_semantics = [#tpu.dimension_semantics<parallel>], iteration_bounds = array<i64: 1>, scalar_prefetch = 0 : i64, scratch_operands = 0 : i64, tpu.core_type = #tpu.core_type<tc>, window_params = [{transform_indices = @transform_0, window_bounds = array<i64: 8, 256>}, {pipeline_mode = #tpu.pipeline_mode<synchronous>, transform_indices = @transform_1, window_bounds = array<i64: 9, 256>}, {pipeline_mode = #tpu.pipeline_mode<synchronous>, transform_indices = @transform_2, window_bounds = array<i64: 4, 36>}, {pipeline_mode = #tpu.pipeline_mode<synchronous>, transform_indices = @transform_3, window_bounds = array<i64: 4, 1>}, {pipeline_mode = #tpu.pipeline_mode<synchronous>, transform_indices = @transform_4, window_bounds = array<i64: 4, 36>}, {pipeline_mode = #tpu.pipeline_mode<synchronous>, transform_indices = @transform_5, window_bounds = array<i64: 4, 1>}, {transform_indices = @transform_6, window_bounds = array<i64: 8, 256>}]} {
    %c0 = arith.constant 0 : index
    %c0_0 = arith.constant 0 : index
    %0 = vector.load %arg1[%c0, %c0_0] : memref<8x256xf32, #tpu.memory_space<vmem>>, vector<8x256xf32>
    %c17_i32 = arith.constant 17 : i32
    %1 = tpu.dynamic_rotate %0 by %c17_i32 dim 1 : vector<8x256xf32>, i32 -> vector<8x256xf32>
    %c0_1 = arith.constant 0 : index
    %c0_2 = arith.constant 0 : index
    %2 = vector.load %arg2[%c0_1, %c0_2] : memref<9x256xf32, #tpu.memory_space<vmem>>, vector<1x256xf32>
    %3 = vector.broadcast %2 : vector<1x256xf32> to vector<8x256xf32>
    %4 = arith.mulf %1, %3 : vector<8x256xf32>
    %c16_i32 = arith.constant 16 : i32
    %5 = tpu.dynamic_rotate %0 by %c16_i32 dim 1 : vector<8x256xf32>, i32 -> vector<8x256xf32>
    %c1 = arith.constant 1 : index
    %c0_3 = arith.constant 0 : index
    %6 = vector.load %arg2[%c1, %c0_3] : memref<9x256xf32, #tpu.memory_space<vmem>>, vector<1x256xf32>
    %7 = vector.broadcast %6 : vector<1x256xf32> to vector<8x256xf32>
    %8 = arith.mulf %5, %7 : vector<8x256xf32>
    %c15_i32 = arith.constant 15 : i32
    %9 = tpu.dynamic_rotate %0 by %c15_i32 dim 1 : vector<8x256xf32>, i32 -> vector<8x256xf32>
    %c2 = arith.constant 2 : index
    %c0_4 = arith.constant 0 : index
    %10 = vector.load %arg2[%c2, %c0_4] : memref<9x256xf32, #tpu.memory_space<vmem>>, vector<1x256xf32>
    %11 = vector.broadcast %10 : vector<1x256xf32> to vector<8x256xf32>
    %12 = arith.mulf %9, %11 : vector<8x256xf32>
    %c1_i32 = arith.constant 1 : i32
    %13 = tpu.dynamic_rotate %0 by %c1_i32 dim 1 : vector<8x256xf32>, i32 -> vector<8x256xf32>
    %c3 = arith.constant 3 : index
    %c0_5 = arith.constant 0 : index
    %14 = vector.load %arg2[%c3, %c0_5] : memref<9x256xf32, #tpu.memory_space<vmem>>, vector<1x256xf32>
    %15 = vector.broadcast %14 : vector<1x256xf32> to vector<8x256xf32>
    %16 = arith.mulf %13, %15 : vector<8x256xf32>
    %c255_i32 = arith.constant 255 : i32
    %17 = tpu.dynamic_rotate %0 by %c255_i32 dim 1 : vector<8x256xf32>, i32 -> vector<8x256xf32>
    %c5 = arith.constant 5 : index
    %c0_6 = arith.constant 0 : index
    %18 = vector.load %arg2[%c5, %c0_6] : memref<9x256xf32, #tpu.memory_space<vmem>>, vector<1x256xf32>
    %19 = vector.broadcast %18 : vector<1x256xf32> to vector<8x256xf32>
    %20 = arith.mulf %17, %19 : vector<8x256xf32>
    %c241_i32 = arith.constant 241 : i32
    %21 = tpu.dynamic_rotate %0 by %c241_i32 dim 1 : vector<8x256xf32>, i32 -> vector<8x256xf32>
    %c6 = arith.constant 6 : index
    %c0_7 = arith.constant 0 : index
    %22 = vector.load %arg2[%c6, %c0_7] : memref<9x256xf32, #tpu.memory_space<vmem>>, vector<1x256xf32>
    %23 = vector.broadcast %22 : vector<1x256xf32> to vector<8x256xf32>
    %24 = arith.mulf %21, %23 : vector<8x256xf32>
    %c240_i32 = arith.constant 240 : i32
    %25 = tpu.dynamic_rotate %0 by %c240_i32 dim 1 : vector<8x256xf32>, i32 -> vector<8x256xf32>
    %c7 = arith.constant 7 : index
    %c0_8 = arith.constant 0 : index
    %26 = vector.load %arg2[%c7, %c0_8] : memref<9x256xf32, #tpu.memory_space<vmem>>, vector<1x256xf32>
    %27 = vector.broadcast %26 : vector<1x256xf32> to vector<8x256xf32>
    %28 = arith.mulf %25, %27 : vector<8x256xf32>
    %c239_i32 = arith.constant 239 : i32
    %29 = tpu.dynamic_rotate %0 by %c239_i32 dim 1 : vector<8x256xf32>, i32 -> vector<8x256xf32>
    %c8 = arith.constant 8 : index
    %c0_9 = arith.constant 0 : index
    %30 = vector.load %arg2[%c8, %c0_9] : memref<9x256xf32, #tpu.memory_space<vmem>>, vector<1x256xf32>
    %31 = vector.broadcast %30 : vector<1x256xf32> to vector<8x256xf32>
    %32 = arith.mulf %29, %31 : vector<8x256xf32>
    %c0_10 = arith.constant 0 : index
    %c0_11 = arith.constant 0 : index
    %33 = vector.load %arg4[%c0_10, %c0_11] : memref<4x1xf32, #tpu.memory_space<vmem>>, vector<4x1xf32>
    %34 = vector.shape_cast %33 : vector<4x1xf32> to vector<4x1xf32>
    %35 = vector.broadcast %34 : vector<4x1xf32> to vector<4x256xf32>
    %c0_12 = arith.constant 0 : index
    %c0_13 = arith.constant 0 : index
    %36 = vector.load %arg3[%c0_12, %c0_13] : memref<4x36xf32, #tpu.memory_space<vmem>>, vector<4x1xf32>
    %37 = vector.extract_strided_slice %4 {offsets = [0, 0], sizes = [1, 256], strides = [1, 1]} : vector<8x256xf32> to vector<1x256xf32>
    %38 = vector.broadcast %36 : vector<4x1xf32> to vector<4x256xf32>
    %39 = vector.broadcast %37 : vector<1x256xf32> to vector<4x256xf32>
    %40 = arith.mulf %38, %39 : vector<4x256xf32>
    %41 = arith.addf %35, %40 : vector<4x256xf32>
    %c0_14 = arith.constant 0 : index
    %c1_15 = arith.constant 1 : index
    %42 = vector.load %arg3[%c0_14, %c1_15] : memref<4x36xf32, #tpu.memory_space<vmem>>, vector<4x1xf32>
    %43 = vector.extract_strided_slice %4 {offsets = [1, 0], sizes = [1, 256], strides = [1, 1]} : vector<8x256xf32> to vector<1x256xf32>
    %44 = vector.broadcast %42 : vector<4x1xf32> to vector<4x256xf32>
    %45 = vector.broadcast %43 : vector<1x256xf32> to vector<4x256xf32>
    %46 = arith.mulf %44, %45 : vector<4x256xf32>
    %47 = arith.addf %41, %46 : vector<4x256xf32>
    %c0_16 = arith.constant 0 : index
    %c2_17 = arith.constant 2 : index
    %48 = vector.load %arg3[%c0_16, %c2_17] : memref<4x36xf32, #tpu.memory_space<vmem>>, vector<4x1xf32>
    %49 = vector.extract_strided_slice %4 {offsets = [2, 0], sizes = [1, 256], strides = [1, 1]} : vector<8x256xf32> to vector<1x256xf32>
    %50 = vector.broadcast %48 : vector<4x1xf32> to vector<4x256xf32>
    %51 = vector.broadcast %49 : vector<1x256xf32> to vector<4x256xf32>
    %52 = arith.mulf %50, %51 : vector<4x256xf32>
    %53 = arith.addf %47, %52 : vector<4x256xf32>
    %c0_18 = arith.constant 0 : index
    %c3_19 = arith.constant 3 : index
    %54 = vector.load %arg3[%c0_18, %c3_19] : memref<4x36xf32, #tpu.memory_space<vmem>>, vector<4x1xf32>
    %55 = vector.extract_strided_slice %4 {offsets = [3, 0], sizes = [1, 256], strides = [1, 1]} : vector<8x256xf32> to vector<1x256xf32>
    %56 = vector.broadcast %54 : vector<4x1xf32> to vector<4x256xf32>
    %57 = vector.broadcast %55 : vector<1x256xf32> to vector<4x256xf32>
    %58 = arith.mulf %56, %57 : vector<4x256xf32>
    %59 = arith.addf %53, %58 : vector<4x256xf32>
    %c0_20 = arith.constant 0 : index
    %c4 = arith.constant 4 : index
    %60 = vector.load %arg3[%c0_20, %c4] : memref<4x36xf32, #tpu.memory_space<vmem>>, vector<4x1xf32>
    %61 = vector.extract_strided_slice %8 {offsets = [0, 0], sizes = [1, 256], strides = [1, 1]} : vector<8x256xf32> to vector<1x256xf32>
    %62 = vector.broadcast %60 : vector<4x1xf32> to vector<4x256xf32>
    %63 = vector.broadcast %61 : vector<1x256xf32> to vector<4x256xf32>
    %64 = arith.mulf %62, %63 : vector<4x256xf32>
    %65 = arith.addf %59, %64 : vector<4x256xf32>
    %c0_21 = arith.constant 0 : index
    %c5_22 = arith.constant 5 : index
    %66 = vector.load %arg3[%c0_21, %c5_22] : memref<4x36xf32, #tpu.memory_space<vmem>>, vector<4x1xf32>
    %67 = vector.extract_strided_slice %8 {offsets = [1, 0], sizes = [1, 256], strides = [1, 1]} : vector<8x256xf32> to vector<1x256xf32>
    %68 = vector.broadcast %66 : vector<4x1xf32> to vector<4x256xf32>
    %69 = vector.broadcast %67 : vector<1x256xf32> to vector<4x256xf32>
    %70 = arith.mulf %68, %69 : vector<4x256xf32>
    %71 = arith.addf %65, %70 : vector<4x256xf32>
    %c0_23 = arith.constant 0 : index
    %c6_24 = arith.constant 6 : index
    %72 = vector.load %arg3[%c0_23, %c6_24] : memref<4x36xf32, #tpu.memory_space<vmem>>, vector<4x1xf32>
    %73 = vector.extract_strided_slice %8 {offsets = [2, 0], sizes = [1, 256], strides = [1, 1]} : vector<8x256xf32> to vector<1x256xf32>
    %74 = vector.broadcast %72 : vector<4x1xf32> to vector<4x256xf32>
    %75 = vector.broadcast %73 : vector<1x256xf32> to vector<4x256xf32>
    %76 = arith.mulf %74, %75 : vector<4x256xf32>
    %77 = arith.addf %71, %76 : vector<4x256xf32>
    %c0_25 = arith.constant 0 : index
    %c7_26 = arith.constant 7 : index
    %78 = vector.load %arg3[%c0_25, %c7_26] : memref<4x36xf32, #tpu.memory_space<vmem>>, vector<4x1xf32>
    %79 = vector.extract_strided_slice %8 {offsets = [3, 0], sizes = [1, 256], strides = [1, 1]} : vector<8x256xf32> to vector<1x256xf32>
    %80 = vector.broadcast %78 : vector<4x1xf32> to vector<4x256xf32>
    %81 = vector.broadcast %79 : vector<1x256xf32> to vector<4x256xf32>
    %82 = arith.mulf %80, %81 : vector<4x256xf32>
    %83 = arith.addf %77, %82 : vector<4x256xf32>
    %c0_27 = arith.constant 0 : index
    %c8_28 = arith.constant 8 : index
    %84 = vector.load %arg3[%c0_27, %c8_28] : memref<4x36xf32, #tpu.memory_space<vmem>>, vector<4x1xf32>
    %85 = vector.extract_strided_slice %12 {offsets = [0, 0], sizes = [1, 256], strides = [1, 1]} : vector<8x256xf32> to vector<1x256xf32>
    %86 = vector.broadcast %84 : vector<4x1xf32> to vector<4x256xf32>
    %87 = vector.broadcast %85 : vector<1x256xf32> to vector<4x256xf32>
    %88 = arith.mulf %86, %87 : vector<4x256xf32>
    %89 = arith.addf %83, %88 : vector<4x256xf32>
    %c0_29 = arith.constant 0 : index
    %c9 = arith.constant 9 : index
    %90 = vector.load %arg3[%c0_29, %c9] : memref<4x36xf32, #tpu.memory_space<vmem>>, vector<4x1xf32>
    %91 = vector.extract_strided_slice %12 {offsets = [1, 0], sizes = [1, 256], strides = [1, 1]} : vector<8x256xf32> to vector<1x256xf32>
    %92 = vector.broadcast %90 : vector<4x1xf32> to vector<4x256xf32>
    %93 = vector.broadcast %91 : vector<1x256xf32> to vector<4x256xf32>
    %94 = arith.mulf %92, %93 : vector<4x256xf32>
    %95 = arith.addf %89, %94 : vector<4x256xf32>
    %c0_30 = arith.constant 0 : index
    %c10 = arith.constant 10 : index
    %96 = vector.load %arg3[%c0_30, %c10] : memref<4x36xf32, #tpu.memory_space<vmem>>, vector<4x1xf32>
    %97 = vector.extract_strided_slice %12 {offsets = [2, 0], sizes = [1, 256], strides = [1, 1]} : vector<8x256xf32> to vector<1x256xf32>
    %98 = vector.broadcast %96 : vector<4x1xf32> to vector<4x256xf32>
    %99 = vector.broadcast %97 : vector<1x256xf32> to vector<4x256xf32>
    %100 = arith.mulf %98, %99 : vector<4x256xf32>
    %101 = arith.addf %95, %100 : vector<4x256xf32>
    %c0_31 = arith.constant 0 : index
    %c11 = arith.constant 11 : index
    %102 = vector.load %arg3[%c0_31, %c11] : memref<4x36xf32, #tpu.memory_space<vmem>>, vector<4x1xf32>
    %103 = vector.extract_strided_slice %12 {offsets = [3, 0], sizes = [1, 256], strides = [1, 1]} : vector<8x256xf32> to vector<1x256xf32>
    %104 = vector.broadcast %102 : vector<4x1xf32> to vector<4x256xf32>
    %105 = vector.broadcast %103 : vector<1x256xf32> to vector<4x256xf32>
    %106 = arith.mulf %104, %105 : vector<4x256xf32>
    %107 = arith.addf %101, %106 : vector<4x256xf32>
    %c0_32 = arith.constant 0 : index
    %c12 = arith.constant 12 : index
    %108 = vector.load %arg3[%c0_32, %c12] : memref<4x36xf32, #tpu.memory_space<vmem>>, vector<4x1xf32>
    %109 = vector.extract_strided_slice %16 {offsets = [0, 0], sizes = [1, 256], strides = [1, 1]} : vector<8x256xf32> to vector<1x256xf32>
    %110 = vector.broadcast %108 : vector<4x1xf32> to vector<4x256xf32>
    %111 = vector.broadcast %109 : vector<1x256xf32> to vector<4x256xf32>
    %112 = arith.mulf %110, %111 : vector<4x256xf32>
    %113 = arith.addf %107, %112 : vector<4x256xf32>
    %c0_33 = arith.constant 0 : index
    %c13 = arith.constant 13 : index
    %114 = vector.load %arg3[%c0_33, %c13] : memref<4x36xf32, #tpu.memory_space<vmem>>, vector<4x1xf32>
    %115 = vector.extract_strided_slice %16 {offsets = [1, 0], sizes = [1, 256], strides = [1, 1]} : vector<8x256xf32> to vector<1x256xf32>
    %116 = vector.broadcast %114 : vector<4x1xf32> to vector<4x256xf32>
    %117 = vector.broadcast %115 : vector<1x256xf32> to vector<4x256xf32>
    %118 = arith.mulf %116, %117 : vector<4x256xf32>
    %119 = arith.addf %113, %118 : vector<4x256xf32>
    %c0_34 = arith.constant 0 : index
    %c14 = arith.constant 14 : index
    %120 = vector.load %arg3[%c0_34, %c14] : memref<4x36xf32, #tpu.memory_space<vmem>>, vector<4x1xf32>
    %121 = vector.extract_strided_slice %16 {offsets = [2, 0], sizes = [1, 256], strides = [1, 1]} : vector<8x256xf32> to vector<1x256xf32>
    %122 = vector.broadcast %120 : vector<4x1xf32> to vector<4x256xf32>
    %123 = vector.broadcast %121 : vector<1x256xf32> to vector<4x256xf32>
    %124 = arith.mulf %122, %123 : vector<4x256xf32>
    %125 = arith.addf %119, %124 : vector<4x256xf32>
    %c0_35 = arith.constant 0 : index
    %c15 = arith.constant 15 : index
    %126 = vector.load %arg3[%c0_35, %c15] : memref<4x36xf32, #tpu.memory_space<vmem>>, vector<4x1xf32>
    %127 = vector.extract_strided_slice %16 {offsets = [3, 0], sizes = [1, 256], strides = [1, 1]} : vector<8x256xf32> to vector<1x256xf32>
    %128 = vector.broadcast %126 : vector<4x1xf32> to vector<4x256xf32>
    %129 = vector.broadcast %127 : vector<1x256xf32> to vector<4x256xf32>
    %130 = arith.mulf %128, %129 : vector<4x256xf32>
    %131 = arith.addf %125, %130 : vector<4x256xf32>
    %c0_36 = arith.constant 0 : index
    %c16 = arith.constant 16 : index
    %132 = vector.load %arg3[%c0_36, %c16] : memref<4x36xf32, #tpu.memory_space<vmem>>, vector<4x1xf32>
    %133 = vector.extract_strided_slice %0 {offsets = [0, 0], sizes = [1, 256], strides = [1, 1]} : vector<8x256xf32> to vector<1x256xf32>
    %134 = vector.broadcast %132 : vector<4x1xf32> to vector<4x256xf32>
    %135 = vector.broadcast %133 : vector<1x256xf32> to vector<4x256xf32>
    %136 = arith.mulf %134, %135 : vector<4x256xf32>
    %137 = arith.addf %131, %136 : vector<4x256xf32>
    %c0_37 = arith.constant 0 : index
    %c17 = arith.constant 17 : index
    %138 = vector.load %arg3[%c0_37, %c17] : memref<4x36xf32, #tpu.memory_space<vmem>>, vector<4x1xf32>
    %139 = vector.extract_strided_slice %0 {offsets = [1, 0], sizes = [1, 256], strides = [1, 1]} : vector<8x256xf32> to vector<1x256xf32>
    %140 = vector.broadcast %138 : vector<4x1xf32> to vector<4x256xf32>
    %141 = vector.broadcast %139 : vector<1x256xf32> to vector<4x256xf32>
    %142 = arith.mulf %140, %141 : vector<4x256xf32>
    %143 = arith.addf %137, %142 : vector<4x256xf32>
    %c0_38 = arith.constant 0 : index
    %c18 = arith.constant 18 : index
    %144 = vector.load %arg3[%c0_38, %c18] : memref<4x36xf32, #tpu.memory_space<vmem>>, vector<4x1xf32>
    %145 = vector.extract_strided_slice %0 {offsets = [2, 0], sizes = [1, 256], strides = [1, 1]} : vector<8x256xf32> to vector<1x256xf32>
    %146 = vector.broadcast %144 : vector<4x1xf32> to vector<4x256xf32>
    %147 = vector.broadcast %145 : vector<1x256xf32> to vector<4x256xf32>
    %148 = arith.mulf %146, %147 : vector<4x256xf32>
    %149 = arith.addf %143, %148 : vector<4x256xf32>
    %c0_39 = arith.constant 0 : index
    %c19 = arith.constant 19 : index
    %150 = vector.load %arg3[%c0_39, %c19] : memref<4x36xf32, #tpu.memory_space<vmem>>, vector<4x1xf32>
    %151 = vector.extract_strided_slice %0 {offsets = [3, 0], sizes = [1, 256], strides = [1, 1]} : vector<8x256xf32> to vector<1x256xf32>
    %152 = vector.broadcast %150 : vector<4x1xf32> to vector<4x256xf32>
    %153 = vector.broadcast %151 : vector<1x256xf32> to vector<4x256xf32>
    %154 = arith.mulf %152, %153 : vector<4x256xf32>
    %155 = arith.addf %149, %154 : vector<4x256xf32>
    %c0_40 = arith.constant 0 : index
    %c20 = arith.constant 20 : index
    %156 = vector.load %arg3[%c0_40, %c20] : memref<4x36xf32, #tpu.memory_space<vmem>>, vector<4x1xf32>
    %157 = vector.extract_strided_slice %20 {offsets = [0, 0], sizes = [1, 256], strides = [1, 1]} : vector<8x256xf32> to vector<1x256xf32>
    %158 = vector.broadcast %156 : vector<4x1xf32> to vector<4x256xf32>
    %159 = vector.broadcast %157 : vector<1x256xf32> to vector<4x256xf32>
    %160 = arith.mulf %158, %159 : vector<4x256xf32>
    %161 = arith.addf %155, %160 : vector<4x256xf32>
    %c0_41 = arith.constant 0 : index
    %c21 = arith.constant 21 : index
    %162 = vector.load %arg3[%c0_41, %c21] : memref<4x36xf32, #tpu.memory_space<vmem>>, vector<4x1xf32>
    %163 = vector.extract_strided_slice %20 {offsets = [1, 0], sizes = [1, 256], strides = [1, 1]} : vector<8x256xf32> to vector<1x256xf32>
    %164 = vector.broadcast %162 : vector<4x1xf32> to vector<4x256xf32>
    %165 = vector.broadcast %163 : vector<1x256xf32> to vector<4x256xf32>
    %166 = arith.mulf %164, %165 : vector<4x256xf32>
    %167 = arith.addf %161, %166 : vector<4x256xf32>
    %c0_42 = arith.constant 0 : index
    %c22 = arith.constant 22 : index
    %168 = vector.load %arg3[%c0_42, %c22] : memref<4x36xf32, #tpu.memory_space<vmem>>, vector<4x1xf32>
    %169 = vector.extract_strided_slice %20 {offsets = [2, 0], sizes = [1, 256], strides = [1, 1]} : vector<8x256xf32> to vector<1x256xf32>
    %170 = vector.broadcast %168 : vector<4x1xf32> to vector<4x256xf32>
    %171 = vector.broadcast %169 : vector<1x256xf32> to vector<4x256xf32>
    %172 = arith.mulf %170, %171 : vector<4x256xf32>
    %173 = arith.addf %167, %172 : vector<4x256xf32>
    %c0_43 = arith.constant 0 : index
    %c23 = arith.constant 23 : index
    %174 = vector.load %arg3[%c0_43, %c23] : memref<4x36xf32, #tpu.memory_space<vmem>>, vector<4x1xf32>
    %175 = vector.extract_strided_slice %20 {offsets = [3, 0], sizes = [1, 256], strides = [1, 1]} : vector<8x256xf32> to vector<1x256xf32>
    %176 = vector.broadcast %174 : vector<4x1xf32> to vector<4x256xf32>
    %177 = vector.broadcast %175 : vector<1x256xf32> to vector<4x256xf32>
    %178 = arith.mulf %176, %177 : vector<4x256xf32>
    %179 = arith.addf %173, %178 : vector<4x256xf32>
    %c0_44 = arith.constant 0 : index
    %c24 = arith.constant 24 : index
    %180 = vector.load %arg3[%c0_44, %c24] : memref<4x36xf32, #tpu.memory_space<vmem>>, vector<4x1xf32>
    %181 = vector.extract_strided_slice %24 {offsets = [0, 0], sizes = [1, 256], strides = [1, 1]} : vector<8x256xf32> to vector<1x256xf32>
    %182 = vector.broadcast %180 : vector<4x1xf32> to vector<4x256xf32>
    %183 = vector.broadcast %181 : vector<1x256xf32> to vector<4x256xf32>
    %184 = arith.mulf %182, %183 : vector<4x256xf32>
    %185 = arith.addf %179, %184 : vector<4x256xf32>
    %c0_45 = arith.constant 0 : index
    %c25 = arith.constant 25 : index
    %186 = vector.load %arg3[%c0_45, %c25] : memref<4x36xf32, #tpu.memory_space<vmem>>, vector<4x1xf32>
    %187 = vector.extract_strided_slice %24 {offsets = [1, 0], sizes = [1, 256], strides = [1, 1]} : vector<8x256xf32> to vector<1x256xf32>
    %188 = vector.broadcast %186 : vector<4x1xf32> to vector<4x256xf32>
    %189 = vector.broadcast %187 : vector<1x256xf32> to vector<4x256xf32>
    %190 = arith.mulf %188, %189 : vector<4x256xf32>
    %191 = arith.addf %185, %190 : vector<4x256xf32>
    %c0_46 = arith.constant 0 : index
    %c26 = arith.constant 26 : index
    %192 = vector.load %arg3[%c0_46, %c26] : memref<4x36xf32, #tpu.memory_space<vmem>>, vector<4x1xf32>
    %193 = vector.extract_strided_slice %24 {offsets = [2, 0], sizes = [1, 256], strides = [1, 1]} : vector<8x256xf32> to vector<1x256xf32>
    %194 = vector.broadcast %192 : vector<4x1xf32> to vector<4x256xf32>
    %195 = vector.broadcast %193 : vector<1x256xf32> to vector<4x256xf32>
    %196 = arith.mulf %194, %195 : vector<4x256xf32>
    %197 = arith.addf %191, %196 : vector<4x256xf32>
    %c0_47 = arith.constant 0 : index
    %c27 = arith.constant 27 : index
    %198 = vector.load %arg3[%c0_47, %c27] : memref<4x36xf32, #tpu.memory_space<vmem>>, vector<4x1xf32>
    %199 = vector.extract_strided_slice %24 {offsets = [3, 0], sizes = [1, 256], strides = [1, 1]} : vector<8x256xf32> to vector<1x256xf32>
    %200 = vector.broadcast %198 : vector<4x1xf32> to vector<4x256xf32>
    %201 = vector.broadcast %199 : vector<1x256xf32> to vector<4x256xf32>
    %202 = arith.mulf %200, %201 : vector<4x256xf32>
    %203 = arith.addf %197, %202 : vector<4x256xf32>
    %c0_48 = arith.constant 0 : index
    %c28 = arith.constant 28 : index
    %204 = vector.load %arg3[%c0_48, %c28] : memref<4x36xf32, #tpu.memory_space<vmem>>, vector<4x1xf32>
    %205 = vector.extract_strided_slice %28 {offsets = [0, 0], sizes = [1, 256], strides = [1, 1]} : vector<8x256xf32> to vector<1x256xf32>
    %206 = vector.broadcast %204 : vector<4x1xf32> to vector<4x256xf32>
    %207 = vector.broadcast %205 : vector<1x256xf32> to vector<4x256xf32>
    %208 = arith.mulf %206, %207 : vector<4x256xf32>
    %209 = arith.addf %203, %208 : vector<4x256xf32>
    %c0_49 = arith.constant 0 : index
    %c29 = arith.constant 29 : index
    %210 = vector.load %arg3[%c0_49, %c29] : memref<4x36xf32, #tpu.memory_space<vmem>>, vector<4x1xf32>
    %211 = vector.extract_strided_slice %28 {offsets = [1, 0], sizes = [1, 256], strides = [1, 1]} : vector<8x256xf32> to vector<1x256xf32>
    %212 = vector.broadcast %210 : vector<4x1xf32> to vector<4x256xf32>
    %213 = vector.broadcast %211 : vector<1x256xf32> to vector<4x256xf32>
    %214 = arith.mulf %212, %213 : vector<4x256xf32>
    %215 = arith.addf %209, %214 : vector<4x256xf32>
    %c0_50 = arith.constant 0 : index
    %c30 = arith.constant 30 : index
    %216 = vector.load %arg3[%c0_50, %c30] : memref<4x36xf32, #tpu.memory_space<vmem>>, vector<4x1xf32>
    %217 = vector.extract_strided_slice %28 {offsets = [2, 0], sizes = [1, 256], strides = [1, 1]} : vector<8x256xf32> to vector<1x256xf32>
    %218 = vector.broadcast %216 : vector<4x1xf32> to vector<4x256xf32>
    %219 = vector.broadcast %217 : vector<1x256xf32> to vector<4x256xf32>
    %220 = arith.mulf %218, %219 : vector<4x256xf32>
    %221 = arith.addf %215, %220 : vector<4x256xf32>
    %c0_51 = arith.constant 0 : index
    %c31 = arith.constant 31 : index
    %222 = vector.load %arg3[%c0_51, %c31] : memref<4x36xf32, #tpu.memory_space<vmem>>, vector<4x1xf32>
    %223 = vector.extract_strided_slice %28 {offsets = [3, 0], sizes = [1, 256], strides = [1, 1]} : vector<8x256xf32> to vector<1x256xf32>
    %224 = vector.broadcast %222 : vector<4x1xf32> to vector<4x256xf32>
    %225 = vector.broadcast %223 : vector<1x256xf32> to vector<4x256xf32>
    %226 = arith.mulf %224, %225 : vector<4x256xf32>
    %227 = arith.addf %221, %226 : vector<4x256xf32>
    %c0_52 = arith.constant 0 : index
    %c32 = arith.constant 32 : index
    %228 = vector.load %arg3[%c0_52, %c32] : memref<4x36xf32, #tpu.memory_space<vmem>>, vector<4x1xf32>
    %229 = vector.extract_strided_slice %32 {offsets = [0, 0], sizes = [1, 256], strides = [1, 1]} : vector<8x256xf32> to vector<1x256xf32>
    %230 = vector.broadcast %228 : vector<4x1xf32> to vector<4x256xf32>
    %231 = vector.broadcast %229 : vector<1x256xf32> to vector<4x256xf32>
    %232 = arith.mulf %230, %231 : vector<4x256xf32>
    %233 = arith.addf %227, %232 : vector<4x256xf32>
    %c0_53 = arith.constant 0 : index
    %c33 = arith.constant 33 : index
    %234 = vector.load %arg3[%c0_53, %c33] : memref<4x36xf32, #tpu.memory_space<vmem>>, vector<4x1xf32>
    %235 = vector.extract_strided_slice %32 {offsets = [1, 0], sizes = [1, 256], strides = [1, 1]} : vector<8x256xf32> to vector<1x256xf32>
    %236 = vector.broadcast %234 : vector<4x1xf32> to vector<4x256xf32>
    %237 = vector.broadcast %235 : vector<1x256xf32> to vector<4x256xf32>
    %238 = arith.mulf %236, %237 : vector<4x256xf32>
    %239 = arith.addf %233, %238 : vector<4x256xf32>
    %c0_54 = arith.constant 0 : index
    %c34 = arith.constant 34 : index
    %240 = vector.load %arg3[%c0_54, %c34] : memref<4x36xf32, #tpu.memory_space<vmem>>, vector<4x1xf32>
    %241 = vector.extract_strided_slice %32 {offsets = [2, 0], sizes = [1, 256], strides = [1, 1]} : vector<8x256xf32> to vector<1x256xf32>
    %242 = vector.broadcast %240 : vector<4x1xf32> to vector<4x256xf32>
    %243 = vector.broadcast %241 : vector<1x256xf32> to vector<4x256xf32>
    %244 = arith.mulf %242, %243 : vector<4x256xf32>
    %245 = arith.addf %239, %244 : vector<4x256xf32>
    %c0_55 = arith.constant 0 : index
    %c35 = arith.constant 35 : index
    %246 = vector.load %arg3[%c0_55, %c35] : memref<4x36xf32, #tpu.memory_space<vmem>>, vector<4x1xf32>
    %247 = vector.extract_strided_slice %32 {offsets = [3, 0], sizes = [1, 256], strides = [1, 1]} : vector<8x256xf32> to vector<1x256xf32>
    %248 = vector.broadcast %246 : vector<4x1xf32> to vector<4x256xf32>
    %249 = vector.broadcast %247 : vector<1x256xf32> to vector<4x256xf32>
    %250 = arith.mulf %248, %249 : vector<4x256xf32>
    %251 = arith.addf %245, %250 : vector<4x256xf32>
    %c0_56 = arith.constant 0 : index
    %c0_57 = arith.constant 0 : index
    %252 = vector.load %arg4[%c0_56, %c0_57] : memref<4x1xf32, #tpu.memory_space<vmem>>, vector<4x1xf32>
    %253 = vector.shape_cast %252 : vector<4x1xf32> to vector<4x1xf32>
    %254 = vector.broadcast %253 : vector<4x1xf32> to vector<4x256xf32>
    %c0_58 = arith.constant 0 : index
    %c0_59 = arith.constant 0 : index
    %255 = vector.load %arg3[%c0_58, %c0_59] : memref<4x36xf32, #tpu.memory_space<vmem>>, vector<4x1xf32>
    %256 = vector.extract_strided_slice %4 {offsets = [4, 0], sizes = [1, 256], strides = [1, 1]} : vector<8x256xf32> to vector<1x256xf32>
    %257 = vector.broadcast %255 : vector<4x1xf32> to vector<4x256xf32>
    %258 = vector.broadcast %256 : vector<1x256xf32> to vector<4x256xf32>
    %259 = arith.mulf %257, %258 : vector<4x256xf32>
    %260 = arith.addf %254, %259 : vector<4x256xf32>
    %c0_60 = arith.constant 0 : index
    %c1_61 = arith.constant 1 : index
    %261 = vector.load %arg3[%c0_60, %c1_61] : memref<4x36xf32, #tpu.memory_space<vmem>>, vector<4x1xf32>
    %262 = vector.extract_strided_slice %4 {offsets = [5, 0], sizes = [1, 256], strides = [1, 1]} : vector<8x256xf32> to vector<1x256xf32>
    %263 = vector.broadcast %261 : vector<4x1xf32> to vector<4x256xf32>
    %264 = vector.broadcast %262 : vector<1x256xf32> to vector<4x256xf32>
    %265 = arith.mulf %263, %264 : vector<4x256xf32>
    %266 = arith.addf %260, %265 : vector<4x256xf32>
    %c0_62 = arith.constant 0 : index
    %c2_63 = arith.constant 2 : index
    %267 = vector.load %arg3[%c0_62, %c2_63] : memref<4x36xf32, #tpu.memory_space<vmem>>, vector<4x1xf32>
    %268 = vector.extract_strided_slice %4 {offsets = [6, 0], sizes = [1, 256], strides = [1, 1]} : vector<8x256xf32> to vector<1x256xf32>
    %269 = vector.broadcast %267 : vector<4x1xf32> to vector<4x256xf32>
    %270 = vector.broadcast %268 : vector<1x256xf32> to vector<4x256xf32>
    %271 = arith.mulf %269, %270 : vector<4x256xf32>
    %272 = arith.addf %266, %271 : vector<4x256xf32>
    %c0_64 = arith.constant 0 : index
    %c3_65 = arith.constant 3 : index
    %273 = vector.load %arg3[%c0_64, %c3_65] : memref<4x36xf32, #tpu.memory_space<vmem>>, vector<4x1xf32>
    %274 = vector.extract_strided_slice %4 {offsets = [7, 0], sizes = [1, 256], strides = [1, 1]} : vector<8x256xf32> to vector<1x256xf32>
    %275 = vector.broadcast %273 : vector<4x1xf32> to vector<4x256xf32>
    %276 = vector.broadcast %274 : vector<1x256xf32> to vector<4x256xf32>
    %277 = arith.mulf %275, %276 : vector<4x256xf32>
    %278 = arith.addf %272, %277 : vector<4x256xf32>
    %c0_66 = arith.constant 0 : index
    %c4_67 = arith.constant 4 : index
    %279 = vector.load %arg3[%c0_66, %c4_67] : memref<4x36xf32, #tpu.memory_space<vmem>>, vector<4x1xf32>
    %280 = vector.extract_strided_slice %8 {offsets = [4, 0], sizes = [1, 256], strides = [1, 1]} : vector<8x256xf32> to vector<1x256xf32>
    %281 = vector.broadcast %279 : vector<4x1xf32> to vector<4x256xf32>
    %282 = vector.broadcast %280 : vector<1x256xf32> to vector<4x256xf32>
    %283 = arith.mulf %281, %282 : vector<4x256xf32>
    %284 = arith.addf %278, %283 : vector<4x256xf32>
    %c0_68 = arith.constant 0 : index
    %c5_69 = arith.constant 5 : index
    %285 = vector.load %arg3[%c0_68, %c5_69] : memref<4x36xf32, #tpu.memory_space<vmem>>, vector<4x1xf32>
    %286 = vector.extract_strided_slice %8 {offsets = [5, 0], sizes = [1, 256], strides = [1, 1]} : vector<8x256xf32> to vector<1x256xf32>
    %287 = vector.broadcast %285 : vector<4x1xf32> to vector<4x256xf32>
    %288 = vector.broadcast %286 : vector<1x256xf32> to vector<4x256xf32>
    %289 = arith.mulf %287, %288 : vector<4x256xf32>
    %290 = arith.addf %284, %289 : vector<4x256xf32>
    %c0_70 = arith.constant 0 : index
    %c6_71 = arith.constant 6 : index
    %291 = vector.load %arg3[%c0_70, %c6_71] : memref<4x36xf32, #tpu.memory_space<vmem>>, vector<4x1xf32>
    %292 = vector.extract_strided_slice %8 {offsets = [6, 0], sizes = [1, 256], strides = [1, 1]} : vector<8x256xf32> to vector<1x256xf32>
    %293 = vector.broadcast %291 : vector<4x1xf32> to vector<4x256xf32>
    %294 = vector.broadcast %292 : vector<1x256xf32> to vector<4x256xf32>
    %295 = arith.mulf %293, %294 : vector<4x256xf32>
    %296 = arith.addf %290, %295 : vector<4x256xf32>
    %c0_72 = arith.constant 0 : index
    %c7_73 = arith.constant 7 : index
    %297 = vector.load %arg3[%c0_72, %c7_73] : memref<4x36xf32, #tpu.memory_space<vmem>>, vector<4x1xf32>
    %298 = vector.extract_strided_slice %8 {offsets = [7, 0], sizes = [1, 256], strides = [1, 1]} : vector<8x256xf32> to vector<1x256xf32>
    %299 = vector.broadcast %297 : vector<4x1xf32> to vector<4x256xf32>
    %300 = vector.broadcast %298 : vector<1x256xf32> to vector<4x256xf32>
    %301 = arith.mulf %299, %300 : vector<4x256xf32>
    %302 = arith.addf %296, %301 : vector<4x256xf32>
    %c0_74 = arith.constant 0 : index
    %c8_75 = arith.constant 8 : index
    %303 = vector.load %arg3[%c0_74, %c8_75] : memref<4x36xf32, #tpu.memory_space<vmem>>, vector<4x1xf32>
    %304 = vector.extract_strided_slice %12 {offsets = [4, 0], sizes = [1, 256], strides = [1, 1]} : vector<8x256xf32> to vector<1x256xf32>
    %305 = vector.broadcast %303 : vector<4x1xf32> to vector<4x256xf32>
    %306 = vector.broadcast %304 : vector<1x256xf32> to vector<4x256xf32>
    %307 = arith.mulf %305, %306 : vector<4x256xf32>
    %308 = arith.addf %302, %307 : vector<4x256xf32>
    %c0_76 = arith.constant 0 : index
    %c9_77 = arith.constant 9 : index
    %309 = vector.load %arg3[%c0_76, %c9_77] : memref<4x36xf32, #tpu.memory_space<vmem>>, vector<4x1xf32>
    %310 = vector.extract_strided_slice %12 {offsets = [5, 0], sizes = [1, 256], strides = [1, 1]} : vector<8x256xf32> to vector<1x256xf32>
    %311 = vector.broadcast %309 : vector<4x1xf32> to vector<4x256xf32>
    %312 = vector.broadcast %310 : vector<1x256xf32> to vector<4x256xf32>
    %313 = arith.mulf %311, %312 : vector<4x256xf32>
    %314 = arith.addf %308, %313 : vector<4x256xf32>
    %c0_78 = arith.constant 0 : index
    %c10_79 = arith.constant 10 : index
    %315 = vector.load %arg3[%c0_78, %c10_79] : memref<4x36xf32, #tpu.memory_space<vmem>>, vector<4x1xf32>
    %316 = vector.extract_strided_slice %12 {offsets = [6, 0], sizes = [1, 256], strides = [1, 1]} : vector<8x256xf32> to vector<1x256xf32>
    %317 = vector.broadcast %315 : vector<4x1xf32> to vector<4x256xf32>
    %318 = vector.broadcast %316 : vector<1x256xf32> to vector<4x256xf32>
    %319 = arith.mulf %317, %318 : vector<4x256xf32>
    %320 = arith.addf %314, %319 : vector<4x256xf32>
    %c0_80 = arith.constant 0 : index
    %c11_81 = arith.constant 11 : index
    %321 = vector.load %arg3[%c0_80, %c11_81] : memref<4x36xf32, #tpu.memory_space<vmem>>, vector<4x1xf32>
    %322 = vector.extract_strided_slice %12 {offsets = [7, 0], sizes = [1, 256], strides = [1, 1]} : vector<8x256xf32> to vector<1x256xf32>
    %323 = vector.broadcast %321 : vector<4x1xf32> to vector<4x256xf32>
    %324 = vector.broadcast %322 : vector<1x256xf32> to vector<4x256xf32>
    %325 = arith.mulf %323, %324 : vector<4x256xf32>
    %326 = arith.addf %320, %325 : vector<4x256xf32>
    %c0_82 = arith.constant 0 : index
    %c12_83 = arith.constant 12 : index
    %327 = vector.load %arg3[%c0_82, %c12_83] : memref<4x36xf32, #tpu.memory_space<vmem>>, vector<4x1xf32>
    %328 = vector.extract_strided_slice %16 {offsets = [4, 0], sizes = [1, 256], strides = [1, 1]} : vector<8x256xf32> to vector<1x256xf32>
    %329 = vector.broadcast %327 : vector<4x1xf32> to vector<4x256xf32>
    %330 = vector.broadcast %328 : vector<1x256xf32> to vector<4x256xf32>
    %331 = arith.mulf %329, %330 : vector<4x256xf32>
    %332 = arith.addf %326, %331 : vector<4x256xf32>
    %c0_84 = arith.constant 0 : index
    %c13_85 = arith.constant 13 : index
    %333 = vector.load %arg3[%c0_84, %c13_85] : memref<4x36xf32, #tpu.memory_space<vmem>>, vector<4x1xf32>
    %334 = vector.extract_strided_slice %16 {offsets = [5, 0], sizes = [1, 256], strides = [1, 1]} : vector<8x256xf32> to vector<1x256xf32>
    %335 = vector.broadcast %333 : vector<4x1xf32> to vector<4x256xf32>
    %336 = vector.broadcast %334 : vector<1x256xf32> to vector<4x256xf32>
    %337 = arith.mulf %335, %336 : vector<4x256xf32>
    %338 = arith.addf %332, %337 : vector<4x256xf32>
    %c0_86 = arith.constant 0 : index
    %c14_87 = arith.constant 14 : index
    %339 = vector.load %arg3[%c0_86, %c14_87] : memref<4x36xf32, #tpu.memory_space<vmem>>, vector<4x1xf32>
    %340 = vector.extract_strided_slice %16 {offsets = [6, 0], sizes = [1, 256], strides = [1, 1]} : vector<8x256xf32> to vector<1x256xf32>
    %341 = vector.broadcast %339 : vector<4x1xf32> to vector<4x256xf32>
    %342 = vector.broadcast %340 : vector<1x256xf32> to vector<4x256xf32>
    %343 = arith.mulf %341, %342 : vector<4x256xf32>
    %344 = arith.addf %338, %343 : vector<4x256xf32>
    %c0_88 = arith.constant 0 : index
    %c15_89 = arith.constant 15 : index
    %345 = vector.load %arg3[%c0_88, %c15_89] : memref<4x36xf32, #tpu.memory_space<vmem>>, vector<4x1xf32>
    %346 = vector.extract_strided_slice %16 {offsets = [7, 0], sizes = [1, 256], strides = [1, 1]} : vector<8x256xf32> to vector<1x256xf32>
    %347 = vector.broadcast %345 : vector<4x1xf32> to vector<4x256xf32>
    %348 = vector.broadcast %346 : vector<1x256xf32> to vector<4x256xf32>
    %349 = arith.mulf %347, %348 : vector<4x256xf32>
    %350 = arith.addf %344, %349 : vector<4x256xf32>
    %c0_90 = arith.constant 0 : index
    %c16_91 = arith.constant 16 : index
    %351 = vector.load %arg3[%c0_90, %c16_91] : memref<4x36xf32, #tpu.memory_space<vmem>>, vector<4x1xf32>
    %352 = vector.extract_strided_slice %0 {offsets = [4, 0], sizes = [1, 256], strides = [1, 1]} : vector<8x256xf32> to vector<1x256xf32>
    %353 = vector.broadcast %351 : vector<4x1xf32> to vector<4x256xf32>
    %354 = vector.broadcast %352 : vector<1x256xf32> to vector<4x256xf32>
    %355 = arith.mulf %353, %354 : vector<4x256xf32>
    %356 = arith.addf %350, %355 : vector<4x256xf32>
    %c0_92 = arith.constant 0 : index
    %c17_93 = arith.constant 17 : index
    %357 = vector.load %arg3[%c0_92, %c17_93] : memref<4x36xf32, #tpu.memory_space<vmem>>, vector<4x1xf32>
    %358 = vector.extract_strided_slice %0 {offsets = [5, 0], sizes = [1, 256], strides = [1, 1]} : vector<8x256xf32> to vector<1x256xf32>
    %359 = vector.broadcast %357 : vector<4x1xf32> to vector<4x256xf32>
    %360 = vector.broadcast %358 : vector<1x256xf32> to vector<4x256xf32>
    %361 = arith.mulf %359, %360 : vector<4x256xf32>
    %362 = arith.addf %356, %361 : vector<4x256xf32>
    %c0_94 = arith.constant 0 : index
    %c18_95 = arith.constant 18 : index
    %363 = vector.load %arg3[%c0_94, %c18_95] : memref<4x36xf32, #tpu.memory_space<vmem>>, vector<4x1xf32>
    %364 = vector.extract_strided_slice %0 {offsets = [6, 0], sizes = [1, 256], strides = [1, 1]} : vector<8x256xf32> to vector<1x256xf32>
    %365 = vector.broadcast %363 : vector<4x1xf32> to vector<4x256xf32>
    %366 = vector.broadcast %364 : vector<1x256xf32> to vector<4x256xf32>
    %367 = arith.mulf %365, %366 : vector<4x256xf32>
    %368 = arith.addf %362, %367 : vector<4x256xf32>
    %c0_96 = arith.constant 0 : index
    %c19_97 = arith.constant 19 : index
    %369 = vector.load %arg3[%c0_96, %c19_97] : memref<4x36xf32, #tpu.memory_space<vmem>>, vector<4x1xf32>
    %370 = vector.extract_strided_slice %0 {offsets = [7, 0], sizes = [1, 256], strides = [1, 1]} : vector<8x256xf32> to vector<1x256xf32>
    %371 = vector.broadcast %369 : vector<4x1xf32> to vector<4x256xf32>
    %372 = vector.broadcast %370 : vector<1x256xf32> to vector<4x256xf32>
    %373 = arith.mulf %371, %372 : vector<4x256xf32>
    %374 = arith.addf %368, %373 : vector<4x256xf32>
    %c0_98 = arith.constant 0 : index
    %c20_99 = arith.constant 20 : index
    %375 = vector.load %arg3[%c0_98, %c20_99] : memref<4x36xf32, #tpu.memory_space<vmem>>, vector<4x1xf32>
    %376 = vector.extract_strided_slice %20 {offsets = [4, 0], sizes = [1, 256], strides = [1, 1]} : vector<8x256xf32> to vector<1x256xf32>
    %377 = vector.broadcast %375 : vector<4x1xf32> to vector<4x256xf32>
    %378 = vector.broadcast %376 : vector<1x256xf32> to vector<4x256xf32>
    %379 = arith.mulf %377, %378 : vector<4x256xf32>
    %380 = arith.addf %374, %379 : vector<4x256xf32>
    %c0_100 = arith.constant 0 : index
    %c21_101 = arith.constant 21 : index
    %381 = vector.load %arg3[%c0_100, %c21_101] : memref<4x36xf32, #tpu.memory_space<vmem>>, vector<4x1xf32>
    %382 = vector.extract_strided_slice %20 {offsets = [5, 0], sizes = [1, 256], strides = [1, 1]} : vector<8x256xf32> to vector<1x256xf32>
    %383 = vector.broadcast %381 : vector<4x1xf32> to vector<4x256xf32>
    %384 = vector.broadcast %382 : vector<1x256xf32> to vector<4x256xf32>
    %385 = arith.mulf %383, %384 : vector<4x256xf32>
    %386 = arith.addf %380, %385 : vector<4x256xf32>
    %c0_102 = arith.constant 0 : index
    %c22_103 = arith.constant 22 : index
    %387 = vector.load %arg3[%c0_102, %c22_103] : memref<4x36xf32, #tpu.memory_space<vmem>>, vector<4x1xf32>
    %388 = vector.extract_strided_slice %20 {offsets = [6, 0], sizes = [1, 256], strides = [1, 1]} : vector<8x256xf32> to vector<1x256xf32>
    %389 = vector.broadcast %387 : vector<4x1xf32> to vector<4x256xf32>
    %390 = vector.broadcast %388 : vector<1x256xf32> to vector<4x256xf32>
    %391 = arith.mulf %389, %390 : vector<4x256xf32>
    %392 = arith.addf %386, %391 : vector<4x256xf32>
    %c0_104 = arith.constant 0 : index
    %c23_105 = arith.constant 23 : index
    %393 = vector.load %arg3[%c0_104, %c23_105] : memref<4x36xf32, #tpu.memory_space<vmem>>, vector<4x1xf32>
    %394 = vector.extract_strided_slice %20 {offsets = [7, 0], sizes = [1, 256], strides = [1, 1]} : vector<8x256xf32> to vector<1x256xf32>
    %395 = vector.broadcast %393 : vector<4x1xf32> to vector<4x256xf32>
    %396 = vector.broadcast %394 : vector<1x256xf32> to vector<4x256xf32>
    %397 = arith.mulf %395, %396 : vector<4x256xf32>
    %398 = arith.addf %392, %397 : vector<4x256xf32>
    %c0_106 = arith.constant 0 : index
    %c24_107 = arith.constant 24 : index
    %399 = vector.load %arg3[%c0_106, %c24_107] : memref<4x36xf32, #tpu.memory_space<vmem>>, vector<4x1xf32>
    %400 = vector.extract_strided_slice %24 {offsets = [4, 0], sizes = [1, 256], strides = [1, 1]} : vector<8x256xf32> to vector<1x256xf32>
    %401 = vector.broadcast %399 : vector<4x1xf32> to vector<4x256xf32>
    %402 = vector.broadcast %400 : vector<1x256xf32> to vector<4x256xf32>
    %403 = arith.mulf %401, %402 : vector<4x256xf32>
    %404 = arith.addf %398, %403 : vector<4x256xf32>
    %c0_108 = arith.constant 0 : index
    %c25_109 = arith.constant 25 : index
    %405 = vector.load %arg3[%c0_108, %c25_109] : memref<4x36xf32, #tpu.memory_space<vmem>>, vector<4x1xf32>
    %406 = vector.extract_strided_slice %24 {offsets = [5, 0], sizes = [1, 256], strides = [1, 1]} : vector<8x256xf32> to vector<1x256xf32>
    %407 = vector.broadcast %405 : vector<4x1xf32> to vector<4x256xf32>
    %408 = vector.broadcast %406 : vector<1x256xf32> to vector<4x256xf32>
    %409 = arith.mulf %407, %408 : vector<4x256xf32>
    %410 = arith.addf %404, %409 : vector<4x256xf32>
    %c0_110 = arith.constant 0 : index
    %c26_111 = arith.constant 26 : index
    %411 = vector.load %arg3[%c0_110, %c26_111] : memref<4x36xf32, #tpu.memory_space<vmem>>, vector<4x1xf32>
    %412 = vector.extract_strided_slice %24 {offsets = [6, 0], sizes = [1, 256], strides = [1, 1]} : vector<8x256xf32> to vector<1x256xf32>
    %413 = vector.broadcast %411 : vector<4x1xf32> to vector<4x256xf32>
    %414 = vector.broadcast %412 : vector<1x256xf32> to vector<4x256xf32>
    %415 = arith.mulf %413, %414 : vector<4x256xf32>
    %416 = arith.addf %410, %415 : vector<4x256xf32>
    %c0_112 = arith.constant 0 : index
    %c27_113 = arith.constant 27 : index
    %417 = vector.load %arg3[%c0_112, %c27_113] : memref<4x36xf32, #tpu.memory_space<vmem>>, vector<4x1xf32>
    %418 = vector.extract_strided_slice %24 {offsets = [7, 0], sizes = [1, 256], strides = [1, 1]} : vector<8x256xf32> to vector<1x256xf32>
    %419 = vector.broadcast %417 : vector<4x1xf32> to vector<4x256xf32>
    %420 = vector.broadcast %418 : vector<1x256xf32> to vector<4x256xf32>
    %421 = arith.mulf %419, %420 : vector<4x256xf32>
    %422 = arith.addf %416, %421 : vector<4x256xf32>
    %c0_114 = arith.constant 0 : index
    %c28_115 = arith.constant 28 : index
    %423 = vector.load %arg3[%c0_114, %c28_115] : memref<4x36xf32, #tpu.memory_space<vmem>>, vector<4x1xf32>
    %424 = vector.extract_strided_slice %28 {offsets = [4, 0], sizes = [1, 256], strides = [1, 1]} : vector<8x256xf32> to vector<1x256xf32>
    %425 = vector.broadcast %423 : vector<4x1xf32> to vector<4x256xf32>
    %426 = vector.broadcast %424 : vector<1x256xf32> to vector<4x256xf32>
    %427 = arith.mulf %425, %426 : vector<4x256xf32>
    %428 = arith.addf %422, %427 : vector<4x256xf32>
    %c0_116 = arith.constant 0 : index
    %c29_117 = arith.constant 29 : index
    %429 = vector.load %arg3[%c0_116, %c29_117] : memref<4x36xf32, #tpu.memory_space<vmem>>, vector<4x1xf32>
    %430 = vector.extract_strided_slice %28 {offsets = [5, 0], sizes = [1, 256], strides = [1, 1]} : vector<8x256xf32> to vector<1x256xf32>
    %431 = vector.broadcast %429 : vector<4x1xf32> to vector<4x256xf32>
    %432 = vector.broadcast %430 : vector<1x256xf32> to vector<4x256xf32>
    %433 = arith.mulf %431, %432 : vector<4x256xf32>
    %434 = arith.addf %428, %433 : vector<4x256xf32>
    %c0_118 = arith.constant 0 : index
    %c30_119 = arith.constant 30 : index
    %435 = vector.load %arg3[%c0_118, %c30_119] : memref<4x36xf32, #tpu.memory_space<vmem>>, vector<4x1xf32>
    %436 = vector.extract_strided_slice %28 {offsets = [6, 0], sizes = [1, 256], strides = [1, 1]} : vector<8x256xf32> to vector<1x256xf32>
    %437 = vector.broadcast %435 : vector<4x1xf32> to vector<4x256xf32>
    %438 = vector.broadcast %436 : vector<1x256xf32> to vector<4x256xf32>
    %439 = arith.mulf %437, %438 : vector<4x256xf32>
    %440 = arith.addf %434, %439 : vector<4x256xf32>
    %c0_120 = arith.constant 0 : index
    %c31_121 = arith.constant 31 : index
    %441 = vector.load %arg3[%c0_120, %c31_121] : memref<4x36xf32, #tpu.memory_space<vmem>>, vector<4x1xf32>
    %442 = vector.extract_strided_slice %28 {offsets = [7, 0], sizes = [1, 256], strides = [1, 1]} : vector<8x256xf32> to vector<1x256xf32>
    %443 = vector.broadcast %441 : vector<4x1xf32> to vector<4x256xf32>
    %444 = vector.broadcast %442 : vector<1x256xf32> to vector<4x256xf32>
    %445 = arith.mulf %443, %444 : vector<4x256xf32>
    %446 = arith.addf %440, %445 : vector<4x256xf32>
    %c0_122 = arith.constant 0 : index
    %c32_123 = arith.constant 32 : index
    %447 = vector.load %arg3[%c0_122, %c32_123] : memref<4x36xf32, #tpu.memory_space<vmem>>, vector<4x1xf32>
    %448 = vector.extract_strided_slice %32 {offsets = [4, 0], sizes = [1, 256], strides = [1, 1]} : vector<8x256xf32> to vector<1x256xf32>
    %449 = vector.broadcast %447 : vector<4x1xf32> to vector<4x256xf32>
    %450 = vector.broadcast %448 : vector<1x256xf32> to vector<4x256xf32>
    %451 = arith.mulf %449, %450 : vector<4x256xf32>
    %452 = arith.addf %446, %451 : vector<4x256xf32>
    %c0_124 = arith.constant 0 : index
    %c33_125 = arith.constant 33 : index
    %453 = vector.load %arg3[%c0_124, %c33_125] : memref<4x36xf32, #tpu.memory_space<vmem>>, vector<4x1xf32>
    %454 = vector.extract_strided_slice %32 {offsets = [5, 0], sizes = [1, 256], strides = [1, 1]} : vector<8x256xf32> to vector<1x256xf32>
    %455 = vector.broadcast %453 : vector<4x1xf32> to vector<4x256xf32>
    %456 = vector.broadcast %454 : vector<1x256xf32> to vector<4x256xf32>
    %457 = arith.mulf %455, %456 : vector<4x256xf32>
    %458 = arith.addf %452, %457 : vector<4x256xf32>
    %c0_126 = arith.constant 0 : index
    %c34_127 = arith.constant 34 : index
    %459 = vector.load %arg3[%c0_126, %c34_127] : memref<4x36xf32, #tpu.memory_space<vmem>>, vector<4x1xf32>
    %460 = vector.extract_strided_slice %32 {offsets = [6, 0], sizes = [1, 256], strides = [1, 1]} : vector<8x256xf32> to vector<1x256xf32>
    %461 = vector.broadcast %459 : vector<4x1xf32> to vector<4x256xf32>
    %462 = vector.broadcast %460 : vector<1x256xf32> to vector<4x256xf32>
    %463 = arith.mulf %461, %462 : vector<4x256xf32>
    %464 = arith.addf %458, %463 : vector<4x256xf32>
    %c0_128 = arith.constant 0 : index
    %c35_129 = arith.constant 35 : index
    %465 = vector.load %arg3[%c0_128, %c35_129] : memref<4x36xf32, #tpu.memory_space<vmem>>, vector<4x1xf32>
    %466 = vector.extract_strided_slice %32 {offsets = [7, 0], sizes = [1, 256], strides = [1, 1]} : vector<8x256xf32> to vector<1x256xf32>
    %467 = vector.broadcast %465 : vector<4x1xf32> to vector<4x256xf32>
    %468 = vector.broadcast %466 : vector<1x256xf32> to vector<4x256xf32>
    %469 = arith.mulf %467, %468 : vector<4x256xf32>
    %470 = arith.addf %464, %469 : vector<4x256xf32>
    %471 = tpu.concatenate %251, %470 in 0 : vector<4x256xf32>, vector<4x256xf32> -> vector<8x256xf32>
    %cst = arith.constant 0.000000e+00 : f32
    %472 = vector.broadcast %cst : f32 to vector<8x256xf32>
    %473 = arith.maximumf %471, %472 : vector<8x256xf32>
    %474 = arith.addf %473, %0 : vector<8x256xf32>
    %c17_i32_130 = arith.constant 17 : i32
    %475 = tpu.dynamic_rotate %474 by %c17_i32_130 dim 1 : vector<8x256xf32>, i32 -> vector<8x256xf32>
    %c0_131 = arith.constant 0 : index
    %c0_132 = arith.constant 0 : index
    %476 = vector.load %arg2[%c0_131, %c0_132] : memref<9x256xf32, #tpu.memory_space<vmem>>, vector<1x256xf32>
    %477 = vector.broadcast %476 : vector<1x256xf32> to vector<8x256xf32>
    %478 = arith.mulf %475, %477 : vector<8x256xf32>
    %c16_i32_133 = arith.constant 16 : i32
    %479 = tpu.dynamic_rotate %474 by %c16_i32_133 dim 1 : vector<8x256xf32>, i32 -> vector<8x256xf32>
    %c1_134 = arith.constant 1 : index
    %c0_135 = arith.constant 0 : index
    %480 = vector.load %arg2[%c1_134, %c0_135] : memref<9x256xf32, #tpu.memory_space<vmem>>, vector<1x256xf32>
    %481 = vector.broadcast %480 : vector<1x256xf32> to vector<8x256xf32>
    %482 = arith.mulf %479, %481 : vector<8x256xf32>
    %c15_i32_136 = arith.constant 15 : i32
    %483 = tpu.dynamic_rotate %474 by %c15_i32_136 dim 1 : vector<8x256xf32>, i32 -> vector<8x256xf32>
    %c2_137 = arith.constant 2 : index
    %c0_138 = arith.constant 0 : index
    %484 = vector.load %arg2[%c2_137, %c0_138] : memref<9x256xf32, #tpu.memory_space<vmem>>, vector<1x256xf32>
    %485 = vector.broadcast %484 : vector<1x256xf32> to vector<8x256xf32>
    %486 = arith.mulf %483, %485 : vector<8x256xf32>
    %c1_i32_139 = arith.constant 1 : i32
    %487 = tpu.dynamic_rotate %474 by %c1_i32_139 dim 1 : vector<8x256xf32>, i32 -> vector<8x256xf32>
    %c3_140 = arith.constant 3 : index
    %c0_141 = arith.constant 0 : index
    %488 = vector.load %arg2[%c3_140, %c0_141] : memref<9x256xf32, #tpu.memory_space<vmem>>, vector<1x256xf32>
    %489 = vector.broadcast %488 : vector<1x256xf32> to vector<8x256xf32>
    %490 = arith.mulf %487, %489 : vector<8x256xf32>
    %c255_i32_142 = arith.constant 255 : i32
    %491 = tpu.dynamic_rotate %474 by %c255_i32_142 dim 1 : vector<8x256xf32>, i32 -> vector<8x256xf32>
    %c5_143 = arith.constant 5 : index
    %c0_144 = arith.constant 0 : index
    %492 = vector.load %arg2[%c5_143, %c0_144] : memref<9x256xf32, #tpu.memory_space<vmem>>, vector<1x256xf32>
    %493 = vector.broadcast %492 : vector<1x256xf32> to vector<8x256xf32>
    %494 = arith.mulf %491, %493 : vector<8x256xf32>
    %c241_i32_145 = arith.constant 241 : i32
    %495 = tpu.dynamic_rotate %474 by %c241_i32_145 dim 1 : vector<8x256xf32>, i32 -> vector<8x256xf32>
    %c6_146 = arith.constant 6 : index
    %c0_147 = arith.constant 0 : index
    %496 = vector.load %arg2[%c6_146, %c0_147] : memref<9x256xf32, #tpu.memory_space<vmem>>, vector<1x256xf32>
    %497 = vector.broadcast %496 : vector<1x256xf32> to vector<8x256xf32>
    %498 = arith.mulf %495, %497 : vector<8x256xf32>
    %c240_i32_148 = arith.constant 240 : i32
    %499 = tpu.dynamic_rotate %474 by %c240_i32_148 dim 1 : vector<8x256xf32>, i32 -> vector<8x256xf32>
    %c7_149 = arith.constant 7 : index
    %c0_150 = arith.constant 0 : index
    %500 = vector.load %arg2[%c7_149, %c0_150] : memref<9x256xf32, #tpu.memory_space<vmem>>, vector<1x256xf32>
    %501 = vector.broadcast %500 : vector<1x256xf32> to vector<8x256xf32>
    %502 = arith.mulf %499, %501 : vector<8x256xf32>
    %c239_i32_151 = arith.constant 239 : i32
    %503 = tpu.dynamic_rotate %474 by %c239_i32_151 dim 1 : vector<8x256xf32>, i32 -> vector<8x256xf32>
    %c8_152 = arith.constant 8 : index
    %c0_153 = arith.constant 0 : index
    %504 = vector.load %arg2[%c8_152, %c0_153] : memref<9x256xf32, #tpu.memory_space<vmem>>, vector<1x256xf32>
    %505 = vector.broadcast %504 : vector<1x256xf32> to vector<8x256xf32>
    %506 = arith.mulf %503, %505 : vector<8x256xf32>
    %c0_154 = arith.constant 0 : index
    %c0_155 = arith.constant 0 : index
    %507 = vector.load %arg6[%c0_154, %c0_155] : memref<4x1xf32, #tpu.memory_space<vmem>>, vector<4x1xf32>
    %508 = vector.shape_cast %507 : vector<4x1xf32> to vector<4x1xf32>
    %509 = vector.broadcast %508 : vector<4x1xf32> to vector<4x256xf32>
    %c0_156 = arith.constant 0 : index
    %c0_157 = arith.constant 0 : index
    %510 = vector.load %arg5[%c0_156, %c0_157] : memref<4x36xf32, #tpu.memory_space<vmem>>, vector<4x1xf32>
    %511 = vector.extract_strided_slice %478 {offsets = [0, 0], sizes = [1, 256], strides = [1, 1]} : vector<8x256xf32> to vector<1x256xf32>
    %512 = vector.broadcast %510 : vector<4x1xf32> to vector<4x256xf32>
    %513 = vector.broadcast %511 : vector<1x256xf32> to vector<4x256xf32>
    %514 = arith.mulf %512, %513 : vector<4x256xf32>
    %515 = arith.addf %509, %514 : vector<4x256xf32>
    %c0_158 = arith.constant 0 : index
    %c1_159 = arith.constant 1 : index
    %516 = vector.load %arg5[%c0_158, %c1_159] : memref<4x36xf32, #tpu.memory_space<vmem>>, vector<4x1xf32>
    %517 = vector.extract_strided_slice %478 {offsets = [1, 0], sizes = [1, 256], strides = [1, 1]} : vector<8x256xf32> to vector<1x256xf32>
    %518 = vector.broadcast %516 : vector<4x1xf32> to vector<4x256xf32>
    %519 = vector.broadcast %517 : vector<1x256xf32> to vector<4x256xf32>
    %520 = arith.mulf %518, %519 : vector<4x256xf32>
    %521 = arith.addf %515, %520 : vector<4x256xf32>
    %c0_160 = arith.constant 0 : index
    %c2_161 = arith.constant 2 : index
    %522 = vector.load %arg5[%c0_160, %c2_161] : memref<4x36xf32, #tpu.memory_space<vmem>>, vector<4x1xf32>
    %523 = vector.extract_strided_slice %478 {offsets = [2, 0], sizes = [1, 256], strides = [1, 1]} : vector<8x256xf32> to vector<1x256xf32>
    %524 = vector.broadcast %522 : vector<4x1xf32> to vector<4x256xf32>
    %525 = vector.broadcast %523 : vector<1x256xf32> to vector<4x256xf32>
    %526 = arith.mulf %524, %525 : vector<4x256xf32>
    %527 = arith.addf %521, %526 : vector<4x256xf32>
    %c0_162 = arith.constant 0 : index
    %c3_163 = arith.constant 3 : index
    %528 = vector.load %arg5[%c0_162, %c3_163] : memref<4x36xf32, #tpu.memory_space<vmem>>, vector<4x1xf32>
    %529 = vector.extract_strided_slice %478 {offsets = [3, 0], sizes = [1, 256], strides = [1, 1]} : vector<8x256xf32> to vector<1x256xf32>
    %530 = vector.broadcast %528 : vector<4x1xf32> to vector<4x256xf32>
    %531 = vector.broadcast %529 : vector<1x256xf32> to vector<4x256xf32>
    %532 = arith.mulf %530, %531 : vector<4x256xf32>
    %533 = arith.addf %527, %532 : vector<4x256xf32>
    %c0_164 = arith.constant 0 : index
    %c4_165 = arith.constant 4 : index
    %534 = vector.load %arg5[%c0_164, %c4_165] : memref<4x36xf32, #tpu.memory_space<vmem>>, vector<4x1xf32>
    %535 = vector.extract_strided_slice %482 {offsets = [0, 0], sizes = [1, 256], strides = [1, 1]} : vector<8x256xf32> to vector<1x256xf32>
    %536 = vector.broadcast %534 : vector<4x1xf32> to vector<4x256xf32>
    %537 = vector.broadcast %535 : vector<1x256xf32> to vector<4x256xf32>
    %538 = arith.mulf %536, %537 : vector<4x256xf32>
    %539 = arith.addf %533, %538 : vector<4x256xf32>
    %c0_166 = arith.constant 0 : index
    %c5_167 = arith.constant 5 : index
    %540 = vector.load %arg5[%c0_166, %c5_167] : memref<4x36xf32, #tpu.memory_space<vmem>>, vector<4x1xf32>
    %541 = vector.extract_strided_slice %482 {offsets = [1, 0], sizes = [1, 256], strides = [1, 1]} : vector<8x256xf32> to vector<1x256xf32>
    %542 = vector.broadcast %540 : vector<4x1xf32> to vector<4x256xf32>
    %543 = vector.broadcast %541 : vector<1x256xf32> to vector<4x256xf32>
    %544 = arith.mulf %542, %543 : vector<4x256xf32>
    %545 = arith.addf %539, %544 : vector<4x256xf32>
    %c0_168 = arith.constant 0 : index
    %c6_169 = arith.constant 6 : index
    %546 = vector.load %arg5[%c0_168, %c6_169] : memref<4x36xf32, #tpu.memory_space<vmem>>, vector<4x1xf32>
    %547 = vector.extract_strided_slice %482 {offsets = [2, 0], sizes = [1, 256], strides = [1, 1]} : vector<8x256xf32> to vector<1x256xf32>
    %548 = vector.broadcast %546 : vector<4x1xf32> to vector<4x256xf32>
    %549 = vector.broadcast %547 : vector<1x256xf32> to vector<4x256xf32>
    %550 = arith.mulf %548, %549 : vector<4x256xf32>
    %551 = arith.addf %545, %550 : vector<4x256xf32>
    %c0_170 = arith.constant 0 : index
    %c7_171 = arith.constant 7 : index
    %552 = vector.load %arg5[%c0_170, %c7_171] : memref<4x36xf32, #tpu.memory_space<vmem>>, vector<4x1xf32>
    %553 = vector.extract_strided_slice %482 {offsets = [3, 0], sizes = [1, 256], strides = [1, 1]} : vector<8x256xf32> to vector<1x256xf32>
    %554 = vector.broadcast %552 : vector<4x1xf32> to vector<4x256xf32>
    %555 = vector.broadcast %553 : vector<1x256xf32> to vector<4x256xf32>
    %556 = arith.mulf %554, %555 : vector<4x256xf32>
    %557 = arith.addf %551, %556 : vector<4x256xf32>
    %c0_172 = arith.constant 0 : index
    %c8_173 = arith.constant 8 : index
    %558 = vector.load %arg5[%c0_172, %c8_173] : memref<4x36xf32, #tpu.memory_space<vmem>>, vector<4x1xf32>
    %559 = vector.extract_strided_slice %486 {offsets = [0, 0], sizes = [1, 256], strides = [1, 1]} : vector<8x256xf32> to vector<1x256xf32>
    %560 = vector.broadcast %558 : vector<4x1xf32> to vector<4x256xf32>
    %561 = vector.broadcast %559 : vector<1x256xf32> to vector<4x256xf32>
    %562 = arith.mulf %560, %561 : vector<4x256xf32>
    %563 = arith.addf %557, %562 : vector<4x256xf32>
    %c0_174 = arith.constant 0 : index
    %c9_175 = arith.constant 9 : index
    %564 = vector.load %arg5[%c0_174, %c9_175] : memref<4x36xf32, #tpu.memory_space<vmem>>, vector<4x1xf32>
    %565 = vector.extract_strided_slice %486 {offsets = [1, 0], sizes = [1, 256], strides = [1, 1]} : vector<8x256xf32> to vector<1x256xf32>
    %566 = vector.broadcast %564 : vector<4x1xf32> to vector<4x256xf32>
    %567 = vector.broadcast %565 : vector<1x256xf32> to vector<4x256xf32>
    %568 = arith.mulf %566, %567 : vector<4x256xf32>
    %569 = arith.addf %563, %568 : vector<4x256xf32>
    %c0_176 = arith.constant 0 : index
    %c10_177 = arith.constant 10 : index
    %570 = vector.load %arg5[%c0_176, %c10_177] : memref<4x36xf32, #tpu.memory_space<vmem>>, vector<4x1xf32>
    %571 = vector.extract_strided_slice %486 {offsets = [2, 0], sizes = [1, 256], strides = [1, 1]} : vector<8x256xf32> to vector<1x256xf32>
    %572 = vector.broadcast %570 : vector<4x1xf32> to vector<4x256xf32>
    %573 = vector.broadcast %571 : vector<1x256xf32> to vector<4x256xf32>
    %574 = arith.mulf %572, %573 : vector<4x256xf32>
    %575 = arith.addf %569, %574 : vector<4x256xf32>
    %c0_178 = arith.constant 0 : index
    %c11_179 = arith.constant 11 : index
    %576 = vector.load %arg5[%c0_178, %c11_179] : memref<4x36xf32, #tpu.memory_space<vmem>>, vector<4x1xf32>
    %577 = vector.extract_strided_slice %486 {offsets = [3, 0], sizes = [1, 256], strides = [1, 1]} : vector<8x256xf32> to vector<1x256xf32>
    %578 = vector.broadcast %576 : vector<4x1xf32> to vector<4x256xf32>
    %579 = vector.broadcast %577 : vector<1x256xf32> to vector<4x256xf32>
    %580 = arith.mulf %578, %579 : vector<4x256xf32>
    %581 = arith.addf %575, %580 : vector<4x256xf32>
    %c0_180 = arith.constant 0 : index
    %c12_181 = arith.constant 12 : index
    %582 = vector.load %arg5[%c0_180, %c12_181] : memref<4x36xf32, #tpu.memory_space<vmem>>, vector<4x1xf32>
    %583 = vector.extract_strided_slice %490 {offsets = [0, 0], sizes = [1, 256], strides = [1, 1]} : vector<8x256xf32> to vector<1x256xf32>
    %584 = vector.broadcast %582 : vector<4x1xf32> to vector<4x256xf32>
    %585 = vector.broadcast %583 : vector<1x256xf32> to vector<4x256xf32>
    %586 = arith.mulf %584, %585 : vector<4x256xf32>
    %587 = arith.addf %581, %586 : vector<4x256xf32>
    %c0_182 = arith.constant 0 : index
    %c13_183 = arith.constant 13 : index
    %588 = vector.load %arg5[%c0_182, %c13_183] : memref<4x36xf32, #tpu.memory_space<vmem>>, vector<4x1xf32>
    %589 = vector.extract_strided_slice %490 {offsets = [1, 0], sizes = [1, 256], strides = [1, 1]} : vector<8x256xf32> to vector<1x256xf32>
    %590 = vector.broadcast %588 : vector<4x1xf32> to vector<4x256xf32>
    %591 = vector.broadcast %589 : vector<1x256xf32> to vector<4x256xf32>
    %592 = arith.mulf %590, %591 : vector<4x256xf32>
    %593 = arith.addf %587, %592 : vector<4x256xf32>
    %c0_184 = arith.constant 0 : index
    %c14_185 = arith.constant 14 : index
    %594 = vector.load %arg5[%c0_184, %c14_185] : memref<4x36xf32, #tpu.memory_space<vmem>>, vector<4x1xf32>
    %595 = vector.extract_strided_slice %490 {offsets = [2, 0], sizes = [1, 256], strides = [1, 1]} : vector<8x256xf32> to vector<1x256xf32>
    %596 = vector.broadcast %594 : vector<4x1xf32> to vector<4x256xf32>
    %597 = vector.broadcast %595 : vector<1x256xf32> to vector<4x256xf32>
    %598 = arith.mulf %596, %597 : vector<4x256xf32>
    %599 = arith.addf %593, %598 : vector<4x256xf32>
    %c0_186 = arith.constant 0 : index
    %c15_187 = arith.constant 15 : index
    %600 = vector.load %arg5[%c0_186, %c15_187] : memref<4x36xf32, #tpu.memory_space<vmem>>, vector<4x1xf32>
    %601 = vector.extract_strided_slice %490 {offsets = [3, 0], sizes = [1, 256], strides = [1, 1]} : vector<8x256xf32> to vector<1x256xf32>
    %602 = vector.broadcast %600 : vector<4x1xf32> to vector<4x256xf32>
    %603 = vector.broadcast %601 : vector<1x256xf32> to vector<4x256xf32>
    %604 = arith.mulf %602, %603 : vector<4x256xf32>
    %605 = arith.addf %599, %604 : vector<4x256xf32>
    %c0_188 = arith.constant 0 : index
    %c16_189 = arith.constant 16 : index
    %606 = vector.load %arg5[%c0_188, %c16_189] : memref<4x36xf32, #tpu.memory_space<vmem>>, vector<4x1xf32>
    %607 = vector.extract_strided_slice %474 {offsets = [0, 0], sizes = [1, 256], strides = [1, 1]} : vector<8x256xf32> to vector<1x256xf32>
    %608 = vector.broadcast %606 : vector<4x1xf32> to vector<4x256xf32>
    %609 = vector.broadcast %607 : vector<1x256xf32> to vector<4x256xf32>
    %610 = arith.mulf %608, %609 : vector<4x256xf32>
    %611 = arith.addf %605, %610 : vector<4x256xf32>
    %c0_190 = arith.constant 0 : index
    %c17_191 = arith.constant 17 : index
    %612 = vector.load %arg5[%c0_190, %c17_191] : memref<4x36xf32, #tpu.memory_space<vmem>>, vector<4x1xf32>
    %613 = vector.extract_strided_slice %474 {offsets = [1, 0], sizes = [1, 256], strides = [1, 1]} : vector<8x256xf32> to vector<1x256xf32>
    %614 = vector.broadcast %612 : vector<4x1xf32> to vector<4x256xf32>
    %615 = vector.broadcast %613 : vector<1x256xf32> to vector<4x256xf32>
    %616 = arith.mulf %614, %615 : vector<4x256xf32>
    %617 = arith.addf %611, %616 : vector<4x256xf32>
    %c0_192 = arith.constant 0 : index
    %c18_193 = arith.constant 18 : index
    %618 = vector.load %arg5[%c0_192, %c18_193] : memref<4x36xf32, #tpu.memory_space<vmem>>, vector<4x1xf32>
    %619 = vector.extract_strided_slice %474 {offsets = [2, 0], sizes = [1, 256], strides = [1, 1]} : vector<8x256xf32> to vector<1x256xf32>
    %620 = vector.broadcast %618 : vector<4x1xf32> to vector<4x256xf32>
    %621 = vector.broadcast %619 : vector<1x256xf32> to vector<4x256xf32>
    %622 = arith.mulf %620, %621 : vector<4x256xf32>
    %623 = arith.addf %617, %622 : vector<4x256xf32>
    %c0_194 = arith.constant 0 : index
    %c19_195 = arith.constant 19 : index
    %624 = vector.load %arg5[%c0_194, %c19_195] : memref<4x36xf32, #tpu.memory_space<vmem>>, vector<4x1xf32>
    %625 = vector.extract_strided_slice %474 {offsets = [3, 0], sizes = [1, 256], strides = [1, 1]} : vector<8x256xf32> to vector<1x256xf32>
    %626 = vector.broadcast %624 : vector<4x1xf32> to vector<4x256xf32>
    %627 = vector.broadcast %625 : vector<1x256xf32> to vector<4x256xf32>
    %628 = arith.mulf %626, %627 : vector<4x256xf32>
    %629 = arith.addf %623, %628 : vector<4x256xf32>
    %c0_196 = arith.constant 0 : index
    %c20_197 = arith.constant 20 : index
    %630 = vector.load %arg5[%c0_196, %c20_197] : memref<4x36xf32, #tpu.memory_space<vmem>>, vector<4x1xf32>
    %631 = vector.extract_strided_slice %494 {offsets = [0, 0], sizes = [1, 256], strides = [1, 1]} : vector<8x256xf32> to vector<1x256xf32>
    %632 = vector.broadcast %630 : vector<4x1xf32> to vector<4x256xf32>
    %633 = vector.broadcast %631 : vector<1x256xf32> to vector<4x256xf32>
    %634 = arith.mulf %632, %633 : vector<4x256xf32>
    %635 = arith.addf %629, %634 : vector<4x256xf32>
    %c0_198 = arith.constant 0 : index
    %c21_199 = arith.constant 21 : index
    %636 = vector.load %arg5[%c0_198, %c21_199] : memref<4x36xf32, #tpu.memory_space<vmem>>, vector<4x1xf32>
    %637 = vector.extract_strided_slice %494 {offsets = [1, 0], sizes = [1, 256], strides = [1, 1]} : vector<8x256xf32> to vector<1x256xf32>
    %638 = vector.broadcast %636 : vector<4x1xf32> to vector<4x256xf32>
    %639 = vector.broadcast %637 : vector<1x256xf32> to vector<4x256xf32>
    %640 = arith.mulf %638, %639 : vector<4x256xf32>
    %641 = arith.addf %635, %640 : vector<4x256xf32>
    %c0_200 = arith.constant 0 : index
    %c22_201 = arith.constant 22 : index
    %642 = vector.load %arg5[%c0_200, %c22_201] : memref<4x36xf32, #tpu.memory_space<vmem>>, vector<4x1xf32>
    %643 = vector.extract_strided_slice %494 {offsets = [2, 0], sizes = [1, 256], strides = [1, 1]} : vector<8x256xf32> to vector<1x256xf32>
    %644 = vector.broadcast %642 : vector<4x1xf32> to vector<4x256xf32>
    %645 = vector.broadcast %643 : vector<1x256xf32> to vector<4x256xf32>
    %646 = arith.mulf %644, %645 : vector<4x256xf32>
    %647 = arith.addf %641, %646 : vector<4x256xf32>
    %c0_202 = arith.constant 0 : index
    %c23_203 = arith.constant 23 : index
    %648 = vector.load %arg5[%c0_202, %c23_203] : memref<4x36xf32, #tpu.memory_space<vmem>>, vector<4x1xf32>
    %649 = vector.extract_strided_slice %494 {offsets = [3, 0], sizes = [1, 256], strides = [1, 1]} : vector<8x256xf32> to vector<1x256xf32>
    %650 = vector.broadcast %648 : vector<4x1xf32> to vector<4x256xf32>
    %651 = vector.broadcast %649 : vector<1x256xf32> to vector<4x256xf32>
    %652 = arith.mulf %650, %651 : vector<4x256xf32>
    %653 = arith.addf %647, %652 : vector<4x256xf32>
    %c0_204 = arith.constant 0 : index
    %c24_205 = arith.constant 24 : index
    %654 = vector.load %arg5[%c0_204, %c24_205] : memref<4x36xf32, #tpu.memory_space<vmem>>, vector<4x1xf32>
    %655 = vector.extract_strided_slice %498 {offsets = [0, 0], sizes = [1, 256], strides = [1, 1]} : vector<8x256xf32> to vector<1x256xf32>
    %656 = vector.broadcast %654 : vector<4x1xf32> to vector<4x256xf32>
    %657 = vector.broadcast %655 : vector<1x256xf32> to vector<4x256xf32>
    %658 = arith.mulf %656, %657 : vector<4x256xf32>
    %659 = arith.addf %653, %658 : vector<4x256xf32>
    %c0_206 = arith.constant 0 : index
    %c25_207 = arith.constant 25 : index
    %660 = vector.load %arg5[%c0_206, %c25_207] : memref<4x36xf32, #tpu.memory_space<vmem>>, vector<4x1xf32>
    %661 = vector.extract_strided_slice %498 {offsets = [1, 0], sizes = [1, 256], strides = [1, 1]} : vector<8x256xf32> to vector<1x256xf32>
    %662 = vector.broadcast %660 : vector<4x1xf32> to vector<4x256xf32>
    %663 = vector.broadcast %661 : vector<1x256xf32> to vector<4x256xf32>
    %664 = arith.mulf %662, %663 : vector<4x256xf32>
    %665 = arith.addf %659, %664 : vector<4x256xf32>
    %c0_208 = arith.constant 0 : index
    %c26_209 = arith.constant 26 : index
    %666 = vector.load %arg5[%c0_208, %c26_209] : memref<4x36xf32, #tpu.memory_space<vmem>>, vector<4x1xf32>
    %667 = vector.extract_strided_slice %498 {offsets = [2, 0], sizes = [1, 256], strides = [1, 1]} : vector<8x256xf32> to vector<1x256xf32>
    %668 = vector.broadcast %666 : vector<4x1xf32> to vector<4x256xf32>
    %669 = vector.broadcast %667 : vector<1x256xf32> to vector<4x256xf32>
    %670 = arith.mulf %668, %669 : vector<4x256xf32>
    %671 = arith.addf %665, %670 : vector<4x256xf32>
    %c0_210 = arith.constant 0 : index
    %c27_211 = arith.constant 27 : index
    %672 = vector.load %arg5[%c0_210, %c27_211] : memref<4x36xf32, #tpu.memory_space<vmem>>, vector<4x1xf32>
    %673 = vector.extract_strided_slice %498 {offsets = [3, 0], sizes = [1, 256], strides = [1, 1]} : vector<8x256xf32> to vector<1x256xf32>
    %674 = vector.broadcast %672 : vector<4x1xf32> to vector<4x256xf32>
    %675 = vector.broadcast %673 : vector<1x256xf32> to vector<4x256xf32>
    %676 = arith.mulf %674, %675 : vector<4x256xf32>
    %677 = arith.addf %671, %676 : vector<4x256xf32>
    %c0_212 = arith.constant 0 : index
    %c28_213 = arith.constant 28 : index
    %678 = vector.load %arg5[%c0_212, %c28_213] : memref<4x36xf32, #tpu.memory_space<vmem>>, vector<4x1xf32>
    %679 = vector.extract_strided_slice %502 {offsets = [0, 0], sizes = [1, 256], strides = [1, 1]} : vector<8x256xf32> to vector<1x256xf32>
    %680 = vector.broadcast %678 : vector<4x1xf32> to vector<4x256xf32>
    %681 = vector.broadcast %679 : vector<1x256xf32> to vector<4x256xf32>
    %682 = arith.mulf %680, %681 : vector<4x256xf32>
    %683 = arith.addf %677, %682 : vector<4x256xf32>
    %c0_214 = arith.constant 0 : index
    %c29_215 = arith.constant 29 : index
    %684 = vector.load %arg5[%c0_214, %c29_215] : memref<4x36xf32, #tpu.memory_space<vmem>>, vector<4x1xf32>
    %685 = vector.extract_strided_slice %502 {offsets = [1, 0], sizes = [1, 256], strides = [1, 1]} : vector<8x256xf32> to vector<1x256xf32>
    %686 = vector.broadcast %684 : vector<4x1xf32> to vector<4x256xf32>
    %687 = vector.broadcast %685 : vector<1x256xf32> to vector<4x256xf32>
    %688 = arith.mulf %686, %687 : vector<4x256xf32>
    %689 = arith.addf %683, %688 : vector<4x256xf32>
    %c0_216 = arith.constant 0 : index
    %c30_217 = arith.constant 30 : index
    %690 = vector.load %arg5[%c0_216, %c30_217] : memref<4x36xf32, #tpu.memory_space<vmem>>, vector<4x1xf32>
    %691 = vector.extract_strided_slice %502 {offsets = [2, 0], sizes = [1, 256], strides = [1, 1]} : vector<8x256xf32> to vector<1x256xf32>
    %692 = vector.broadcast %690 : vector<4x1xf32> to vector<4x256xf32>
    %693 = vector.broadcast %691 : vector<1x256xf32> to vector<4x256xf32>
    %694 = arith.mulf %692, %693 : vector<4x256xf32>
    %695 = arith.addf %689, %694 : vector<4x256xf32>
    %c0_218 = arith.constant 0 : index
    %c31_219 = arith.constant 31 : index
    %696 = vector.load %arg5[%c0_218, %c31_219] : memref<4x36xf32, #tpu.memory_space<vmem>>, vector<4x1xf32>
    %697 = vector.extract_strided_slice %502 {offsets = [3, 0], sizes = [1, 256], strides = [1, 1]} : vector<8x256xf32> to vector<1x256xf32>
    %698 = vector.broadcast %696 : vector<4x1xf32> to vector<4x256xf32>
    %699 = vector.broadcast %697 : vector<1x256xf32> to vector<4x256xf32>
    %700 = arith.mulf %698, %699 : vector<4x256xf32>
    %701 = arith.addf %695, %700 : vector<4x256xf32>
    %c0_220 = arith.constant 0 : index
    %c32_221 = arith.constant 32 : index
    %702 = vector.load %arg5[%c0_220, %c32_221] : memref<4x36xf32, #tpu.memory_space<vmem>>, vector<4x1xf32>
    %703 = vector.extract_strided_slice %506 {offsets = [0, 0], sizes = [1, 256], strides = [1, 1]} : vector<8x256xf32> to vector<1x256xf32>
    %704 = vector.broadcast %702 : vector<4x1xf32> to vector<4x256xf32>
    %705 = vector.broadcast %703 : vector<1x256xf32> to vector<4x256xf32>
    %706 = arith.mulf %704, %705 : vector<4x256xf32>
    %707 = arith.addf %701, %706 : vector<4x256xf32>
    %c0_222 = arith.constant 0 : index
    %c33_223 = arith.constant 33 : index
    %708 = vector.load %arg5[%c0_222, %c33_223] : memref<4x36xf32, #tpu.memory_space<vmem>>, vector<4x1xf32>
    %709 = vector.extract_strided_slice %506 {offsets = [1, 0], sizes = [1, 256], strides = [1, 1]} : vector<8x256xf32> to vector<1x256xf32>
    %710 = vector.broadcast %708 : vector<4x1xf32> to vector<4x256xf32>
    %711 = vector.broadcast %709 : vector<1x256xf32> to vector<4x256xf32>
    %712 = arith.mulf %710, %711 : vector<4x256xf32>
    %713 = arith.addf %707, %712 : vector<4x256xf32>
    %c0_224 = arith.constant 0 : index
    %c34_225 = arith.constant 34 : index
    %714 = vector.load %arg5[%c0_224, %c34_225] : memref<4x36xf32, #tpu.memory_space<vmem>>, vector<4x1xf32>
    %715 = vector.extract_strided_slice %506 {offsets = [2, 0], sizes = [1, 256], strides = [1, 1]} : vector<8x256xf32> to vector<1x256xf32>
    %716 = vector.broadcast %714 : vector<4x1xf32> to vector<4x256xf32>
    %717 = vector.broadcast %715 : vector<1x256xf32> to vector<4x256xf32>
    %718 = arith.mulf %716, %717 : vector<4x256xf32>
    %719 = arith.addf %713, %718 : vector<4x256xf32>
    %c0_226 = arith.constant 0 : index
    %c35_227 = arith.constant 35 : index
    %720 = vector.load %arg5[%c0_226, %c35_227] : memref<4x36xf32, #tpu.memory_space<vmem>>, vector<4x1xf32>
    %721 = vector.extract_strided_slice %506 {offsets = [3, 0], sizes = [1, 256], strides = [1, 1]} : vector<8x256xf32> to vector<1x256xf32>
    %722 = vector.broadcast %720 : vector<4x1xf32> to vector<4x256xf32>
    %723 = vector.broadcast %721 : vector<1x256xf32> to vector<4x256xf32>
    %724 = arith.mulf %722, %723 : vector<4x256xf32>
    %725 = arith.addf %719, %724 : vector<4x256xf32>
    %c0_228 = arith.constant 0 : index
    %c0_229 = arith.constant 0 : index
    %726 = vector.load %arg6[%c0_228, %c0_229] : memref<4x1xf32, #tpu.memory_space<vmem>>, vector<4x1xf32>
    %727 = vector.shape_cast %726 : vector<4x1xf32> to vector<4x1xf32>
    %728 = vector.broadcast %727 : vector<4x1xf32> to vector<4x256xf32>
    %c0_230 = arith.constant 0 : index
    %c0_231 = arith.constant 0 : index
    %729 = vector.load %arg5[%c0_230, %c0_231] : memref<4x36xf32, #tpu.memory_space<vmem>>, vector<4x1xf32>
    %730 = vector.extract_strided_slice %478 {offsets = [4, 0], sizes = [1, 256], strides = [1, 1]} : vector<8x256xf32> to vector<1x256xf32>
    %731 = vector.broadcast %729 : vector<4x1xf32> to vector<4x256xf32>
    %732 = vector.broadcast %730 : vector<1x256xf32> to vector<4x256xf32>
    %733 = arith.mulf %731, %732 : vector<4x256xf32>
    %734 = arith.addf %728, %733 : vector<4x256xf32>
    %c0_232 = arith.constant 0 : index
    %c1_233 = arith.constant 1 : index
    %735 = vector.load %arg5[%c0_232, %c1_233] : memref<4x36xf32, #tpu.memory_space<vmem>>, vector<4x1xf32>
    %736 = vector.extract_strided_slice %478 {offsets = [5, 0], sizes = [1, 256], strides = [1, 1]} : vector<8x256xf32> to vector<1x256xf32>
    %737 = vector.broadcast %735 : vector<4x1xf32> to vector<4x256xf32>
    %738 = vector.broadcast %736 : vector<1x256xf32> to vector<4x256xf32>
    %739 = arith.mulf %737, %738 : vector<4x256xf32>
    %740 = arith.addf %734, %739 : vector<4x256xf32>
    %c0_234 = arith.constant 0 : index
    %c2_235 = arith.constant 2 : index
    %741 = vector.load %arg5[%c0_234, %c2_235] : memref<4x36xf32, #tpu.memory_space<vmem>>, vector<4x1xf32>
    %742 = vector.extract_strided_slice %478 {offsets = [6, 0], sizes = [1, 256], strides = [1, 1]} : vector<8x256xf32> to vector<1x256xf32>
    %743 = vector.broadcast %741 : vector<4x1xf32> to vector<4x256xf32>
    %744 = vector.broadcast %742 : vector<1x256xf32> to vector<4x256xf32>
    %745 = arith.mulf %743, %744 : vector<4x256xf32>
    %746 = arith.addf %740, %745 : vector<4x256xf32>
    %c0_236 = arith.constant 0 : index
    %c3_237 = arith.constant 3 : index
    %747 = vector.load %arg5[%c0_236, %c3_237] : memref<4x36xf32, #tpu.memory_space<vmem>>, vector<4x1xf32>
    %748 = vector.extract_strided_slice %478 {offsets = [7, 0], sizes = [1, 256], strides = [1, 1]} : vector<8x256xf32> to vector<1x256xf32>
    %749 = vector.broadcast %747 : vector<4x1xf32> to vector<4x256xf32>
    %750 = vector.broadcast %748 : vector<1x256xf32> to vector<4x256xf32>
    %751 = arith.mulf %749, %750 : vector<4x256xf32>
    %752 = arith.addf %746, %751 : vector<4x256xf32>
    %c0_238 = arith.constant 0 : index
    %c4_239 = arith.constant 4 : index
    %753 = vector.load %arg5[%c0_238, %c4_239] : memref<4x36xf32, #tpu.memory_space<vmem>>, vector<4x1xf32>
    %754 = vector.extract_strided_slice %482 {offsets = [4, 0], sizes = [1, 256], strides = [1, 1]} : vector<8x256xf32> to vector<1x256xf32>
    %755 = vector.broadcast %753 : vector<4x1xf32> to vector<4x256xf32>
    %756 = vector.broadcast %754 : vector<1x256xf32> to vector<4x256xf32>
    %757 = arith.mulf %755, %756 : vector<4x256xf32>
    %758 = arith.addf %752, %757 : vector<4x256xf32>
    %c0_240 = arith.constant 0 : index
    %c5_241 = arith.constant 5 : index
    %759 = vector.load %arg5[%c0_240, %c5_241] : memref<4x36xf32, #tpu.memory_space<vmem>>, vector<4x1xf32>
    %760 = vector.extract_strided_slice %482 {offsets = [5, 0], sizes = [1, 256], strides = [1, 1]} : vector<8x256xf32> to vector<1x256xf32>
    %761 = vector.broadcast %759 : vector<4x1xf32> to vector<4x256xf32>
    %762 = vector.broadcast %760 : vector<1x256xf32> to vector<4x256xf32>
    %763 = arith.mulf %761, %762 : vector<4x256xf32>
    %764 = arith.addf %758, %763 : vector<4x256xf32>
    %c0_242 = arith.constant 0 : index
    %c6_243 = arith.constant 6 : index
    %765 = vector.load %arg5[%c0_242, %c6_243] : memref<4x36xf32, #tpu.memory_space<vmem>>, vector<4x1xf32>
    %766 = vector.extract_strided_slice %482 {offsets = [6, 0], sizes = [1, 256], strides = [1, 1]} : vector<8x256xf32> to vector<1x256xf32>
    %767 = vector.broadcast %765 : vector<4x1xf32> to vector<4x256xf32>
    %768 = vector.broadcast %766 : vector<1x256xf32> to vector<4x256xf32>
    %769 = arith.mulf %767, %768 : vector<4x256xf32>
    %770 = arith.addf %764, %769 : vector<4x256xf32>
    %c0_244 = arith.constant 0 : index
    %c7_245 = arith.constant 7 : index
    %771 = vector.load %arg5[%c0_244, %c7_245] : memref<4x36xf32, #tpu.memory_space<vmem>>, vector<4x1xf32>
    %772 = vector.extract_strided_slice %482 {offsets = [7, 0], sizes = [1, 256], strides = [1, 1]} : vector<8x256xf32> to vector<1x256xf32>
    %773 = vector.broadcast %771 : vector<4x1xf32> to vector<4x256xf32>
    %774 = vector.broadcast %772 : vector<1x256xf32> to vector<4x256xf32>
    %775 = arith.mulf %773, %774 : vector<4x256xf32>
    %776 = arith.addf %770, %775 : vector<4x256xf32>
    %c0_246 = arith.constant 0 : index
    %c8_247 = arith.constant 8 : index
    %777 = vector.load %arg5[%c0_246, %c8_247] : memref<4x36xf32, #tpu.memory_space<vmem>>, vector<4x1xf32>
    %778 = vector.extract_strided_slice %486 {offsets = [4, 0], sizes = [1, 256], strides = [1, 1]} : vector<8x256xf32> to vector<1x256xf32>
    %779 = vector.broadcast %777 : vector<4x1xf32> to vector<4x256xf32>
    %780 = vector.broadcast %778 : vector<1x256xf32> to vector<4x256xf32>
    %781 = arith.mulf %779, %780 : vector<4x256xf32>
    %782 = arith.addf %776, %781 : vector<4x256xf32>
    %c0_248 = arith.constant 0 : index
    %c9_249 = arith.constant 9 : index
    %783 = vector.load %arg5[%c0_248, %c9_249] : memref<4x36xf32, #tpu.memory_space<vmem>>, vector<4x1xf32>
    %784 = vector.extract_strided_slice %486 {offsets = [5, 0], sizes = [1, 256], strides = [1, 1]} : vector<8x256xf32> to vector<1x256xf32>
    %785 = vector.broadcast %783 : vector<4x1xf32> to vector<4x256xf32>
    %786 = vector.broadcast %784 : vector<1x256xf32> to vector<4x256xf32>
    %787 = arith.mulf %785, %786 : vector<4x256xf32>
    %788 = arith.addf %782, %787 : vector<4x256xf32>
    %c0_250 = arith.constant 0 : index
    %c10_251 = arith.constant 10 : index
    %789 = vector.load %arg5[%c0_250, %c10_251] : memref<4x36xf32, #tpu.memory_space<vmem>>, vector<4x1xf32>
    %790 = vector.extract_strided_slice %486 {offsets = [6, 0], sizes = [1, 256], strides = [1, 1]} : vector<8x256xf32> to vector<1x256xf32>
    %791 = vector.broadcast %789 : vector<4x1xf32> to vector<4x256xf32>
    %792 = vector.broadcast %790 : vector<1x256xf32> to vector<4x256xf32>
    %793 = arith.mulf %791, %792 : vector<4x256xf32>
    %794 = arith.addf %788, %793 : vector<4x256xf32>
    %c0_252 = arith.constant 0 : index
    %c11_253 = arith.constant 11 : index
    %795 = vector.load %arg5[%c0_252, %c11_253] : memref<4x36xf32, #tpu.memory_space<vmem>>, vector<4x1xf32>
    %796 = vector.extract_strided_slice %486 {offsets = [7, 0], sizes = [1, 256], strides = [1, 1]} : vector<8x256xf32> to vector<1x256xf32>
    %797 = vector.broadcast %795 : vector<4x1xf32> to vector<4x256xf32>
    %798 = vector.broadcast %796 : vector<1x256xf32> to vector<4x256xf32>
    %799 = arith.mulf %797, %798 : vector<4x256xf32>
    %800 = arith.addf %794, %799 : vector<4x256xf32>
    %c0_254 = arith.constant 0 : index
    %c12_255 = arith.constant 12 : index
    %801 = vector.load %arg5[%c0_254, %c12_255] : memref<4x36xf32, #tpu.memory_space<vmem>>, vector<4x1xf32>
    %802 = vector.extract_strided_slice %490 {offsets = [4, 0], sizes = [1, 256], strides = [1, 1]} : vector<8x256xf32> to vector<1x256xf32>
    %803 = vector.broadcast %801 : vector<4x1xf32> to vector<4x256xf32>
    %804 = vector.broadcast %802 : vector<1x256xf32> to vector<4x256xf32>
    %805 = arith.mulf %803, %804 : vector<4x256xf32>
    %806 = arith.addf %800, %805 : vector<4x256xf32>
    %c0_256 = arith.constant 0 : index
    %c13_257 = arith.constant 13 : index
    %807 = vector.load %arg5[%c0_256, %c13_257] : memref<4x36xf32, #tpu.memory_space<vmem>>, vector<4x1xf32>
    %808 = vector.extract_strided_slice %490 {offsets = [5, 0], sizes = [1, 256], strides = [1, 1]} : vector<8x256xf32> to vector<1x256xf32>
    %809 = vector.broadcast %807 : vector<4x1xf32> to vector<4x256xf32>
    %810 = vector.broadcast %808 : vector<1x256xf32> to vector<4x256xf32>
    %811 = arith.mulf %809, %810 : vector<4x256xf32>
    %812 = arith.addf %806, %811 : vector<4x256xf32>
    %c0_258 = arith.constant 0 : index
    %c14_259 = arith.constant 14 : index
    %813 = vector.load %arg5[%c0_258, %c14_259] : memref<4x36xf32, #tpu.memory_space<vmem>>, vector<4x1xf32>
    %814 = vector.extract_strided_slice %490 {offsets = [6, 0], sizes = [1, 256], strides = [1, 1]} : vector<8x256xf32> to vector<1x256xf32>
    %815 = vector.broadcast %813 : vector<4x1xf32> to vector<4x256xf32>
    %816 = vector.broadcast %814 : vector<1x256xf32> to vector<4x256xf32>
    %817 = arith.mulf %815, %816 : vector<4x256xf32>
    %818 = arith.addf %812, %817 : vector<4x256xf32>
    %c0_260 = arith.constant 0 : index
    %c15_261 = arith.constant 15 : index
    %819 = vector.load %arg5[%c0_260, %c15_261] : memref<4x36xf32, #tpu.memory_space<vmem>>, vector<4x1xf32>
    %820 = vector.extract_strided_slice %490 {offsets = [7, 0], sizes = [1, 256], strides = [1, 1]} : vector<8x256xf32> to vector<1x256xf32>
    %821 = vector.broadcast %819 : vector<4x1xf32> to vector<4x256xf32>
    %822 = vector.broadcast %820 : vector<1x256xf32> to vector<4x256xf32>
    %823 = arith.mulf %821, %822 : vector<4x256xf32>
    %824 = arith.addf %818, %823 : vector<4x256xf32>
    %c0_262 = arith.constant 0 : index
    %c16_263 = arith.constant 16 : index
    %825 = vector.load %arg5[%c0_262, %c16_263] : memref<4x36xf32, #tpu.memory_space<vmem>>, vector<4x1xf32>
    %826 = vector.extract_strided_slice %474 {offsets = [4, 0], sizes = [1, 256], strides = [1, 1]} : vector<8x256xf32> to vector<1x256xf32>
    %827 = vector.broadcast %825 : vector<4x1xf32> to vector<4x256xf32>
    %828 = vector.broadcast %826 : vector<1x256xf32> to vector<4x256xf32>
    %829 = arith.mulf %827, %828 : vector<4x256xf32>
    %830 = arith.addf %824, %829 : vector<4x256xf32>
    %c0_264 = arith.constant 0 : index
    %c17_265 = arith.constant 17 : index
    %831 = vector.load %arg5[%c0_264, %c17_265] : memref<4x36xf32, #tpu.memory_space<vmem>>, vector<4x1xf32>
    %832 = vector.extract_strided_slice %474 {offsets = [5, 0], sizes = [1, 256], strides = [1, 1]} : vector<8x256xf32> to vector<1x256xf32>
    %833 = vector.broadcast %831 : vector<4x1xf32> to vector<4x256xf32>
    %834 = vector.broadcast %832 : vector<1x256xf32> to vector<4x256xf32>
    %835 = arith.mulf %833, %834 : vector<4x256xf32>
    %836 = arith.addf %830, %835 : vector<4x256xf32>
    %c0_266 = arith.constant 0 : index
    %c18_267 = arith.constant 18 : index
    %837 = vector.load %arg5[%c0_266, %c18_267] : memref<4x36xf32, #tpu.memory_space<vmem>>, vector<4x1xf32>
    %838 = vector.extract_strided_slice %474 {offsets = [6, 0], sizes = [1, 256], strides = [1, 1]} : vector<8x256xf32> to vector<1x256xf32>
    %839 = vector.broadcast %837 : vector<4x1xf32> to vector<4x256xf32>
    %840 = vector.broadcast %838 : vector<1x256xf32> to vector<4x256xf32>
    %841 = arith.mulf %839, %840 : vector<4x256xf32>
    %842 = arith.addf %836, %841 : vector<4x256xf32>
    %c0_268 = arith.constant 0 : index
    %c19_269 = arith.constant 19 : index
    %843 = vector.load %arg5[%c0_268, %c19_269] : memref<4x36xf32, #tpu.memory_space<vmem>>, vector<4x1xf32>
    %844 = vector.extract_strided_slice %474 {offsets = [7, 0], sizes = [1, 256], strides = [1, 1]} : vector<8x256xf32> to vector<1x256xf32>
    %845 = vector.broadcast %843 : vector<4x1xf32> to vector<4x256xf32>
    %846 = vector.broadcast %844 : vector<1x256xf32> to vector<4x256xf32>
    %847 = arith.mulf %845, %846 : vector<4x256xf32>
    %848 = arith.addf %842, %847 : vector<4x256xf32>
    %c0_270 = arith.constant 0 : index
    %c20_271 = arith.constant 20 : index
    %849 = vector.load %arg5[%c0_270, %c20_271] : memref<4x36xf32, #tpu.memory_space<vmem>>, vector<4x1xf32>
    %850 = vector.extract_strided_slice %494 {offsets = [4, 0], sizes = [1, 256], strides = [1, 1]} : vector<8x256xf32> to vector<1x256xf32>
    %851 = vector.broadcast %849 : vector<4x1xf32> to vector<4x256xf32>
    %852 = vector.broadcast %850 : vector<1x256xf32> to vector<4x256xf32>
    %853 = arith.mulf %851, %852 : vector<4x256xf32>
    %854 = arith.addf %848, %853 : vector<4x256xf32>
    %c0_272 = arith.constant 0 : index
    %c21_273 = arith.constant 21 : index
    %855 = vector.load %arg5[%c0_272, %c21_273] : memref<4x36xf32, #tpu.memory_space<vmem>>, vector<4x1xf32>
    %856 = vector.extract_strided_slice %494 {offsets = [5, 0], sizes = [1, 256], strides = [1, 1]} : vector<8x256xf32> to vector<1x256xf32>
    %857 = vector.broadcast %855 : vector<4x1xf32> to vector<4x256xf32>
    %858 = vector.broadcast %856 : vector<1x256xf32> to vector<4x256xf32>
    %859 = arith.mulf %857, %858 : vector<4x256xf32>
    %860 = arith.addf %854, %859 : vector<4x256xf32>
    %c0_274 = arith.constant 0 : index
    %c22_275 = arith.constant 22 : index
    %861 = vector.load %arg5[%c0_274, %c22_275] : memref<4x36xf32, #tpu.memory_space<vmem>>, vector<4x1xf32>
    %862 = vector.extract_strided_slice %494 {offsets = [6, 0], sizes = [1, 256], strides = [1, 1]} : vector<8x256xf32> to vector<1x256xf32>
    %863 = vector.broadcast %861 : vector<4x1xf32> to vector<4x256xf32>
    %864 = vector.broadcast %862 : vector<1x256xf32> to vector<4x256xf32>
    %865 = arith.mulf %863, %864 : vector<4x256xf32>
    %866 = arith.addf %860, %865 : vector<4x256xf32>
    %c0_276 = arith.constant 0 : index
    %c23_277 = arith.constant 23 : index
    %867 = vector.load %arg5[%c0_276, %c23_277] : memref<4x36xf32, #tpu.memory_space<vmem>>, vector<4x1xf32>
    %868 = vector.extract_strided_slice %494 {offsets = [7, 0], sizes = [1, 256], strides = [1, 1]} : vector<8x256xf32> to vector<1x256xf32>
    %869 = vector.broadcast %867 : vector<4x1xf32> to vector<4x256xf32>
    %870 = vector.broadcast %868 : vector<1x256xf32> to vector<4x256xf32>
    %871 = arith.mulf %869, %870 : vector<4x256xf32>
    %872 = arith.addf %866, %871 : vector<4x256xf32>
    %c0_278 = arith.constant 0 : index
    %c24_279 = arith.constant 24 : index
    %873 = vector.load %arg5[%c0_278, %c24_279] : memref<4x36xf32, #tpu.memory_space<vmem>>, vector<4x1xf32>
    %874 = vector.extract_strided_slice %498 {offsets = [4, 0], sizes = [1, 256], strides = [1, 1]} : vector<8x256xf32> to vector<1x256xf32>
    %875 = vector.broadcast %873 : vector<4x1xf32> to vector<4x256xf32>
    %876 = vector.broadcast %874 : vector<1x256xf32> to vector<4x256xf32>
    %877 = arith.mulf %875, %876 : vector<4x256xf32>
    %878 = arith.addf %872, %877 : vector<4x256xf32>
    %c0_280 = arith.constant 0 : index
    %c25_281 = arith.constant 25 : index
    %879 = vector.load %arg5[%c0_280, %c25_281] : memref<4x36xf32, #tpu.memory_space<vmem>>, vector<4x1xf32>
    %880 = vector.extract_strided_slice %498 {offsets = [5, 0], sizes = [1, 256], strides = [1, 1]} : vector<8x256xf32> to vector<1x256xf32>
    %881 = vector.broadcast %879 : vector<4x1xf32> to vector<4x256xf32>
    %882 = vector.broadcast %880 : vector<1x256xf32> to vector<4x256xf32>
    %883 = arith.mulf %881, %882 : vector<4x256xf32>
    %884 = arith.addf %878, %883 : vector<4x256xf32>
    %c0_282 = arith.constant 0 : index
    %c26_283 = arith.constant 26 : index
    %885 = vector.load %arg5[%c0_282, %c26_283] : memref<4x36xf32, #tpu.memory_space<vmem>>, vector<4x1xf32>
    %886 = vector.extract_strided_slice %498 {offsets = [6, 0], sizes = [1, 256], strides = [1, 1]} : vector<8x256xf32> to vector<1x256xf32>
    %887 = vector.broadcast %885 : vector<4x1xf32> to vector<4x256xf32>
    %888 = vector.broadcast %886 : vector<1x256xf32> to vector<4x256xf32>
    %889 = arith.mulf %887, %888 : vector<4x256xf32>
    %890 = arith.addf %884, %889 : vector<4x256xf32>
    %c0_284 = arith.constant 0 : index
    %c27_285 = arith.constant 27 : index
    %891 = vector.load %arg5[%c0_284, %c27_285] : memref<4x36xf32, #tpu.memory_space<vmem>>, vector<4x1xf32>
    %892 = vector.extract_strided_slice %498 {offsets = [7, 0], sizes = [1, 256], strides = [1, 1]} : vector<8x256xf32> to vector<1x256xf32>
    %893 = vector.broadcast %891 : vector<4x1xf32> to vector<4x256xf32>
    %894 = vector.broadcast %892 : vector<1x256xf32> to vector<4x256xf32>
    %895 = arith.mulf %893, %894 : vector<4x256xf32>
    %896 = arith.addf %890, %895 : vector<4x256xf32>
    %c0_286 = arith.constant 0 : index
    %c28_287 = arith.constant 28 : index
    %897 = vector.load %arg5[%c0_286, %c28_287] : memref<4x36xf32, #tpu.memory_space<vmem>>, vector<4x1xf32>
    %898 = vector.extract_strided_slice %502 {offsets = [4, 0], sizes = [1, 256], strides = [1, 1]} : vector<8x256xf32> to vector<1x256xf32>
    %899 = vector.broadcast %897 : vector<4x1xf32> to vector<4x256xf32>
    %900 = vector.broadcast %898 : vector<1x256xf32> to vector<4x256xf32>
    %901 = arith.mulf %899, %900 : vector<4x256xf32>
    %902 = arith.addf %896, %901 : vector<4x256xf32>
    %c0_288 = arith.constant 0 : index
    %c29_289 = arith.constant 29 : index
    %903 = vector.load %arg5[%c0_288, %c29_289] : memref<4x36xf32, #tpu.memory_space<vmem>>, vector<4x1xf32>
    %904 = vector.extract_strided_slice %502 {offsets = [5, 0], sizes = [1, 256], strides = [1, 1]} : vector<8x256xf32> to vector<1x256xf32>
    %905 = vector.broadcast %903 : vector<4x1xf32> to vector<4x256xf32>
    %906 = vector.broadcast %904 : vector<1x256xf32> to vector<4x256xf32>
    %907 = arith.mulf %905, %906 : vector<4x256xf32>
    %908 = arith.addf %902, %907 : vector<4x256xf32>
    %c0_290 = arith.constant 0 : index
    %c30_291 = arith.constant 30 : index
    %909 = vector.load %arg5[%c0_290, %c30_291] : memref<4x36xf32, #tpu.memory_space<vmem>>, vector<4x1xf32>
    %910 = vector.extract_strided_slice %502 {offsets = [6, 0], sizes = [1, 256], strides = [1, 1]} : vector<8x256xf32> to vector<1x256xf32>
    %911 = vector.broadcast %909 : vector<4x1xf32> to vector<4x256xf32>
    %912 = vector.broadcast %910 : vector<1x256xf32> to vector<4x256xf32>
    %913 = arith.mulf %911, %912 : vector<4x256xf32>
    %914 = arith.addf %908, %913 : vector<4x256xf32>
    %c0_292 = arith.constant 0 : index
    %c31_293 = arith.constant 31 : index
    %915 = vector.load %arg5[%c0_292, %c31_293] : memref<4x36xf32, #tpu.memory_space<vmem>>, vector<4x1xf32>
    %916 = vector.extract_strided_slice %502 {offsets = [7, 0], sizes = [1, 256], strides = [1, 1]} : vector<8x256xf32> to vector<1x256xf32>
    %917 = vector.broadcast %915 : vector<4x1xf32> to vector<4x256xf32>
    %918 = vector.broadcast %916 : vector<1x256xf32> to vector<4x256xf32>
    %919 = arith.mulf %917, %918 : vector<4x256xf32>
    %920 = arith.addf %914, %919 : vector<4x256xf32>
    %c0_294 = arith.constant 0 : index
    %c32_295 = arith.constant 32 : index
    %921 = vector.load %arg5[%c0_294, %c32_295] : memref<4x36xf32, #tpu.memory_space<vmem>>, vector<4x1xf32>
    %922 = vector.extract_strided_slice %506 {offsets = [4, 0], sizes = [1, 256], strides = [1, 1]} : vector<8x256xf32> to vector<1x256xf32>
    %923 = vector.broadcast %921 : vector<4x1xf32> to vector<4x256xf32>
    %924 = vector.broadcast %922 : vector<1x256xf32> to vector<4x256xf32>
    %925 = arith.mulf %923, %924 : vector<4x256xf32>
    %926 = arith.addf %920, %925 : vector<4x256xf32>
    %c0_296 = arith.constant 0 : index
    %c33_297 = arith.constant 33 : index
    %927 = vector.load %arg5[%c0_296, %c33_297] : memref<4x36xf32, #tpu.memory_space<vmem>>, vector<4x1xf32>
    %928 = vector.extract_strided_slice %506 {offsets = [5, 0], sizes = [1, 256], strides = [1, 1]} : vector<8x256xf32> to vector<1x256xf32>
    %929 = vector.broadcast %927 : vector<4x1xf32> to vector<4x256xf32>
    %930 = vector.broadcast %928 : vector<1x256xf32> to vector<4x256xf32>
    %931 = arith.mulf %929, %930 : vector<4x256xf32>
    %932 = arith.addf %926, %931 : vector<4x256xf32>
    %c0_298 = arith.constant 0 : index
    %c34_299 = arith.constant 34 : index
    %933 = vector.load %arg5[%c0_298, %c34_299] : memref<4x36xf32, #tpu.memory_space<vmem>>, vector<4x1xf32>
    %934 = vector.extract_strided_slice %506 {offsets = [6, 0], sizes = [1, 256], strides = [1, 1]} : vector<8x256xf32> to vector<1x256xf32>
    %935 = vector.broadcast %933 : vector<4x1xf32> to vector<4x256xf32>
    %936 = vector.broadcast %934 : vector<1x256xf32> to vector<4x256xf32>
    %937 = arith.mulf %935, %936 : vector<4x256xf32>
    %938 = arith.addf %932, %937 : vector<4x256xf32>
    %c0_300 = arith.constant 0 : index
    %c35_301 = arith.constant 35 : index
    %939 = vector.load %arg5[%c0_300, %c35_301] : memref<4x36xf32, #tpu.memory_space<vmem>>, vector<4x1xf32>
    %940 = vector.extract_strided_slice %506 {offsets = [7, 0], sizes = [1, 256], strides = [1, 1]} : vector<8x256xf32> to vector<1x256xf32>
    %941 = vector.broadcast %939 : vector<4x1xf32> to vector<4x256xf32>
    %942 = vector.broadcast %940 : vector<1x256xf32> to vector<4x256xf32>
    %943 = arith.mulf %941, %942 : vector<4x256xf32>
    %944 = arith.addf %938, %943 : vector<4x256xf32>
    %945 = tpu.concatenate %725, %944 in 0 : vector<4x256xf32>, vector<4x256xf32> -> vector<8x256xf32>
    %cst_302 = arith.constant 0.000000e+00 : f32
    %946 = vector.broadcast %cst_302 : f32 to vector<8x256xf32>
    %947 = arith.maximumf %945, %946 : vector<8x256xf32>
    %c0_303 = arith.constant 0 : index
    %c0_304 = arith.constant 0 : index
    %948 = vector.load %arg7[%c0_303, %c0_304] : memref<8x256xf32, #tpu.memory_space<vmem>>, vector<8x256xf32>
    tpu.vector_store %arg7[%c0_303, %c0_304], %947 {strides = array<i32>} : memref<8x256xf32, #tpu.memory_space<vmem>>, vector<8x256xf32>,
    return
  }
  func.func @transform_0(%arg0: i32) -> (i32, i32) {
    %c0_i32 = arith.constant 0 : i32
    %c0_i32_0 = arith.constant 0 : i32
    return %arg0, %c0_i32 : i32, i32
  }
  func.func @transform_1(%arg0: i32) -> (i32, i32) {
    %c0_i32 = arith.constant 0 : i32
    %c0_i32_0 = arith.constant 0 : i32
    %c0_i32_1 = arith.constant 0 : i32
    return %c0_i32, %c0_i32_0 : i32, i32
  }
  func.func @transform_2(%arg0: i32) -> (i32, i32) {
    %c0_i32 = arith.constant 0 : i32
    %c0_i32_0 = arith.constant 0 : i32
    %c0_i32_1 = arith.constant 0 : i32
    return %c0_i32, %c0_i32_0 : i32, i32
  }
  func.func @transform_3(%arg0: i32) -> (i32, i32) {
    %c0_i32 = arith.constant 0 : i32
    %c0_i32_0 = arith.constant 0 : i32
    %c0_i32_1 = arith.constant 0 : i32
    return %c0_i32, %c0_i32_0 : i32, i32
  }
  func.func @transform_4(%arg0: i32) -> (i32, i32) {
    %c0_i32 = arith.constant 0 : i32
    %c0_i32_0 = arith.constant 0 : i32
    %c0_i32_1 = arith.constant 0 : i32
    return %c0_i32, %c0_i32_0 : i32, i32
  }
  func.func @transform_5(%arg0: i32) -> (i32, i32) {
    %c0_i32 = arith.constant 0 : i32
    %c0_i32_0 = arith.constant 0 : i32
    %c0_i32_1 = arith.constant 0 : i32
    return %c0_i32, %c0_i32_0 : i32, i32
  }
  func.func @transform_6(%arg0: i32) -> (i32, i32) {
    %c0_i32 = arith.constant 0 : i32
    %c0_i32_0 = arith.constant 0 : i32
    return %arg0, %c0_i32 : i32, i32
  }
}

</mosaic_0001>

<bundles_post_ra>
// kernel: res_conv_block.1
= control target key start
LH: loop header
LB: loop body
LE: loop exit
PB: predicated region body
PF: predicated region fallthrough
CT: control target
= control target key end

     0   :  { %s1543_s23 = smov 15   ;;  %s1544_s24 = smov 16   ;;  %v1546_v1 = vmov 0   ;;  %v1547_v3 = vmov 1   ;;  %v1553_v6 = vmov 3   ;;  %v1554_v7 = vmov 2   ;;  %s2547_s0 = inlined_call_operand.vmem [shape: f32[8,256], index: 0, kind: input, shape index: {}]   ;;  %s2548_s2 = inlined_call_operand.vmem [shape: f32[4,36], index: 2, kind: input, shape index: {}]   ;;  %s2549_s3 = inlined_call_operand.vmem [shape: f32[4,1], index: 3, kind: input, shape index: {}]   ;;  %s2550_s1 = inlined_call_operand.vmem [shape: f32[9,256], index: 1, kind: input, shape index: {}]   ;;  %s2551_s4 = inlined_call_operand.vmem [shape: f32[4,36], index: 4, kind: input, shape index: {}]   ;;  %s2552_s5 = inlined_call_operand.vmem [shape: f32[4,1], index: 5, kind: input, shape index: {}]   ;;  %s2553_s6 = inlined_call_operand.vmem [shape: f32[8,256], index: 6, kind: output, shape index: {}]  }
   0x1   :  { %v1625_v0 = vld [vmem:[%s2547_s0] sm:$0xff]  ;;  %s1545_s25 = smov 17   ;;  %1467 = vset.pattern.permute.xlu2 %v1546_v1  ;;  %1466 = vset.pattern.permute.xlu1 %v1546_v1  ;;  %v1638_v2 = vld [vmem:[%s2547_s0 + $0x8] sm:$0xff]  ;;  %s1548_s28 = smov 127   ;;  %v1555_v8 = vmov 6   ;;  %v1556_v9 = vmov 5   ;;  %v29_v20 = vlaneseq }
   0x2   :  { %58 = vrot.lane.b32.xlu2 %v1625_v0, %s1543_s23  ;;  %42 = vrot.lane.b32.xlu1 %v1625_v0, %s1544_s24  ;;  %s1549_s29 = smov 1   ;;  %s1550_s30 = smov 113   ;;  %v1668_v4 = vld [vmem:[%s2548_s2] sm:$0xf]  ;;  %v1557_v10 = vmov 4   ;;  %v2580_v11 = vmov 11  }
   0x3   :  { %25 = vrot.lane.b32.xlu0 %v1625_v0, %s1545_s25  ;;  %s1551_s7 = smov 111   ;;  %s1552_s8 = smov 112   ;;  %v154_v5 = vld [vmem:[%s2549_s3] sm:$0xf]  ;;  %v2581_v12 = vmov 8   ;;  %v2593_v13 = vmov 7  }
   0x4   :  { %1468 = vset.pattern.permute.xlu0 %v1547_v3  ;;  %v2577_v14 = vmov 16   ;;  %v2578_v15 = vmov 10   ;;  %v2579_v16 = vmov 9   ;;  %v2574_v17 = vmov 21  }
   0x5   :  { %v2575_v18 = vmov 13   ;;  %v2576_v19 = vmov 12   ;;  %v1705_v22 = vand.u32 127, %v29_v20  ;;  %v2571_v23 = vmov 26  }
   0x6   :  { %v2572_v24 = vmov 15   ;;  %v2573_v25 = vmov 14   ;;  %v2568_v29 = vmov 31   ;;  %v2569_v30 = vmov 18  }
   0x7   :  { %vm62_vm0 = vcmp.lt.s32.totalorder %v1705_v22, 15  ;;  %v2570_v31 = vmov 17   ;;  %v2564_v32 = vmov 20   ;;  %v2565_v35 = vmov 19  }
   0x8   :  { %vm46_vm1 = vcmp.lt.s32.totalorder %v1705_v22, 16  ;;  %v2562_v38 = vmov 23   ;;  %v2563_v42 = vmov 22   ;;  %v2558_v46 = vmov 25  }
   0x9   :  { %v2559_v47 = vmov 24   ;;  %vm110_vm2 = vcmp.lt.s32.totalorder %v1705_v22, 113  ;;  %v2556_v53 = vmov 28   ;;  %v2557_v54 = vmov 27  }
   0xa   :  { %60 = vrot.lane.b32.xlu2 %v1638_v2, %s1543_s23  ;;  %44 = vrot.lane.b32.xlu1 %v1638_v2, %s1544_s24  ;;  %v1774_v55 = vld [vmem:[%s2550_s1] ss:$8 sm:$0x3]  ;;  %vm31_vm3 = vcmp.lt.s32.totalorder %v1705_v22, 17  ;;  %vm126_vm4 = vcmp.lt.s32.totalorder %v1705_v22, 112  ;;  %vm142_vm5 = vcmp.lt.s32.totalorder %v1705_v22, 111 }
   0xb   :  { %27 = vrot.lane.b32.xlu0 %v1638_v2, %s1545_s25  ;;  %v2561_v58 = vperm.slane %v1774_v55, 0  ;;  %v2560_v59 = vperm.slane %v1774_v55, 1  ;;  %vm78_vm6 = vcmp.lt.s32.totalorder %v1705_v22, 1  ;;  %vm94_vm7 = vcmp.lt.s32.totalorder %v1705_v22, 127 }
   0xc   :  { %vm744_vm8 = vcmask 1043456  }
  0x12   :  { %90 = vrot.lane.b32.xlu2 %v1625_v0, %s1548_s28  ;;  %76 = vrot.lane.b32.xlu1 %v1638_v2, %s1549_s29 }
  0x13   :  { %74 = vrot.lane.b32.xlu0 %v1625_v0, %s1549_s29 }
  0x1a   :  { %108 = vrot.lane.b32.xlu2 %v1638_v2, %s1550_s30  ;;  %106 = vrot.lane.b32.xlu1 %v1625_v0, %s1550_s30 }
  0x1b   :  { %92 = vrot.lane.b32.xlu0 %v1638_v2, %s1548_s28 }
  0x22   :  { %138 = vrot.lane.b32.xlu2 %v1625_v0, %s1551_s7  ;;  %124 = vrot.lane.b32.xlu1 %v1638_v2, %s1552_s8 }
  0x23   :  { %122 = vrot.lane.b32.xlu0 %v1625_v0, %s1552_s8 }
  0x2a   :  { %163 = vperm.xlu2 %1467, %v1668_v4   ;;  %157 = vperm.xlu1 %1466, %v154_v5   ;;  %v2554_v5 = vmov 30  }
  0x2b   :  { %140 = vrot.lane.b32.xlu0 %v1638_v2, %s1551_s7 }
  0x32   :  { %1470 = vset.pattern.permute.xlu2 %v1553_v6  ;;  %1469 = vset.pattern.permute.xlu1 %v1554_v7 }
  0x33   :  { %173 = vperm.xlu0 %1468, %v1668_v4   ;;  %193 = vperm.xlu2 %1470, %v1668_v4  }
  0x34   :  { %183 = vperm.xlu1 %1469, %v1668_v4  }
  0x3b   :  { %1473 = vset.pattern.permute.xlu0 %v1555_v8  ;;  %1472 = vset.pattern.permute.xlu2 %v1556_v9 }
  0x3c   :  { %1471 = vset.pattern.permute.xlu1 %v1557_v10  ;;  %223 = vperm.xlu0 %1473, %v1668_v4  }
  0x3d   :  { %213 = vperm.xlu2 %1472, %v1668_v4   ;;  %203 = vperm.xlu1 %1471, %v1668_v4  }
  0x44   :  { %1478 = vset.pattern.permute.xlu0 %v2580_v11 }
  0x45   :  { %1475 = vset.pattern.permute.xlu2 %v2581_v12  ;;  %1474 = vset.pattern.permute.xlu1 %v2593_v13 }
  0x46   :  { %273 = vperm.xlu0 %1478, %v1668_v4   ;;  %243 = vperm.xlu2 %1475, %v1668_v4  }
  0x47   :  { %233 = vperm.xlu1 %1474, %v1668_v4  }
  0x4e   :  { %1483 = vset.pattern.permute.xlu0 %v2577_v14  ;;  %1477 = vset.pattern.permute.xlu2 %v2578_v15 }
  0x4f   :  { %1476 = vset.pattern.permute.xlu1 %v2579_v16  ;;  %323 = vperm.xlu0 %1483, %v1668_v4  }
  0x50   :  { %263 = vperm.xlu2 %1477, %v1668_v4   ;;  %253 = vperm.xlu1 %1476, %v1668_v4  }
  0x57   :  { %1488 = vset.pattern.permute.xlu0 %v2574_v17 }
  0x58   :  { %1480 = vset.pattern.permute.xlu2 %v2575_v18  ;;  %1479 = vset.pattern.permute.xlu1 %v2576_v19 }
  0x59   :  { %373 = vperm.xlu0 %1488, %v1668_v4   ;;  %293 = vperm.xlu2 %1480, %v1668_v4  }
  0x5a   :  { %283 = vperm.xlu1 %1479, %v1668_v4  }
  0x5c   :  { %v59_v21 = vpop.permute.xlu2 %58 }
  0x61   :  { %1493 = vset.pattern.permute.xlu0 %v2571_v23  ;;  %1482 = vset.pattern.permute.xlu2 %v2572_v24  ;;  %v1843_v24 = vld [vmem:[%s2550_s1 + $0x2] ss:$8 sm:$0x3] }
  0x62   :  { %1481 = vset.pattern.permute.xlu1 %v2573_v25  ;;  %423 = vperm.xlu0 %1493, %v1668_v4  }
  0x63   :  { %313 = vperm.xlu2 %1482, %v1668_v4   ;;  %303 = vperm.xlu1 %1481, %v1668_v4  }
  0x64   :  { %v61_v26 = vpop.permute.xlu2 %60 }
  0x65   :  { %v1716_v27 = vsel %vm62_vm0, %v59_v21, %v61_v26  ;;  %v1720_v28 = vsel %vm62_vm0, %v61_v26, %v59_v21  ;;  %v2555_v26 = vmov 29  }
  0x6a   :  { %1498 = vset.pattern.permute.xlu0 %v2568_v29 }
  0x6b   :  { %1485 = vset.pattern.permute.xlu2 %v2569_v30  ;;  %1484 = vset.pattern.permute.xlu1 %v2570_v31 }
  0x6c   :  { %473 = vperm.xlu0 %1498, %v1668_v4   ;;  %343 = vperm.xlu2 %1485, %v1668_v4   ;;  %v1730_v34 = vpop.permute.xlu2 %90 }
  0x6d   :  { %333 = vperm.xlu1 %1484, %v1668_v4  }
  0x74   :  { %1487 = vset.pattern.permute.xlu2 %v2564_v32  ;;  %v43_v33 = vpop.permute.xlu1 %42  ;;  %1505 = vset.pattern.permute.xlu0 %v1547_v3  ;;  %v109_v43 = vpop.permute.xlu2 %108 }
  0x75   :  { %1486 = vset.pattern.permute.xlu1 %v2565_v35  ;;  %363 = vperm.xlu2 %1487, %v1668_v4   ;;  %v26_v36 = vpop.permute.xlu0 %25 }
  0x76   :  { %353 = vperm.xlu1 %1486, %v1668_v4  }
  0x7c   :  { %v45_v37 = vpop.permute.xlu1 %44  ;;  %v139_v48 = vpop.permute.xlu2 %138 }
  0x7d   :  { %1490 = vset.pattern.permute.xlu2 %v2562_v38  ;;  %v1739_v39 = vsel %vm46_vm1, %v43_v33, %v45_v37  ;;  %v1743_v40 = vsel %vm46_vm1, %v45_v37, %v43_v33  ;;  %v28_v41 = vpop.permute.xlu0 %27  ;;  %v1808_v33 = vld [vmem:[%s2550_s1 + $0x1] ss:$8 sm:$0x3]  ;;  %v2566_v38 = vmov 33  }
  0x7e   :  { %1489 = vset.pattern.permute.xlu1 %v2563_v42  ;;  %393 = vperm.xlu2 %1490, %v1668_v4   ;;  %v32_v61 = vsel %vm31_vm3, %v26_v36, %v28_v41  ;;  %v33_v62 = vsel %vm31_vm3, %v28_v41, %v26_v36  ;;  %v2567_v42 = vmov 32  }
  0x7f   :  { %383 = vperm.xlu1 %1489, %v1668_v4   ;;  %v1795_v20 = vmul.f32 %v2561_v58, %v33_v62  ;;  %v1799_v21 = vmul.f32 %v2560_v59, %v32_v61 }
  0x81   :  { %v166_v37 = vperm.slane %v1795_v20, 0  ;;  %v167_v41 = vperm.slane %v1799_v21, 0  ;;  %v528_v32 = vperm.slane %v1795_v20, 5  ;;  %v529_v35 = vperm.slane %v1799_v21, 5 }
  0x84   :  { %v1748_v44 = vpop.permute.xlu1 %76  ;;  %v164_v56 = vpop.permute.xlu2 %163 }
  0x85   :  { %v1750_v45 = vpop.permute.xlu0 %74 }
  0x86   :  { %1492 = vset.pattern.permute.xlu2 %v2558_v46  ;;  %v168_v46 = vmul.f32 %v166_v37, %v164_v56  ;;  %v187_v37 = vperm.slane %v1799_v21, 2 }
  0x87   :  { %1491 = vset.pattern.permute.xlu1 %v2559_v47  ;;  %413 = vperm.xlu2 %1492, %v1668_v4   ;;  %v169_v47 = vmul.f32 %v167_v41, %v164_v56  ;;  %v534_v41 = vperm.slane %v1795_v20, 6 }
  0x88   :  { %403 = vperm.xlu1 %1491, %v1668_v4  }
  0x8c   :  { %v107_v49 = vpop.permute.xlu1 %106 }
  0x8d   :  { %v1759_v50 = vsel %vm110_vm2, %v107_v49, %v109_v43  ;;  %v1763_v51 = vsel %vm110_vm2, %v109_v43, %v107_v49  ;;  %v1765_v52 = vpop.permute.xlu0 %92  ;;  %v522_v43 = vperm.slane %v1795_v20, 4  ;;  %v523_v49 = vperm.slane %v1799_v21, 4 }
  0x8f   :  { %1495 = vset.pattern.permute.xlu2 %v2556_v53  ;;  %v197_v53 = vperm.slane %v1799_v21, 3  ;;  %v524_v59 = vmul.f32 %v522_v43, %v164_v56  ;;  %v525_v58 = vmul.f32 %v523_v49, %v164_v56  ;;  %v186_v56 = vperm.slane %v1795_v20, 2 }
  0x90   :  { %1494 = vset.pattern.permute.xlu1 %v2557_v54  ;;  %443 = vperm.xlu2 %1495, %v1668_v4   ;;  %v541_v54 = vperm.slane %v1799_v21, 7  ;;  %v535_v43 = vperm.slane %v1799_v21, 6  ;;  %v196_v49 = vperm.slane %v1795_v20, 3 }
  0x91   :  { %433 = vperm.xlu1 %1494, %v1668_v4  }
  0x94   :  { %v125_v57 = vpop.permute.xlu1 %124 }
  0x95   :  { %v123_v60 = vpop.permute.xlu0 %122 }
  0x96   :  { %v1786_v63 = vsel %vm126_vm4, %v123_v60, %v125_v57  ;;  %v1790_v3 = vsel %vm126_vm4, %v125_v57, %v123_v60  ;;  %v194_v57 = vpop.permute.xlu2 %193 }
  0x98   :  { %1497 = vset.pattern.permute.xlu2 %v2554_v5  ;;  %v2585_v5 = vperm.slane %v1808_v33, 0 }
  0x99   :  { %1496 = vset.pattern.permute.xlu1 %v2555_v26  ;;  %463 = vperm.xlu2 %1497, %v1668_v4   ;;  %v2586_v26 = vperm.slane %v1808_v33, 1 }
  0x9a   :  { %453 = vperm.xlu1 %1496, %v1668_v4   ;;  %v1849_v12 = vmul.f32 %v2585_v5, %v1743_v40 }
  0x9c   :  { %v158_v36 = vpop.permute.xlu1 %157 }
  0x9d   :  { %v141_v60 = vpop.permute.xlu0 %140  ;;  %v171_v29 = vadd.f32 %v169_v47, %v158_v36  ;;  %v526_v30 = vadd.f32 %v524_v59, %v158_v36  ;;  %v527_v31 = vadd.f32 %v525_v58, %v158_v36 }
  0x9e   :  { %v1816_v61 = vsel %vm142_vm5, %v139_v48, %v141_v60  ;;  %v1820_v62 = vsel %vm142_vm5, %v141_v60, %v139_v48  ;;  %v176_v48 = vperm.slane %v1795_v20, 1  ;;  %v177_v60 = vperm.slane %v1799_v21, 1  ;;  %v214_v21 = vpop.permute.xlu2 %213 }
  0xa1   :  { %1500 = vset.pattern.permute.xlu2 %v2566_v38  ;;  %v540_v38 = vperm.slane %v1795_v20, 7 }
  0xa2   :  { %1499 = vset.pattern.permute.xlu1 %v2567_v42  ;;  %493 = vperm.xlu2 %1500, %v1668_v4   ;;  %v170_v42 = vadd.f32 %v168_v46, %v158_v36  ;;  %v2590_v36 = vperm.slane %v1843_v24, 0 }
  0xa3   :  { %483 = vperm.xlu1 %1499, %v1668_v4  }
  0xa5   :  { %v174_v23 = vpop.permute.xlu0 %173 }
  0xa6   :  { %v178_v25 = vmul.f32 %v176_v48, %v174_v23  ;;  %v179_v17 = vmul.f32 %v177_v60, %v174_v23  ;;  %v530_v18 = vmul.f32 %v528_v32, %v174_v23  ;;  %v531_v19 = vmul.f32 %v529_v35, %v174_v23  ;;  %v184_v14 = vpop.permute.xlu1 %183 }
  0xa7   :  { %v188_v15 = vmul.f32 %v186_v56, %v184_v14  ;;  %v189_v16 = vmul.f32 %v187_v37, %v184_v14  ;;  %v536_v11 = vmul.f32 %v534_v41, %v184_v14  ;;  %v537_v20 = vmul.f32 %v535_v43, %v184_v14 }
  0xa8   :  { %v180_v46 = vadd.f32 %v178_v25, %v170_v42  ;;  %v181_v47 = vadd.f32 %v179_v17, %v171_v29  ;;  %v532_v59 = vadd.f32 %v530_v18, %v526_v30  ;;  %v533_v58 = vadd.f32 %v531_v19, %v527_v31 }
  0xa9   :  { %v1854_v23 = vmul.f32 %v2586_v26, %v1739_v39  ;;  %v198_v32 = vmul.f32 %v196_v49, %v194_v57  ;;  %v199_v35 = vmul.f32 %v197_v53, %v194_v57  ;;  %v542_v48 = vmul.f32 %v540_v38, %v194_v57 }
  0xaa   :  { %v543_v14 = vmul.f32 %v541_v54, %v194_v57  ;;  %v190_v25 = vadd.f32 %v188_v15, %v180_v46  ;;  %v2591_v17 = vmov 35   ;;  %v191_v18 = vadd.f32 %v189_v16, %v181_v47 }
  0xab   :  { %1502 = vset.pattern.permute.xlu2 %v2591_v17  ;;  %v538_v19 = vadd.f32 %v536_v11, %v532_v59  ;;  %v539_v29 = vadd.f32 %v537_v20, %v533_v58  ;;  %v2584_v30 = vmov 34   ;;  %v2587_v31 = vperm.slane %v1843_v24, 1  ;;  %v244_v20 = vpop.permute.xlu2 %243 }
  0xac   :  { %1501 = vset.pattern.permute.xlu1 %v2584_v30  ;;  %513 = vperm.xlu2 %1502, %v1668_v4   ;;  %v1864_v38 = vmul.f32 %v2590_v36, %v1720_v28  ;;  %v206_v15 = vperm.slane %v1849_v12, 0  ;;  %v207_v16 = vperm.slane %v1854_v23, 0  ;;  %v546_v11 = vperm.slane %v1849_v12, 4 }
  0xad   :  { %503 = vperm.xlu1 %1501, %v1668_v4   ;;  %v547_v39 = vperm.slane %v1854_v23, 4  ;;  %v200_v42 = vadd.f32 %v198_v32, %v190_v25  ;;  %v201_v53 = vadd.f32 %v199_v35, %v191_v18  ;;  %v544_v54 = vadd.f32 %v542_v48, %v538_v19  ;;  %v1877_v32 = vld [vmem:[%s2550_s1 + $0x3] ss:$8 sm:$0x3] }
  0xae   :  { %v545_v4 = vadd.f32 %v543_v14, %v539_v29  ;;  %v216_v28 = vperm.slane %v1849_v12, 1  ;;  %v217_v41 = vperm.slane %v1854_v23, 1  ;;  %v552_v43 = vperm.slane %v1849_v12, 5 }
  0xaf   :  { %v204_v40 = vpop.permute.xlu1 %203  ;;  %v553_v49 = vperm.slane %v1854_v23, 5  ;;  %v226_v18 = vperm.slane %v1849_v12, 2  ;;  %v227_v19 = vperm.slane %v1854_v23, 2  ;;  %v558_v29 = vperm.slane %v1849_v12, 6 }
  0xb0   :  { %v208_v57 = vmul.f32 %v206_v15, %v204_v40  ;;  %v209_v60 = vmul.f32 %v207_v16, %v204_v40  ;;  %v548_v56 = vmul.f32 %v546_v11, %v204_v40  ;;  %v549_v37 = vmul.f32 %v547_v39, %v204_v40  ;;  %v224_v16 = vpop.permute.xlu0 %223 }
  0xb1   :  { %v218_v35 = vmul.f32 %v216_v28, %v214_v21  ;;  %v219_v48 = vmul.f32 %v217_v41, %v214_v21  ;;  %v554_v14 = vmul.f32 %v552_v43, %v214_v21  ;;  %v555_v25 = vmul.f32 %v553_v49, %v214_v21 }
  0xb2   :  { %v210_v46 = vadd.f32 %v208_v57, %v200_v42  ;;  %v211_v47 = vadd.f32 %v209_v60, %v201_v53  ;;  %v550_v59 = vadd.f32 %v548_v56, %v544_v54  ;;  %v551_v58 = vadd.f32 %v549_v37, %v545_v4 }
  0xb3   :  { %v559_v15 = vperm.slane %v1854_v23, 6  ;;  %v1888_v21 = vmul.f32 %v2587_v31, %v1716_v27  ;;  %v2582_v53 = vperm.slane %v1877_v32, 0  ;;  %v2583_v54 = vperm.slane %v1877_v32, 1 }
  0xb4   :  { %1504 = vset.pattern.permute.xlu2 %v1546_v1  ;;  %v220_v11 = vadd.f32 %v218_v35, %v210_v46  ;;  %v221_v39 = vadd.f32 %v219_v48, %v211_v47  ;;  %v556_v40 = vadd.f32 %v554_v14, %v550_v59  ;;  %v557_v42 = vadd.f32 %v555_v25, %v551_v58 }
  0xb5   :  { %1503 = vset.pattern.permute.xlu1 %v1546_v1  ;;  %v228_v4 = vmul.f32 %v226_v18, %v224_v16  ;;  %v229_v57 = vmul.f32 %v227_v19, %v224_v16  ;;  %v560_v60 = vmul.f32 %v558_v29, %v224_v16  ;;  %v561_v56 = vmul.f32 %v559_v15, %v224_v16 }
  0xb6   :  { %v236_v1 = vperm.slane %v1849_v12, 3  ;;  %v237_v37 = vperm.slane %v1854_v23, 3  ;;  %v564_v28 = vperm.slane %v1849_v12, 7  ;;  %v565_v41 = vperm.slane %v1854_v23, 7  ;;  %v264_v12 = vpop.permute.xlu2 %263 }
  0xb7   :  { %v230_v43 = vadd.f32 %v228_v4, %v220_v11  ;;  %v231_v49 = vadd.f32 %v229_v57, %v221_v39  ;;  %v562_v46 = vadd.f32 %v560_v60, %v556_v40  ;;  %v563_v47 = vadd.f32 %v561_v56, %v557_v42 }
  0xb8   :  { %v246_v14 = vperm.slane %v1864_v38, 0  ;;  %v247_v25 = vperm.slane %v1888_v21, 0  ;;  %v570_v18 = vperm.slane %v1864_v38, 4  ;;  %v571_v19 = vperm.slane %v1888_v21, 4 }
  0xb9   :  { %v234_v27 = vpop.permute.xlu1 %233  ;;  %v79_v4 = vsel %vm78_vm6, %v1750_v45, %v1748_v44  ;;  %v80_v57 = vsel %vm78_vm6, %v1748_v44, %v1750_v45  ;;  %v266_v60 = vperm.slane %v1864_v38, 2  ;;  %v267_v56 = vperm.slane %v1888_v21, 2 }
  0xba   :  { %v238_v59 = vmul.f32 %v236_v1, %v234_v27  ;;  %v239_v58 = vmul.f32 %v237_v37, %v234_v27  ;;  %v566_v35 = vmul.f32 %v564_v28, %v234_v27  ;;  %v567_v48 = vmul.f32 %v565_v41, %v234_v27 }
  0xbb   :  { %v248_v11 = vmul.f32 %v246_v14, %v244_v20  ;;  %v249_v39 = vmul.f32 %v247_v25, %v244_v20  ;;  %v572_v40 = vmul.f32 %v570_v18, %v244_v20  ;;  %v573_v42 = vmul.f32 %v571_v19, %v244_v20  ;;  %v274_v25 = vpop.permute.xlu0 %273 }
  0xbc   :  { %v240_v29 = vadd.f32 %v238_v59, %v230_v43  ;;  %v241_v23 = vadd.f32 %v239_v58, %v231_v49  ;;  %v568_v15 = vadd.f32 %v566_v35, %v562_v46  ;;  %v569_v16 = vadd.f32 %v567_v48, %v563_v47 }
  0xbd   :  { %v582_v20 = vperm.slane %v1864_v38, 6  ;;  %v583_v27 = vperm.slane %v1888_v21, 6  ;;  %v276_v43 = vperm.slane %v1864_v38, 3  ;;  %v277_v49 = vperm.slane %v1888_v21, 3 }
  0xbe   :  { %v250_v1 = vadd.f32 %v248_v11, %v240_v29  ;;  %v251_v37 = vadd.f32 %v249_v39, %v241_v23  ;;  %v574_v28 = vadd.f32 %v572_v40, %v568_v15  ;;  %v575_v41 = vadd.f32 %v573_v42, %v569_v16  ;;  %v294_v40 = vpop.permute.xlu2 %293 }
  0xbf   :  { %v256_v46 = vperm.slane %v1864_v38, 1  ;;  %v257_v44 = vperm.slane %v1888_v21, 1  ;;  %v576_v45 = vperm.slane %v1864_v38, 5  ;;  %v577_v47 = vperm.slane %v1888_v21, 5 }
  0xc0   :  { %v1921_v59 = vmul.f32 %v2582_v53, %v80_v57  ;;  %v1925_v58 = vmul.f32 %v2583_v54, %v79_v4  ;;  %v588_v35 = vperm.slane %v1864_v38, 7  ;;  %v589_v48 = vperm.slane %v1888_v21, 7 }
  0xc1   :  { %v268_v15 = vmul.f32 %v266_v60, %v264_v12  ;;  %v269_v16 = vmul.f32 %v267_v56, %v264_v12  ;;  %v584_v11 = vmul.f32 %v582_v20, %v264_v12  ;;  %v585_v39 = vmul.f32 %v583_v27, %v264_v12 }
  0xc2   :  { %v254_v14 = vpop.permute.xlu1 %253  ;;  %v278_v54 = vmul.f32 %v276_v43, %v274_v25  ;;  %v279_v30 = vmul.f32 %v277_v49, %v274_v25  ;;  %v590_v38 = vmul.f32 %v588_v35, %v274_v25  ;;  %v591_v5 = vmul.f32 %v589_v48, %v274_v25 }
  0xc3   :  { %v258_v18 = vmul.f32 %v256_v46, %v254_v14  ;;  %v259_v19 = vmul.f32 %v257_v44, %v254_v14  ;;  %v578_v29 = vmul.f32 %v576_v45, %v254_v14  ;;  %v579_v23 = vmul.f32 %v577_v47, %v254_v14 }
  0xc4   :  { %v286_v56 = vperm.slane %v1921_v59, 0  ;;  %v287_v12 = vperm.slane %v1925_v58, 0  ;;  %v600_v20 = vperm.slane %v1921_v59, 5 }
  0xc5   :  { %v260_v42 = vadd.f32 %v258_v18, %v250_v1  ;;  %v261_v57 = vadd.f32 %v259_v19, %v251_v37  ;;  %v580_v53 = vadd.f32 %v578_v29, %v574_v28  ;;  %v581_v4 = vadd.f32 %v579_v23, %v575_v41 }
  0xc6   :  { %v594_v1 = vperm.slane %v1921_v59, 4  ;;  %v595_v37 = vperm.slane %v1925_v58, 4  ;;  %v296_v28 = vperm.slane %v1921_v59, 1  ;;  %v297_v41 = vperm.slane %v1925_v58, 1  ;;  %v314_v48 = vpop.permute.xlu2 %313 }
  0xc7   :  { %v270_v21 = vadd.f32 %v268_v15, %v260_v42  ;;  %v271_v26 = vadd.f32 %v269_v16, %v261_v57  ;;  %v586_v31 = vadd.f32 %v584_v11, %v580_v53  ;;  %v587_v46 = vadd.f32 %v585_v39, %v581_v4 }
  0xc8   :  { %v601_v53 = vperm.slane %v1925_v58, 5  ;;  %v298_v27 = vmul.f32 %v296_v28, %v294_v40  ;;  %v299_v43 = vmul.f32 %v297_v41, %v294_v40  ;;  %v602_v49 = vmul.f32 %v600_v20, %v294_v40 }
  0xc9   :  { %v280_v44 = vadd.f32 %v278_v54, %v270_v21  ;;  %v281_v45 = vadd.f32 %v279_v30, %v271_v26  ;;  %v592_v47 = vadd.f32 %v590_v38, %v586_v31  ;;  %v593_v60 = vadd.f32 %v591_v5, %v587_v46 }
  0xca   :  { %v603_v35 = vmul.f32 %v601_v53, %v294_v40  ;;  %v306_v11 = vperm.slane %v1921_v59, 2  ;;  %v307_v39 = vperm.slane %v1925_v58, 2  ;;  %v606_v42 = vperm.slane %v1921_v59, 6 }
  0xcb   :  { %v607_v57 = vperm.slane %v1925_v58, 6  ;;  %v316_v40 = vperm.slane %v1921_v59, 3  ;;  %v317_v4 = vperm.slane %v1925_v58, 3  ;;  %v612_v38 = vperm.slane %v1921_v59, 7 }
  0xcc   :  { %v284_v54 = vpop.permute.xlu1 %283  ;;  %v613_v21 = vperm.slane %v1925_v58, 7  ;;  %v619_v59 = vperm.slane %v1638_v2, 4  ;;  %v326_v58 = vperm.slane %v1625_v0, 0 }
  0xcd   :  { %v288_v26 = vmul.f32 %v286_v56, %v284_v54  ;;  %v289_v30 = vmul.f32 %v287_v12, %v284_v54  ;;  %v596_v5 = vmul.f32 %v594_v1, %v284_v54  ;;  %v597_v31 = vmul.f32 %v595_v37, %v284_v54 }
  0xce   :  { %v318_v56 = vmul.f32 %v316_v40, %v314_v48  ;;  %v319_v12 = vmul.f32 %v317_v4, %v314_v48  ;;  %v614_v1 = vmul.f32 %v612_v38, %v314_v48  ;;  %v615_v37 = vmul.f32 %v613_v21, %v314_v48  ;;  %v344_v28 = vpop.permute.xlu2 %343 }
  0xcf   :  { %v290_v14 = vadd.f32 %v288_v26, %v280_v44  ;;  %v291_v25 = vadd.f32 %v289_v30, %v281_v45  ;;  %v598_v18 = vadd.f32 %v596_v5, %v592_v47  ;;  %v599_v19 = vadd.f32 %v597_v31, %v593_v60  ;;  %v1953_v5 = vld [vmem:[%s2550_s1 + $0x5] ss:$8 sm:$0x3] }
  0xd0   :  { %v327_v26 = vperm.slane %v1638_v2, 0  ;;  %v618_v30 = vperm.slane %v1625_v0, 4  ;;  %v625_v48 = vperm.slane %v1638_v2, 5  ;;  %v347_v40 = vperm.slane %v1638_v2, 2 }
  0xd1   :  { %v300_v29 = vadd.f32 %v298_v27, %v290_v14  ;;  %v301_v23 = vadd.f32 %v299_v43, %v291_v25  ;;  %v604_v15 = vadd.f32 %v602_v49, %v598_v18  ;;  %v605_v16 = vadd.f32 %v603_v35, %v599_v19 }
  0xd2   :  { %v337_v35 = vperm.slane %v1638_v2, 1  ;;  %v336_v14 = vperm.slane %v1625_v0, 1  ;;  %v624_v25 = vperm.slane %v1625_v0, 5  ;;  %v2589_v18 = vperm.slane %v1953_v5, 0 }
  0xd3   :  { %v2588_v19 = vperm.slane %v1953_v5, 1  ;;  %v631_v4 = vperm.slane %v1638_v2, 6  ;;  %v346_v38 = vperm.slane %v1625_v0, 2  ;;  %v630_v21 = vperm.slane %v1625_v0, 6 }
  0xd4   :  { %v2649_v22 = vperm.slane %v1953_v5, 1 }
  0xd5   :  { %v304_v46 = vpop.permute.xlu1 %303 }
  0xd6   :  { %v308_v44 = vmul.f32 %v306_v11, %v304_v46  ;;  %v309_v45 = vmul.f32 %v307_v39, %v304_v46  ;;  %v608_v47 = vmul.f32 %v606_v42, %v304_v46  ;;  %v609_v60 = vmul.f32 %v607_v57, %v304_v46 }
  0xd8   :  { %v310_v41 = vadd.f32 %v308_v44, %v300_v29  ;;  %v311_v20 = vadd.f32 %v309_v45, %v301_v23  ;;  %v610_v53 = vadd.f32 %v608_v47, %v604_v15  ;;  %v611_v54 = vadd.f32 %v609_v60, %v605_v16  ;;  %v324_v15 = vpop.permute.xlu0 %323  ;;  %v1972_v16 = vld [vmem:[%s2550_s1 + $0x6] ss:$8 sm:$0x3] }
  0xd9   :  { %v95_v29 = vsel %vm94_vm7, %v1730_v34, %v1765_v52  ;;  %v96_v23 = vsel %vm94_vm7, %v1765_v52, %v1730_v34  ;;  %v328_v11 = vmul.f32 %v326_v58, %v324_v15  ;;  %v329_v39 = vmul.f32 %v327_v26, %v324_v15 }
  0xda   :  { %v320_v31 = vadd.f32 %v318_v56, %v310_v41  ;;  %v321_v27 = vadd.f32 %v319_v12, %v311_v20  ;;  %v616_v43 = vadd.f32 %v614_v1, %v610_v53  ;;  %v617_v49 = vadd.f32 %v615_v37, %v611_v54  ;;  %v364_v1 = vpop.permute.xlu2 %363 }
  0xdb   :  { %v620_v42 = vmul.f32 %v618_v30, %v324_v15  ;;  %v621_v57 = vmul.f32 %v619_v59, %v324_v15  ;;  %v2599_v47 = vperm.slane %v1972_v16, 0  ;;  %v2598_v60 = vperm.slane %v1972_v16, 1 }
  0xdc   :  { %v1982_v56 = vmul.f32 %v2589_v18, %v95_v29  ;;  %v1986_v12 = vmul.f32 %v2588_v19, %v96_v23  ;;  %v330_v37 = vadd.f32 %v328_v11, %v320_v31  ;;  %v331_v41 = vadd.f32 %v329_v39, %v321_v27 }
  0xdd   :  { %v622_v20 = vadd.f32 %v620_v42, %v616_v43  ;;  %v623_v53 = vadd.f32 %v621_v57, %v617_v49  ;;  %v348_v54 = vmul.f32 %v346_v38, %v344_v28  ;;  %v349_v26 = vmul.f32 %v347_v40, %v344_v28 }
  0xde   :  { %v632_v59 = vmul.f32 %v630_v21, %v344_v28  ;;  %v633_v58 = vmul.f32 %v631_v4, %v344_v28  ;;  %v637_v29 = vperm.slane %v1638_v2, 7  ;;  %v356_v23 = vperm.slane %v1625_v0, 3 }
  0xdf   :  { %v334_v46 = vpop.permute.xlu1 %333  ;;  %v636_v15 = vperm.slane %v1625_v0, 7  ;;  %v376_v31 = vperm.slane %v1982_v56, 1  ;;  %v377_v27 = vperm.slane %v1986_v12, 1  ;;  %v648_v43 = vperm.slane %v1982_v56, 5 }
  0xe0   :  { %v338_v34 = vmul.f32 %v336_v14, %v334_v46  ;;  %v339_v52 = vmul.f32 %v337_v35, %v334_v46  ;;  %v626_v44 = vmul.f32 %v624_v25, %v334_v46  ;;  %v627_v45 = vmul.f32 %v625_v48, %v334_v46  ;;  %v374_v38 = vpop.permute.xlu0 %373 }
  0xe1   :  { %v357_v25 = vperm.slane %v1638_v2, 3  ;;  %v649_v28 = vperm.slane %v1986_v12, 5  ;;  %v366_v49 = vperm.slane %v1982_v56, 0  ;;  %v367_v11 = vperm.slane %v1986_v12, 0 }
  0xe2   :  { %v340_v30 = vadd.f32 %v338_v34, %v330_v37  ;;  %v341_v35 = vadd.f32 %v339_v52, %v331_v41  ;;  %v628_v48 = vadd.f32 %v626_v44, %v622_v20  ;;  %v629_v14 = vadd.f32 %v627_v45, %v623_v53  ;;  %v394_v20 = vpop.permute.xlu2 %393 }
  0xe3   :  { %v642_v39 = vperm.slane %v1982_v56, 4  ;;  %v643_v2 = vperm.slane %v1986_v12, 4  ;;  %v368_v44 = vmul.f32 %v366_v49, %v364_v1  ;;  %v369_v45 = vmul.f32 %v367_v11, %v364_v1 }
  0xe4   :  { %v350_v57 = vadd.f32 %v348_v54, %v340_v30  ;;  %v351_v40 = vadd.f32 %v349_v26, %v341_v35  ;;  %v634_v0 = vadd.f32 %v632_v59, %v628_v48  ;;  %v635_v4 = vadd.f32 %v633_v58, %v629_v14 }
  0xe5   :  { %v644_v37 = vmul.f32 %v642_v39, %v364_v1  ;;  %v645_v41 = vmul.f32 %v643_v2, %v364_v1  ;;  %v378_v17 = vmul.f32 %v376_v31, %v374_v38  ;;  %v379_v13 = vmul.f32 %v377_v27, %v374_v38 }
  0xe6   :  { %v650_v54 = vmul.f32 %v648_v43, %v374_v38  ;;  %v651_v26 = vmul.f32 %v649_v28, %v374_v38  ;;  %v2003_v48 = vmul.f32 %v2599_v47, %v1759_v50  ;;  %v2008_v1 = vmul.f32 %v2598_v60, %v1763_v51 }
  0xe7   :  { %v396_v50 = vperm.slane %v1982_v56, 3  ;;  %v397_v31 = vperm.slane %v1986_v12, 3  ;;  %v660_v27 = vperm.slane %v1982_v56, 7  ;;  %v661_v51 = vperm.slane %v1986_v12, 7 }
  0xe8   :  { %v354_v42 = vpop.permute.xlu1 %353 }
  0xe9   :  { %v358_v21 = vmul.f32 %v356_v23, %v354_v42  ;;  %v359_v46 = vmul.f32 %v357_v25, %v354_v42  ;;  %v638_v34 = vmul.f32 %v636_v15, %v354_v42  ;;  %v639_v52 = vmul.f32 %v637_v29, %v354_v42 }
  0xea   :  { %v386_v15 = vperm.slane %v1982_v56, 2  ;;  %v398_v39 = vmul.f32 %v396_v50, %v394_v20  ;;  %v399_v2 = vmul.f32 %v397_v31, %v394_v20  ;;  %v662_v42 = vmul.f32 %v660_v27, %v394_v20 }
  0xeb   :  { %v360_v53 = vadd.f32 %v358_v21, %v350_v57  ;;  %v361_v19 = vadd.f32 %v359_v46, %v351_v40  ;;  %v640_v18 = vadd.f32 %v638_v34, %v634_v0  ;;  %v641_v36 = vadd.f32 %v639_v52, %v635_v4  ;;  %v414_v21 = vpop.permute.xlu2 %413 }
  0xec   :  { %v663_v57 = vmul.f32 %v661_v51, %v394_v20  ;;  %v679_v20 = vperm.slane %v2008_v1, 6 }
  0xed   :  { %v370_v59 = vadd.f32 %v368_v44, %v360_v53  ;;  %v371_v58 = vadd.f32 %v369_v45, %v361_v19  ;;  %v646_v30 = vadd.f32 %v644_v37, %v640_v18  ;;  %v647_v35 = vadd.f32 %v645_v41, %v641_v36 }
  0xee   :  { %v387_v19 = vperm.slane %v1986_v12, 2  ;;  %v654_v36 = vperm.slane %v1982_v56, 6  ;;  %v655_v18 = vperm.slane %v1986_v12, 6  ;;  %v426_v45 = vperm.slane %v2003_v48, 2 }
  0xef   :  { %v380_v14 = vadd.f32 %v378_v17, %v370_v59  ;;  %v381_v25 = vadd.f32 %v379_v13, %v371_v58  ;;  %v652_v29 = vadd.f32 %v650_v54, %v646_v30  ;;  %v653_v23 = vadd.f32 %v651_v26, %v647_v35  ;;  %v2021_v13 = vld [vmem:[%s2550_s1 + $0x7] ss:$8 sm:$0x3] }
  0xf0   :  { %v2597_v12 = vperm.slane %v2021_v13, 0  ;;  %v2596_v38 = vperm.slane %v2021_v13, 1  ;;  %v427_v37 = vperm.slane %v2008_v1, 2  ;;  %v678_v41 = vperm.slane %v2003_v48, 6 }
  0xf1   :  { %v384_v17 = vpop.permute.xlu1 %383  ;;  %v416_v53 = vperm.slane %v2003_v48, 1  ;;  %v417_v54 = vperm.slane %v2008_v1, 1  ;;  %v406_v26 = vperm.slane %v2003_v48, 0  ;;  %v407_v59 = vperm.slane %v2008_v1, 0 }
  0xf2   :  { %v388_v43 = vmul.f32 %v386_v15, %v384_v17  ;;  %v389_v28 = vmul.f32 %v387_v19, %v384_v17  ;;  %v656_v49 = vmul.f32 %v654_v36, %v384_v17  ;;  %v657_v11 = vmul.f32 %v655_v18, %v384_v17  ;;  %v424_v15 = vpop.permute.xlu0 %423 }
  0xf3   :  { %v666_v58 = vperm.slane %v2003_v48, 4  ;;  %v667_v30 = vperm.slane %v2008_v1, 4  ;;  %v2038_v35 = vmul.f32 %v2597_v12, %v1786_v63  ;;  %v418_v31 = vmul.f32 %v416_v53, %v414_v21 }
  0xf4   :  { %v390_v40 = vadd.f32 %v388_v43, %v380_v14  ;;  %v391_v0 = vadd.f32 %v389_v28, %v381_v25  ;;  %v658_v4 = vadd.f32 %v656_v49, %v652_v29  ;;  %v659_v56 = vadd.f32 %v657_v11, %v653_v23 }
  0xf5   :  { %v2043_v14 = vmul.f32 %v2596_v38, %v1790_v3  ;;  %v672_v25 = vperm.slane %v2003_v48, 5  ;;  %v673_v29 = vperm.slane %v2008_v1, 5  ;;  %v419_v27 = vmul.f32 %v417_v54, %v414_v21 }
  0xf6   :  { %v400_v46 = vadd.f32 %v398_v39, %v390_v40  ;;  %v401_v34 = vadd.f32 %v399_v2, %v391_v0  ;;  %v664_v52 = vadd.f32 %v662_v42, %v658_v4  ;;  %v665_v44 = vadd.f32 %v663_v57, %v659_v56  ;;  %v444_v42 = vpop.permute.xlu2 %443 }
  0xf7   :  { %v674_v51 = vmul.f32 %v672_v25, %v414_v21  ;;  %v675_v63 = vmul.f32 %v673_v29, %v414_v21  ;;  %v428_v3 = vmul.f32 %v426_v45, %v424_v15  ;;  %v429_v11 = vmul.f32 %v427_v37, %v424_v15 }
  0xf8   :  { %v680_v39 = vmul.f32 %v678_v41, %v424_v15  ;;  %v681_v2 = vmul.f32 %v679_v20, %v424_v15  ;;  %v436_v54 = vperm.slane %v2003_v48, 3  ;;  %v437_v21 = vperm.slane %v2008_v1, 3  ;;  %v2058_v20 = vld [vmem:[%s2550_s1 + $0x10] ss:$8 sm:$0x3] }
  0xf9   :  { %v690_v45 = vperm.slane %v2038_v35, 4  ;;  %v691_v37 = vperm.slane %v2043_v14, 4  ;;  %2602 = vst [vmem:[#allocation2_spill] sm:$0xff] %v2058_v20 }
  0xfa   :  { %v404_v23 = vpop.permute.xlu1 %403 }
  0xfb   :  { %v408_v19 = vmul.f32 %v406_v26, %v404_v23  ;;  %v409_v36 = vmul.f32 %v407_v59, %v404_v23  ;;  %v668_v18 = vmul.f32 %v666_v58, %v404_v23  ;;  %v669_v50 = vmul.f32 %v667_v30, %v404_v23 }
  0xfc   :  { %v692_v23 = vmul.f32 %v690_v45, %v444_v42  ;;  %v693_v15 = vmul.f32 %v691_v37, %v444_v42 }
  0xfd   :  { %v410_v17 = vadd.f32 %v408_v19, %v400_v46  ;;  %v411_v43 = vadd.f32 %v409_v36, %v401_v34  ;;  %v670_v28 = vadd.f32 %v668_v18, %v664_v52  ;;  %v671_v49 = vadd.f32 %v669_v50, %v665_v44 }
  0xfe   :  { %v684_v46 = vperm.slane %v2003_v48, 7  ;;  %v685_v34 = vperm.slane %v2008_v1, 7  ;;  %v446_v52 = vperm.slane %v2038_v35, 0  ;;  %v447_v44 = vperm.slane %v2043_v14, 0 }
  0xff   :  { %v420_v57 = vadd.f32 %v418_v31, %v410_v17  ;;  %v421_v40 = vadd.f32 %v419_v27, %v411_v43  ;;  %v676_v0 = vadd.f32 %v674_v51, %v670_v28  ;;  %v677_v4 = vadd.f32 %v675_v63, %v671_v49 }
 0x100   :  { %v448_v29 = vmul.f32 %v446_v52, %v444_v42  ;;  %v449_v1 = vmul.f32 %v447_v44, %v444_v42  ;;  %v2595_v31 = vperm.slane %v2058_v20, 0  ;;  %v2594_v27 = vperm.slane %v2058_v20, 1 }
 0x101   :  { %v430_v56 = vadd.f32 %v428_v3, %v420_v57  ;;  %v431_v26 = vadd.f32 %v429_v11, %v421_v40  ;;  %v682_v59 = vadd.f32 %v680_v39, %v676_v0  ;;  %v683_v53 = vadd.f32 %v681_v2, %v677_v4  ;;  %v464_v39 = vpop.permute.xlu2 %463  ;;  %v2071_v57 = vld [vmem:[%s2551_s4] sm:$0xf] }
 0x102   :  { %v476_v28 = vperm.slane %v2038_v35, 3  ;;  %v477_v49 = vperm.slane %v2043_v14, 3  ;;  %v708_v3 = vperm.slane %v2038_v35, 7  ;;  %v709_v11 = vperm.slane %v2043_v14, 7  ;;  %v815_v40 = vld [vmem:[%s2552_s5] sm:$0xf]  ;;  %824 = vperm.xlu2 %1504, %v2071_v57  }
 0x103   :  { %v434_v41 = vpop.permute.xlu1 %433  ;;  %v466_v2 = vperm.slane %v2038_v35, 2  ;;  %v467_v42 = vperm.slane %v2043_v14, 2  ;;  %v456_v0 = vperm.slane %v2038_v35, 1  ;;  %v457_v4 = vperm.slane %v2043_v14, 1  ;;  %818 = vperm.xlu1 %1503, %v815_v40  }
 0x104   :  { %v438_v58 = vmul.f32 %v436_v54, %v434_v41  ;;  %v439_v30 = vmul.f32 %v437_v21, %v434_v41  ;;  %v686_v25 = vmul.f32 %v684_v46, %v434_v41  ;;  %v687_v48 = vmul.f32 %v685_v34, %v434_v41  ;;  %v474_v34 = vpop.permute.xlu0 %473 }
 0x105   :  { %v702_v54 = vperm.slane %v2038_v35, 6  ;;  %v703_v21 = vperm.slane %v2043_v14, 6  ;;  %v468_v41 = vmul.f32 %v466_v2, %v464_v39 }
 0x106   :  { %v440_v19 = vadd.f32 %v438_v58, %v430_v56  ;;  %v441_v36 = vadd.f32 %v439_v30, %v431_v26  ;;  %v688_v18 = vadd.f32 %v686_v25, %v682_v59  ;;  %v689_v50 = vadd.f32 %v687_v48, %v683_v53 }
 0x107   :  { %v696_v56 = vperm.slane %v2038_v35, 5  ;;  %v697_v26 = vperm.slane %v2043_v14, 5  ;;  %v2084_v59 = vmul.f32 %v2595_v31, %v1816_v61  ;;  %v2089_v53 = vmul.f32 %v2594_v27, %v1820_v62 }
 0x108   :  { %v450_v51 = vadd.f32 %v448_v29, %v440_v19  ;;  %v451_v63 = vadd.f32 %v449_v1, %v441_v36  ;;  %v694_v17 = vadd.f32 %v692_v23, %v688_v18  ;;  %v695_v43 = vadd.f32 %v693_v15, %v689_v50 }
 0x109   :  { %v469_v58 = vmul.f32 %v467_v42, %v464_v39  ;;  %v704_v30 = vmul.f32 %v702_v54, %v464_v39  ;;  %v705_v61 = vmul.f32 %v703_v21, %v464_v39  ;;  %v478_v62 = vmul.f32 %v476_v28, %v474_v34  ;;  %v494_v50 = vpop.permute.xlu2 %493 }
 0x10a   :  { %v479_v23 = vmul.f32 %v477_v49, %v474_v34  ;;  %v710_v15 = vmul.f32 %v708_v3, %v474_v34  ;;  %v711_v35 = vmul.f32 %v709_v11, %v474_v34  ;;  %1507 = vset.pattern.permute.xlu2 %v1553_v6  ;;  %v496_v28 = vperm.slane %v2084_v59, 1 }
 0x10b   :  { %1506 = vset.pattern.permute.xlu1 %v1554_v7  ;;  %v497_v49 = vperm.slane %v2089_v53, 1  ;;  %v720_v3 = vperm.slane %v2084_v59, 5  ;;  %v721_v11 = vperm.slane %v2089_v53, 5 }
 0x10c   :  { %v454_v46 = vpop.permute.xlu1 %453  ;;  %v498_v54 = vmul.f32 %v496_v28, %v494_v50 }
 0x10d   :  { %v458_v52 = vmul.f32 %v456_v0, %v454_v46  ;;  %v459_v44 = vmul.f32 %v457_v4, %v454_v46  ;;  %v698_v45 = vmul.f32 %v696_v56, %v454_v46  ;;  %v699_v37 = vmul.f32 %v697_v26, %v454_v46 }
 0x10e   :  { %v499_v21 = vmul.f32 %v497_v49, %v494_v50  ;;  %v722_v46 = vmul.f32 %v720_v3, %v494_v50  ;;  %v723_v34 = vmul.f32 %v721_v11, %v494_v50 }
 0x10f   :  { %v460_v25 = vadd.f32 %v458_v52, %v450_v51  ;;  %v461_v48 = vadd.f32 %v459_v44, %v451_v63  ;;  %v700_v29 = vadd.f32 %v698_v45, %v694_v17  ;;  %v701_v1 = vadd.f32 %v699_v37, %v695_v43 }
 0x110   :  { %v486_v51 = vperm.slane %v2084_v59, 0  ;;  %v487_v63 = vperm.slane %v2089_v53, 0  ;;  %v714_v17 = vperm.slane %v2084_v59, 4  ;;  %v715_v43 = vperm.slane %v2089_v53, 4 }
 0x111   :  { %v470_v19 = vadd.f32 %v468_v41, %v460_v25  ;;  %v471_v14 = vadd.f32 %v469_v58, %v461_v48  ;;  %v706_v36 = vadd.f32 %v704_v30, %v700_v29  ;;  %v707_v18 = vadd.f32 %v705_v61, %v701_v1  ;;  %v514_v61 = vpop.permute.xlu2 %513 }
 0x112   :  { %v506_v25 = vperm.slane %v2084_v59, 2  ;;  %v507_v48 = vperm.slane %v2089_v53, 2  ;;  %v726_v29 = vperm.slane %v2084_v59, 6  ;;  %v727_v1 = vperm.slane %v2089_v53, 6 }
 0x113   :  { %v480_v40 = vadd.f32 %v478_v62, %v470_v19  ;;  %v481_v0 = vadd.f32 %v479_v23, %v471_v14  ;;  %v712_v4 = vadd.f32 %v710_v15, %v706_v36  ;;  %v713_v2 = vadd.f32 %v711_v35, %v707_v18 }
 0x114   :  { %v516_v62 = vperm.slane %v2084_v59, 3  ;;  %v517_v23 = vperm.slane %v2089_v53, 3  ;;  %v732_v15 = vperm.slane %v2084_v59, 7  ;;  %v733_v35 = vperm.slane %v2089_v53, 7 }
 0x115   :  { %v484_v39 = vpop.permute.xlu1 %483 }
 0x116   :  { %v488_v6 = vmul.f32 %v486_v51, %v484_v39  ;;  %v489_v42 = vmul.f32 %v487_v63, %v484_v39  ;;  %v716_v56 = vmul.f32 %v714_v17, %v484_v39  ;;  %v717_v26 = vmul.f32 %v715_v43, %v484_v39 }
 0x118   :  { %v490_v52 = vadd.f32 %v488_v6, %v480_v40  ;;  %v491_v44 = vadd.f32 %v489_v42, %v481_v0  ;;  %v718_v7 = vadd.f32 %v716_v56, %v712_v4  ;;  %v719_v45 = vadd.f32 %v717_v26, %v713_v2  ;;  %v1541_v26 = vld [vmem:[%s2547_s0] sm:$0xff] }
 0x119   :  { %v518_v40 = vmul.f32 %v516_v62, %v514_v61  ;;  %v519_v0 = vmul.f32 %v517_v23, %v514_v61  ;;  %v734_v4 = vmul.f32 %v732_v15, %v514_v61  ;;  %v735_v2 = vmul.f32 %v733_v35, %v514_v61 }
 0x11a   :  { %v500_v37 = vadd.f32 %v498_v54, %v490_v52  ;;  %v501_v41 = vadd.f32 %v499_v21, %v491_v44  ;;  %v724_v58 = vadd.f32 %v722_v46, %v718_v7  ;;  %v725_v30 = vadd.f32 %v723_v34, %v719_v45  ;;  %v1542_v21 = vld [vmem:[%s2547_s0 + $0x8] sm:$0xff] }
 0x11b   :  { %v2603_v34 = vmov 7   ;;  %v2604_v52 = vmov 8   ;;  %v2607_v44 = vmov 10   ;;  %v2609_v7 = vmov 12  }
 0x11c   :  { %v2610_v45 = vmov 13   ;;  %v2617_v62 = vmov 31   ;;  %v2618_v15 = vmov 19   ;;  %v2619_v35 = vmov 20  }
 0x11f   :  { %v504_v19 = vpop.permute.xlu1 %503 }
 0x120   :  { %v508_v14 = vmul.f32 %v506_v25, %v504_v19  ;;  %v509_v36 = vmul.f32 %v507_v48, %v504_v19  ;;  %v728_v18 = vmul.f32 %v726_v29, %v504_v19  ;;  %v729_v50 = vmul.f32 %v727_v1, %v504_v19 }
 0x121   :  { %v2614_v25 = vmov 26   ;;  %v2615_v48 = vmov 17   ;;  %v2616_v29 = vmov 18  }
 0x122   :  { %v510_v51 = vadd.f32 %v508_v14, %v500_v37  ;;  %v511_v63 = vadd.f32 %v509_v36, %v501_v41  ;;  %v730_v17 = vadd.f32 %v728_v18, %v724_v58  ;;  %v731_v43 = vadd.f32 %v729_v50, %v725_v30 }
 0x123   :  { %v2611_v41 = vmov 21   ;;  %v2612_v58 = vmov 14   ;;  %v2613_v30 = vmov 15   ;;  %v2620_v14 = vmov 22  }
 0x124   :  { %v520_v28 = vadd.f32 %v518_v40, %v510_v51  ;;  %v521_v49 = vadd.f32 %v519_v0, %v511_v63  ;;  %v736_v3 = vadd.f32 %v734_v4, %v730_v17  ;;  %v737_v11 = vadd.f32 %v735_v2, %v731_v43 }
 0x125   :  { %v2621_v18 = vmov 35   ;;  %v2622_v50 = vmov 23   ;;  %v2623_v2 = vperm.slane %v1774_v55, 0  ;;  %v2624_v63 = vperm.slane %v1774_v55, 1 }
 0x126   :  { %v740_v59 = vrot.slane %v736_v3, 4  ;;  %v741_v53 = vrot.slane %v737_v11, 4  ;;  %v2625_v11 = vmov 24   ;;  %v2626_v55 = vmov 25  }
 0x128   :  { %v745_v39 = vsel %vm744_vm8, %v520_v28, %v740_v59  ;;  %v746_v6 = vsel %vm744_vm8, %v521_v49, %v741_v53 }
 0x129   :  { %v747_v42 = vmax.f32 %v745_v39, 0.0  ;;  %v748_v56 = vmax.f32 %v746_v6, 0.0 }
 0x12b   :  { %v2116_v54 = vadd.f32 %v1541_v26, %v747_v42  ;;  %v2121_v46 = vadd.f32 %v1542_v21, %v748_v56 }
 0x12d   :  { %753 = vrot.lane.b32.xlu1 %v2121_v46, %s1545_s25  ;;  %759 = vrot.lane.b32.xlu2 %v2116_v54, %s1544_s24 }
 0x12e   :  { %751 = vrot.lane.b32.xlu0 %v2116_v54, %s1545_s25 }
 0x135   :  { %767 = vrot.lane.b32.xlu1 %v2116_v54, %s1543_s23  ;;  %769 = vrot.lane.b32.xlu2 %v2121_v46, %s1543_s23 }
 0x136   :  { %761 = vrot.lane.b32.xlu0 %v2121_v46, %s1544_s24 }
 0x13d   :  { %777 = vrot.lane.b32.xlu1 %v2121_v46, %s1549_s29  ;;  %783 = vrot.lane.b32.xlu2 %v2116_v54, %s1548_s28 }
 0x13e   :  { %775 = vrot.lane.b32.xlu0 %v2116_v54, %s1549_s29 }
 0x145   :  { %791 = vrot.lane.b32.xlu1 %v2116_v54, %s1550_s30  ;;  %793 = vrot.lane.b32.xlu2 %v2121_v46, %s1550_s30 }
 0x146   :  { %785 = vrot.lane.b32.xlu0 %v2121_v46, %s1548_s28 }
 0x14d   :  { %801 = vrot.lane.b32.xlu1 %v2121_v46, %s1552_s8  ;;  %807 = vrot.lane.b32.xlu2 %v2116_v54, %s1551_s7 }
 0x14e   :  { %799 = vrot.lane.b32.xlu0 %v2116_v54, %s1552_s8 }
 0x155   :  { %844 = vperm.xlu1 %1506, %v2071_v57   ;;  %854 = vperm.xlu2 %1507, %v2071_v57  }
 0x156   :  { %809 = vrot.lane.b32.xlu0 %v2121_v46, %s1551_s7 }
 0x15c   :  { %v825_v37 = vpop.permute.xlu2 %824 }
 0x15d   :  { %1508 = vset.pattern.permute.xlu1 %v1557_v10  ;;  %1509 = vset.pattern.permute.xlu2 %v1556_v9  ;;  %v2605_v10 = vmov 11   ;;  %v2606_v9 = vmov 9  }
 0x15e   :  { %834 = vperm.xlu0 %1505, %v2071_v57   ;;  %864 = vperm.xlu1 %1508, %v2071_v57  }
 0x15f   :  { %874 = vperm.xlu2 %1509, %v2071_v57  }
 0x166   :  { %1510 = vset.pattern.permute.xlu0 %v1555_v8  ;;  %1511 = vset.pattern.permute.xlu1 %v2603_v34  ;;  %v2608_v8 = vmov 16  }
 0x167   :  { %1512 = vset.pattern.permute.xlu2 %v2604_v52  ;;  %884 = vperm.xlu0 %1510, %v2071_v57  }
 0x168   :  { %894 = vperm.xlu1 %1511, %v2071_v57   ;;  %904 = vperm.xlu2 %1512, %v2071_v57  }
 0x16f   :  { %1515 = vset.pattern.permute.xlu0 %v2605_v10 }
 0x170   :  { %1513 = vset.pattern.permute.xlu1 %v2606_v9  ;;  %1514 = vset.pattern.permute.xlu2 %v2607_v44 }
 0x171   :  { %934 = vperm.xlu0 %1515, %v2071_v57   ;;  %914 = vperm.xlu1 %1513, %v2071_v57  }
 0x172   :  { %924 = vperm.xlu2 %1514, %v2071_v57  }
 0x175   :  { %v819_v23 = vpop.permute.xlu1 %818 }
 0x179   :  { %1520 = vset.pattern.permute.xlu0 %v2608_v8  ;;  %1516 = vset.pattern.permute.xlu1 %v2609_v7  ;;  %v2627_v7 = vmov 27  }
 0x17a   :  { %1517 = vset.pattern.permute.xlu2 %v2610_v45  ;;  %984 = vperm.xlu0 %1520, %v2071_v57  }
 0x17b   :  { %944 = vperm.xlu1 %1516, %v2071_v57   ;;  %954 = vperm.xlu2 %1517, %v2071_v57  }
 0x182   :  { %1525 = vset.pattern.permute.xlu0 %v2611_v41 }
 0x183   :  { %1518 = vset.pattern.permute.xlu1 %v2612_v58  ;;  %1519 = vset.pattern.permute.xlu2 %v2613_v30  ;;  %v2628_v58 = vmov 28  }
 0x184   :  { %1034 = vperm.xlu0 %1525, %v2071_v57   ;;  %964 = vperm.xlu1 %1518, %v2071_v57  }
 0x185   :  { %974 = vperm.xlu2 %1519, %v2071_v57  }
 0x187   :  { %v2186_v61 = vpop.permute.xlu2 %759 }
 0x18c   :  { %1530 = vset.pattern.permute.xlu0 %v2614_v25  ;;  %1521 = vset.pattern.permute.xlu1 %v2615_v48 }
 0x18d   :  { %1522 = vset.pattern.permute.xlu2 %v2616_v29  ;;  %1084 = vperm.xlu0 %1530, %v2071_v57   ;;  %v2629_v29 = vmov 29  }
 0x18e   :  { %994 = vperm.xlu1 %1521, %v2071_v57   ;;  %1004 = vperm.xlu2 %1522, %v2071_v57  }
 0x18f   :  { %v770_v1 = vpop.permute.xlu2 %769 }
 0x195   :  { %1535 = vset.pattern.permute.xlu0 %v2617_v62  ;;  %v2630_v62 = vmov 30  }
 0x196   :  { %1523 = vset.pattern.permute.xlu1 %v2618_v15  ;;  %1524 = vset.pattern.permute.xlu2 %v2619_v35 }
 0x197   :  { %1134 = vperm.xlu0 %1535, %v2071_v57   ;;  %1014 = vperm.xlu1 %1523, %v2071_v57   ;;  %v2200_v19 = vpop.permute.xlu2 %783 }
 0x198   :  { %1024 = vperm.xlu2 %1524, %v2071_v57  }
 0x19f   :  { %1526 = vset.pattern.permute.xlu1 %v2620_v14  ;;  %v754_v36 = vpop.permute.xlu1 %753  ;;  %1540 = vset.pattern.permute.xlu0 %v2621_v18  ;;  %v794_v49 = vpop.permute.xlu2 %793 }
 0x1a0   :  { %1527 = vset.pattern.permute.xlu2 %v2622_v50  ;;  %1044 = vperm.xlu1 %1526, %v2071_v57   ;;  %v752_v40 = vpop.permute.xlu0 %751  ;;  %v2634_v50 = vmov 33  }
 0x1a1   :  { %1054 = vperm.xlu2 %1527, %v2071_v57   ;;  %v755_v0 = vsel %vm31_vm3, %v752_v40, %v754_v36  ;;  %v756_v4 = vsel %vm31_vm3, %v754_v36, %v752_v40  ;;  %v2633_v36 = vmov 32  }
 0x1a2   :  { %v2213_v51 = vmul.f32 %v756_v4, %v2623_v2  ;;  %v2217_v17 = vmul.f32 %v755_v0, %v2624_v63  ;;  %v2635_v2 = vperm.slane %v1843_v24, 0 }
 0x1a4   :  { %v827_v43 = vperm.slane %v2213_v51, 0  ;;  %v828_v28 = vperm.slane %v2217_v17, 0  ;;  %v1183_v21 = vperm.slane %v2213_v51, 4  ;;  %v1184_v34 = vperm.slane %v2217_v17, 4 }
 0x1a6   :  { %v829_v6 = vmul.f32 %v827_v43, %v825_v37  ;;  %v830_v42 = vmul.f32 %v828_v28, %v825_v37  ;;  %v1185_v52 = vmul.f32 %v1183_v21, %v825_v37  ;;  %v1186_v10 = vmul.f32 %v1184_v34, %v825_v37 }
 0x1a7   :  { %v768_v3 = vpop.permute.xlu1 %767  ;;  %v808_v8 = vpop.permute.xlu2 %807  ;;  %v2636_v43 = vperm.slane %v1843_v24, 1  ;;  %v2638_v24 = vperm.slane %v1808_v33, 0  ;;  %v848_v21 = vperm.slane %v2217_v17, 2 }
 0x1a8   :  { %1528 = vset.pattern.permute.xlu1 %v2625_v11  ;;  %v771_v59 = vsel %vm62_vm0, %v768_v3, %v770_v1  ;;  %v772_v53 = vsel %vm62_vm0, %v770_v1, %v768_v3  ;;  %v762_v39 = vpop.permute.xlu0 %761  ;;  %v2229_v56 = vadd.f32 %v829_v6, %v819_v23  ;;  %v2231_v26 = vadd.f32 %v830_v42, %v819_v23 }
 0x1a9   :  { %1529 = vset.pattern.permute.xlu2 %v2626_v55  ;;  %1064 = vperm.xlu1 %1528, %v2071_v57   ;;  %v2240_v45 = vadd.f32 %v1185_v52, %v819_v23  ;;  %v2242_v41 = vadd.f32 %v1186_v10, %v819_v23  ;;  %v763_v40 = vsel %vm46_vm1, %v2186_v61, %v762_v39  ;;  %v858_v3 = vperm.slane %v2217_v17, 3 }
 0x1aa   :  { %1074 = vperm.xlu2 %1529, %v2071_v57   ;;  %v764_v4 = vsel %vm46_vm1, %v762_v39, %v2186_v61  ;;  %v2283_v63 = vmul.f32 %v772_v53, %v2635_v2  ;;  %v2287_v28 = vmul.f32 %v771_v59, %v2636_v43  ;;  %v2637_v6 = vperm.slane %v1808_v33, 1 }
 0x1ab   :  { %v1201_v55 = vperm.slane %v2213_v51, 7  ;;  %v1202_v61 = vperm.slane %v2217_v17, 7  ;;  %v847_v53 = vperm.slane %v2213_v51, 2  ;;  %v2300_v59 = vmul.f32 %v764_v4, %v2638_v24 }
 0x1ac   :  { %v2293_v42 = vmul.f32 %v763_v40, %v2637_v6  ;;  %v1195_v10 = vperm.slane %v2213_v51, 6  ;;  %v838_v33 = vperm.slane %v2217_v17, 1  ;;  %v2641_v40 = vmov 34  }
 0x1ad   :  { %v877_v4 = vperm.slane %v2300_v59, 1  ;;  %v1213_v2 = vperm.slane %v2300_v59, 5  ;;  %v1207_v6 = vperm.slane %v2300_v59, 4  ;;  %v887_v24 = vperm.slane %v2300_v59, 2 }
 0x1af   :  { %v2235_v9 = vpop.permute.xlu1 %777  ;;  %v855_v1 = vpop.permute.xlu2 %854 }
 0x1b0   :  { %v2237_v44 = vpop.permute.xlu0 %775  ;;  %v1203_v27 = vmul.f32 %v1201_v55, %v855_v1  ;;  %v1204_v31 = vmul.f32 %v1202_v61, %v855_v1  ;;  %v1220_v55 = vperm.slane %v2293_v42, 6 }
 0x1b1   :  { %1531 = vset.pattern.permute.xlu1 %v2627_v7  ;;  %v1196_v7 = vperm.slane %v2217_v17, 6 }
 0x1b2   :  { %1532 = vset.pattern.permute.xlu2 %v2628_v58  ;;  %1094 = vperm.xlu1 %1531, %v2071_v57   ;;  %v837_v58 = vperm.slane %v2213_v51, 1 }
 0x1b3   :  { %1104 = vperm.xlu2 %1532, %v2071_v57  }
 0x1b7   :  { %v792_v30 = vpop.permute.xlu1 %791 }
 0x1b8   :  { %v2249_v37 = vsel %vm110_vm2, %v792_v30, %v794_v49  ;;  %v2253_v25 = vsel %vm110_vm2, %v794_v49, %v792_v30  ;;  %v2255_v48 = vpop.permute.xlu0 %785  ;;  %v857_v49 = vperm.slane %v2213_v51, 3 }
 0x1b9   :  { %v2275_v0 = vpop.permute.xlu2 %874 }
 0x1ba   :  { %1533 = vset.pattern.permute.xlu1 %v2629_v29  ;;  %v859_v43 = vmul.f32 %v857_v49, %v855_v1 }
 0x1bb   :  { %1534 = vset.pattern.permute.xlu2 %v2630_v62  ;;  %1114 = vperm.xlu1 %1533, %v2071_v57   ;;  %v1189_v62 = vperm.slane %v2213_v51, 5  ;;  %v867_v51 = vperm.slane %v2300_v59, 0 }
 0x1bc   :  { %1124 = vperm.xlu2 %1534, %v2071_v57  }
 0x1bf   :  { %v802_v23 = vpop.permute.xlu1 %801 }
 0x1c0   :  { %v800_v15 = vpop.permute.xlu0 %799 }
 0x1c1   :  { %v2263_v35 = vsel %vm126_vm4, %v800_v15, %v802_v23  ;;  %v2267_v14 = vsel %vm126_vm4, %v802_v23, %v800_v15  ;;  %v1190_v23 = vperm.slane %v2217_v17, 5  ;;  %v878_v15 = vperm.slane %v2293_v42, 1 }
 0x1c2   :  { %2631 = vst [vmem:[#allocation3_spill] sm:$0xff] %v2263_v35  ;;  %v868_v17 = vperm.slane %v2293_v42, 0  ;;  %v2340_v38 = vpop.permute.xlu2 %904  ;;  %v898_v35 = vperm.slane %v2293_v42, 3 }
 0x1c3   :  { %2632 = vst [vmem:[#allocation4_spill] sm:$0xff] %v2267_v14  ;;  %1536 = vset.pattern.permute.xlu1 %v2633_v36  ;;  %v897_v14 = vperm.slane %v2300_v59, 3 }
 0x1c4   :  { %1537 = vset.pattern.permute.xlu2 %v2634_v50  ;;  %1144 = vperm.xlu1 %1536, %v2071_v57  }
 0x1c5   :  { %1154 = vperm.xlu2 %1537, %v2071_v57  }
 0x1c7   :  { %v845_v11 = vpop.permute.xlu1 %844 }
 0x1c8   :  { %v810_v39 = vpop.permute.xlu0 %809  ;;  %v849_v36 = vmul.f32 %v847_v53, %v845_v11  ;;  %v850_v29 = vmul.f32 %v848_v21, %v845_v11  ;;  %v1197_v30 = vmul.f32 %v1195_v10, %v845_v11 }
 0x1c9   :  { %v2305_v34 = vsel %vm142_vm5, %v808_v8, %v810_v39  ;;  %v2309_v52 = vsel %vm142_vm5, %v810_v39, %v808_v8  ;;  %v1214_v8 = vperm.slane %v2293_v42, 5  ;;  %v1208_v39 = vperm.slane %v2293_v42, 4 }
 0x1ca   :  { %2639 = vst [vmem:[#allocation5_spill] sm:$0xff] %v2305_v34 }
 0x1cb   :  { %2640 = vst [vmem:[#allocation6_spill] sm:$0xff] %v2309_v52  ;;  %v1198_v52 = vmul.f32 %v1196_v7, %v845_v11 }
 0x1cc   :  { %1538 = vset.pattern.permute.xlu1 %v2641_v40  ;;  %v860_v40 = vmul.f32 %v858_v3, %v855_v1  ;;  %v888_v3 = vperm.slane %v2293_v42, 2  ;;  %v1219_v1 = vperm.slane %v2300_v59, 6 }
 0x1cd   :  { %1539 = vset.pattern.permute.xlu2 %v2621_v18  ;;  %1164 = vperm.xlu1 %1538, %v2071_v57   ;;  %v2338_v18 = vsel %vm78_vm6, %v2237_v44, %v2235_v9 }
 0x1ce   :  { %1174 = vperm.xlu2 %1539, %v2071_v57   ;;  %v2346_v57 = vsel %vm78_vm6, %v2235_v9, %v2237_v44 }
 0x1d0   :  { %v835_v49 = vpop.permute.xlu0 %834  ;;  %v865_v12 = vpop.permute.xlu1 %864 }
 0x1d1   :  { %v839_v61 = vmul.f32 %v837_v58, %v835_v49  ;;  %v840_v60 = vmul.f32 %v838_v33, %v835_v49  ;;  %v1191_v47 = vmul.f32 %v1189_v62, %v835_v49  ;;  %v1192_v50 = vmul.f32 %v1190_v23, %v835_v49 }
 0x1d2   :  { %v1225_v58 = vperm.slane %v2300_v59, 7  ;;  %v1226_v33 = vperm.slane %v2293_v42, 7  ;;  %v869_v7 = vmul.f32 %v867_v51, %v865_v12  ;;  %v1209_v62 = vmul.f32 %v1207_v6, %v865_v12 }
 0x1d3   :  { %v841_v34 = vadd.f32 %v839_v61, %v2229_v56  ;;  %v842_v9 = vadd.f32 %v840_v60, %v2231_v26  ;;  %v1193_v44 = vadd.f32 %v1191_v47, %v2240_v45  ;;  %v1194_v20 = vadd.f32 %v1192_v50, %v2242_v41 }
 0x1d4   :  { %v870_v56 = vmul.f32 %v868_v17, %v865_v12  ;;  %v1210_v60 = vmul.f32 %v1208_v39, %v865_v12  ;;  %v879_v23 = vmul.f32 %v877_v4, %v2275_v0  ;;  %v880_v50 = vmul.f32 %v878_v15, %v2275_v0 }
 0x1d5   :  { %v851_v53 = vadd.f32 %v849_v36, %v841_v34  ;;  %v852_v21 = vadd.f32 %v850_v29, %v842_v9  ;;  %v1199_v10 = vadd.f32 %v1197_v30, %v1193_v44  ;;  %v1200_v11 = vadd.f32 %v1198_v52, %v1194_v20  ;;  %v925_v36 = vpop.permute.xlu2 %924 }
 0x1d6   :  { %v1215_v59 = vmul.f32 %v1213_v2, %v2275_v0  ;;  %v1216_v42 = vmul.f32 %v1214_v8, %v2275_v0  ;;  %v2642_v44 = vperm.slane %v2283_v63, 0 }
 0x1d7   :  { %v861_v26 = vadd.f32 %v859_v43, %v851_v53  ;;  %v862_v47 = vadd.f32 %v860_v40, %v852_v21  ;;  %v1205_v45 = vadd.f32 %v1203_v27, %v1199_v10  ;;  %v1206_v41 = vadd.f32 %v1204_v31, %v1200_v11 }
 0x1d8   :  { %v927_v11 = vperm.slane %v2283_v63, 2 }
 0x1d9   :  { %v871_v34 = vadd.f32 %v869_v7, %v861_v26  ;;  %v872_v29 = vadd.f32 %v870_v56, %v862_v47  ;;  %v1211_v30 = vadd.f32 %v1209_v62, %v1205_v45  ;;  %v1212_v20 = vadd.f32 %v1210_v60, %v1206_v41  ;;  %v885_v52 = vpop.permute.xlu0 %884 }
 0x1da   :  { %v889_v51 = vmul.f32 %v887_v24, %v885_v52  ;;  %v890_v12 = vmul.f32 %v888_v3, %v885_v52  ;;  %v1221_v17 = vmul.f32 %v1219_v1, %v885_v52  ;;  %v1222_v43 = vmul.f32 %v1220_v55, %v885_v52  ;;  %v895_v27 = vpop.permute.xlu1 %894 }
 0x1db   :  { %v881_v31 = vadd.f32 %v879_v23, %v871_v34  ;;  %v882_v6 = vadd.f32 %v880_v50, %v872_v29  ;;  %v1217_v4 = vadd.f32 %v1215_v59, %v1211_v30  ;;  %v1218_v39 = vadd.f32 %v1216_v42, %v1212_v20 }
 0x1dc   :  { %v899_v15 = vmul.f32 %v897_v14, %v895_v27  ;;  %v900_v40 = vmul.f32 %v898_v35, %v895_v27  ;;  %v1227_v2 = vmul.f32 %v1225_v58, %v895_v27  ;;  %v1228_v49 = vmul.f32 %v1226_v33, %v895_v27 }
 0x1dd   :  { %v891_v0 = vadd.f32 %v889_v51, %v881_v31  ;;  %v892_v8 = vadd.f32 %v890_v12, %v882_v6  ;;  %v1223_v61 = vadd.f32 %v1221_v17, %v1217_v4  ;;  %v1224_v9 = vadd.f32 %v1222_v43, %v1218_v39 }
 0x1de   :  { %v909_v24 = vmul.f32 %v2642_v44, %v2340_v38  ;;  %v2643_v3 = vperm.slane %v2287_v28, 0  ;;  %v2644_v55 = vperm.slane %v2283_v63, 4  ;;  %v2645_v35 = vperm.slane %v2287_v28, 4 }
 0x1df   :  { %v901_v58 = vadd.f32 %v899_v15, %v891_v0  ;;  %v902_v33 = vadd.f32 %v900_v40, %v892_v8  ;;  %v1229_v21 = vadd.f32 %v1227_v2, %v1223_v61  ;;  %v1230_v10 = vadd.f32 %v1228_v49, %v1224_v9 }
 0x1e0   :  { %v910_v1 = vmul.f32 %v2643_v3, %v2340_v38  ;;  %v1233_v53 = vmul.f32 %v2644_v55, %v2340_v38  ;;  %v1234_v14 = vmul.f32 %v2645_v35, %v2340_v38  ;;  %v928_v7 = vperm.slane %v2287_v28, 2 }
 0x1e1   :  { %v911_v56 = vadd.f32 %v909_v24, %v901_v58  ;;  %v2646_v47 = vperm.slane %v1877_v32, 0  ;;  %v2647_v41 = vperm.slane %v1877_v32, 1  ;;  %v1243_v23 = vperm.slane %v2283_v63, 6 }
 0x1e2   :  { %v912_v62 = vadd.f32 %v910_v1, %v902_v33  ;;  %v1235_v60 = vadd.f32 %v1233_v53, %v1229_v21  ;;  %v1236_v26 = vadd.f32 %v1234_v14, %v1230_v10  ;;  %v1244_v50 = vperm.slane %v2287_v28, 6 }
 0x1e3   :  { %v2380_v45 = vmul.f32 %v2346_v57, %v2646_v47  ;;  %v2385_v38 = vmul.f32 %v2338_v18, %v2647_v41  ;;  %v915_v59 = vpop.permute.xlu1 %914  ;;  %v917_v42 = vperm.slane %v2283_v63, 1  ;;  %v918_v34 = vperm.slane %v2287_v28, 1  ;;  %v955_v57 = vpop.permute.xlu2 %954 }
 0x1e4   :  { %v1237_v29 = vperm.slane %v2283_v63, 5  ;;  %v1238_v30 = vperm.slane %v2287_v28, 5  ;;  %v937_v20 = vperm.slane %v2283_v63, 3  ;;  %v938_v32 = vperm.slane %v2287_v28, 3  ;;  %v935_v51 = vpop.permute.xlu0 %934 }
 0x1e5   :  { %v1249_v18 = vperm.slane %v2283_v63, 7  ;;  %v1250_v52 = vperm.slane %v2287_v28, 7  ;;  %v919_v12 = vmul.f32 %v917_v42, %v915_v59  ;;  %v920_v17 = vmul.f32 %v918_v34, %v915_v59 }
 0x1e6   :  { %v1239_v43 = vmul.f32 %v1237_v29, %v915_v59  ;;  %v1240_v27 = vmul.f32 %v1238_v30, %v915_v59  ;;  %v929_v31 = vmul.f32 %v927_v11, %v925_v36  ;;  %v930_v6 = vmul.f32 %v928_v7, %v925_v36 }
 0x1e7   :  { %v1245_v4 = vmul.f32 %v1243_v23, %v925_v36  ;;  %v1246_v39 = vmul.f32 %v1244_v50, %v925_v36  ;;  %v921_v15 = vadd.f32 %v919_v12, %v911_v56  ;;  %v922_v40 = vadd.f32 %v920_v17, %v912_v62 }
 0x1e8   :  { %v1241_v2 = vadd.f32 %v1239_v43, %v1235_v60  ;;  %v1242_v49 = vadd.f32 %v1240_v27, %v1236_v26  ;;  %v939_v0 = vmul.f32 %v937_v20, %v935_v51  ;;  %v940_v8 = vmul.f32 %v938_v32, %v935_v51 }
 0x1e9   :  { %v1251_v61 = vmul.f32 %v1249_v18, %v935_v51  ;;  %v1252_v9 = vmul.f32 %v1250_v52, %v935_v51  ;;  %v931_v63 = vadd.f32 %v929_v31, %v921_v15  ;;  %v932_v44 = vadd.f32 %v930_v6, %v922_v40 }
 0x1ea   :  { %v1247_v28 = vadd.f32 %v1245_v4, %v1241_v2  ;;  %v1248_v24 = vadd.f32 %v1246_v39, %v1242_v49  ;;  %v947_v35 = vperm.slane %v2380_v45, 0  ;;  %v948_v36 = vperm.slane %v2385_v38, 0 }
 0x1eb   :  { %v941_v3 = vadd.f32 %v939_v0, %v931_v63  ;;  %v942_v1 = vadd.f32 %v940_v8, %v932_v44  ;;  %v1255_v14 = vperm.slane %v2380_v45, 4  ;;  %v1256_v58 = vperm.slane %v2385_v38, 4  ;;  %v975_v56 = vpop.permute.xlu2 %974 }
 0x1ec   :  { %v1253_v55 = vadd.f32 %v1251_v61, %v1247_v28  ;;  %v1254_v53 = vadd.f32 %v1252_v9, %v1248_v24  ;;  %v957_v33 = vperm.slane %v2380_v45, 1  ;;  %v958_v21 = vperm.slane %v2385_v38, 1  ;;  %v985_v0 = vpop.permute.xlu0 %984 }
 0x1ed   :  { %v1261_v10 = vperm.slane %v2380_v45, 5  ;;  %v1262_v11 = vperm.slane %v2385_v38, 5  ;;  %v945_v7 = vpop.permute.xlu1 %944  ;;  %v988_v51 = vperm.slane %v2121_v46, 0  ;;  %v1280_v12 = vperm.slane %v2121_v46, 4 }
 0x1ee   :  { %v949_v62 = vmul.f32 %v947_v35, %v945_v7  ;;  %v950_v60 = vmul.f32 %v948_v36, %v945_v7  ;;  %v1257_v26 = vmul.f32 %v1255_v14, %v945_v7  ;;  %v1258_v47 = vmul.f32 %v1256_v58, %v945_v7 }
 0x1ef   :  { %v959_v41 = vmul.f32 %v957_v33, %v955_v57  ;;  %v960_v23 = vmul.f32 %v958_v21, %v955_v57  ;;  %v1263_v50 = vmul.f32 %v1261_v10, %v955_v57  ;;  %v1264_v59 = vmul.f32 %v1262_v11, %v955_v57 }
 0x1f0   :  { %v951_v42 = vadd.f32 %v949_v62, %v941_v3  ;;  %v952_v34 = vadd.f32 %v950_v60, %v942_v1  ;;  %v1259_v29 = vadd.f32 %v1257_v26, %v1253_v55  ;;  %v1260_v30 = vadd.f32 %v1258_v47, %v1254_v53 }
 0x1f1   :  { %v987_v17 = vperm.slane %v2116_v54, 0  ;;  %v1279_v43 = vperm.slane %v2116_v54, 4  ;;  %v967_v31 = vperm.slane %v2380_v45, 2  ;;  %v968_v57 = vperm.slane %v2385_v38, 2 }
 0x1f2   :  { %v961_v20 = vadd.f32 %v959_v41, %v951_v42  ;;  %v962_v32 = vadd.f32 %v960_v23, %v952_v34  ;;  %v1265_v18 = vadd.f32 %v1263_v50, %v1259_v29  ;;  %v1266_v52 = vadd.f32 %v1264_v59, %v1260_v30 }
 0x1f3   :  { %v1267_v6 = vperm.slane %v2380_v45, 6  ;;  %v1268_v4 = vperm.slane %v2385_v38, 6  ;;  %v977_v39 = vperm.slane %v2380_v45, 3  ;;  %v978_v15 = vperm.slane %v2385_v38, 3  ;;  %v1005_v49 = vpop.permute.xlu2 %1004 }
 0x1f4   :  { %v1273_v40 = vperm.slane %v2380_v45, 7  ;;  %v1274_v2 = vperm.slane %v2385_v38, 7  ;;  %v989_v36 = vmul.f32 %v987_v17, %v985_v0  ;;  %v990_v14 = vmul.f32 %v988_v51, %v985_v0 }
 0x1f5   :  { %v979_v44 = vmul.f32 %v977_v39, %v975_v56  ;;  %v980_v28 = vmul.f32 %v978_v15, %v975_v56  ;;  %v1281_v58 = vmul.f32 %v1279_v43, %v985_v0  ;;  %v1282_v45 = vmul.f32 %v1280_v12, %v985_v0 }
 0x1f6   :  { %v965_v27 = vpop.permute.xlu1 %964  ;;  %v1275_v24 = vmul.f32 %v1273_v40, %v975_v56  ;;  %v1276_v3 = vmul.f32 %v1274_v2, %v975_v56  ;;  %v998_v26 = vperm.slane %v2121_v46, 1  ;;  %v1286_v56 = vperm.slane %v2121_v46, 5 }
 0x1f7   :  { %v969_v8 = vmul.f32 %v967_v31, %v965_v27  ;;  %v970_v61 = vmul.f32 %v968_v57, %v965_v27  ;;  %v1269_v9 = vmul.f32 %v1267_v6, %v965_v27  ;;  %v1270_v63 = vmul.f32 %v1268_v4, %v965_v27 }
 0x1f8   :  { %v997_v47 = vperm.slane %v2116_v54, 1  ;;  %v1285_v41 = vperm.slane %v2116_v54, 5  ;;  %v1008_v23 = vperm.slane %v2121_v46, 2  ;;  %v1292_v50 = vperm.slane %v2121_v46, 6 }
 0x1f9   :  { %v971_v1 = vadd.f32 %v969_v8, %v961_v20  ;;  %v972_v55 = vadd.f32 %v970_v61, %v962_v32  ;;  %v1271_v53 = vadd.f32 %v1269_v9, %v1265_v18  ;;  %v1272_v35 = vadd.f32 %v1270_v63, %v1266_v52 }
 0x1fa   :  { %v787_v20 = vsel %vm94_vm7, %v2200_v19, %v2255_v48  ;;  %v788_v32 = vsel %vm94_vm7, %v2255_v48, %v2200_v19  ;;  %v1007_v18 = vperm.slane %v2116_v54, 2  ;;  %v1291_v52 = vperm.slane %v2116_v54, 6 }
 0x1fb   :  { %v981_v33 = vadd.f32 %v979_v44, %v971_v1  ;;  %v982_v38 = vadd.f32 %v980_v28, %v972_v55  ;;  %v1277_v21 = vadd.f32 %v1275_v24, %v1271_v53  ;;  %v1278_v10 = vadd.f32 %v1276_v3, %v1272_v35  ;;  %v1025_v51 = vpop.permute.xlu2 %1024  ;;  %v1035_v53 = vpop.permute.xlu0 %1034 }
 0x1fc   :  { %v1009_v31 = vmul.f32 %v1007_v18, %v1005_v49  ;;  %v1010_v57 = vmul.f32 %v1008_v23, %v1005_v49  ;;  %v1293_v6 = vmul.f32 %v1291_v52, %v1005_v49  ;;  %v1294_v4 = vmul.f32 %v1292_v50, %v1005_v49 }
 0x1fd   :  { %v991_v11 = vadd.f32 %v989_v36, %v981_v33  ;;  %v992_v7 = vadd.f32 %v990_v14, %v982_v38  ;;  %v1283_v62 = vadd.f32 %v1281_v58, %v1277_v21  ;;  %v1284_v60 = vadd.f32 %v1282_v45, %v1278_v10 }
 0x1fe   :  { %v2648_v39 = vperm.slane %v1953_v5, 0  ;;  %v2439_v19 = vmul.f32 %v788_v32, %v2649_v22  ;;  %v1018_v8 = vperm.slane %v2121_v46, 3  ;;  %v1298_v61 = vperm.slane %v2121_v46, 7 }
 0x1ff   :  { %v1017_v9 = vperm.slane %v2116_v54, 3  ;;  %v1297_v49 = vperm.slane %v2116_v54, 7 }
 0x200   :  { %v995_v59 = vpop.permute.xlu1 %994  ;;  %v2435_v15 = vmul.f32 %v787_v20, %v2648_v39  ;;  %v1028_v44 = vperm.slane %v2439_v19, 0  ;;  %v1304_v28 = vperm.slane %v2439_v19, 4  ;;  %v1038_v1 = vperm.slane %v2439_v19, 1 }
 0x201   :  { %v999_v42 = vmul.f32 %v997_v47, %v995_v59  ;;  %v1000_v34 = vmul.f32 %v998_v26, %v995_v59  ;;  %v1287_v29 = vmul.f32 %v1285_v41, %v995_v59  ;;  %v1288_v30 = vmul.f32 %v1286_v56, %v995_v59 }
 0x202   :  { %v1027_v63 = vperm.slane %v2435_v15, 0  ;;  %v1303_v5 = vperm.slane %v2435_v15, 4  ;;  %v1037_v3 = vperm.slane %v2435_v15, 1  ;;  %v1309_v55 = vperm.slane %v2435_v15, 5 }
 0x203   :  { %v1001_v12 = vadd.f32 %v999_v42, %v991_v11  ;;  %v1002_v17 = vadd.f32 %v1000_v34, %v992_v7  ;;  %v1289_v43 = vadd.f32 %v1287_v29, %v1283_v62  ;;  %v1290_v27 = vadd.f32 %v1288_v30, %v1284_v60  ;;  %v1055_v21 = vpop.permute.xlu2 %1054 }
 0x204   :  { %v1310_v46 = vperm.slane %v2439_v19, 5  ;;  %v1029_v58 = vmul.f32 %v1027_v63, %v1025_v51  ;;  %v1030_v45 = vmul.f32 %v1028_v44, %v1025_v51  ;;  %v1305_v33 = vmul.f32 %v1303_v5, %v1025_v51 }
 0x205   :  { %v1011_v48 = vadd.f32 %v1009_v31, %v1001_v12  ;;  %v1012_v40 = vadd.f32 %v1010_v57, %v1002_v17  ;;  %v1295_v2 = vadd.f32 %v1293_v6, %v1289_v43  ;;  %v1296_v0 = vadd.f32 %v1294_v4, %v1290_v27 }
 0x206   :  { %v1306_v38 = vmul.f32 %v1304_v28, %v1025_v51  ;;  %v1039_v60 = vmul.f32 %v1037_v3, %v1035_v53  ;;  %v1040_v26 = vmul.f32 %v1038_v1, %v1035_v53  ;;  %v1311_v56 = vmul.f32 %v1309_v55, %v1035_v53 }
 0x207   :  { %v1312_v47 = vmul.f32 %v1310_v46, %v1035_v53  ;;  %v1047_v42 = vperm.slane %v2435_v15, 2  ;;  %v1048_v34 = vperm.slane %v2439_v19, 2  ;;  %v1315_v29 = vperm.slane %v2435_v15, 6 }
 0x208   :  { %v1316_v30 = vperm.slane %v2439_v19, 6  ;;  %v2650_v51 = vperm.slane %v1972_v16, 0  ;;  %v2651_v17 = vperm.slane %v1972_v16, 1  ;;  %v1057_v39 = vperm.slane %v2435_v15, 3 }
 0x209   :  { %v1015_v24 = vpop.permute.xlu1 %1014  ;;  %v1058_v22 = vperm.slane %v2439_v19, 3 }
 0x20a   :  { %v1019_v35 = vmul.f32 %v1017_v9, %v1015_v24  ;;  %v1020_v54 = vmul.f32 %v1018_v8, %v1015_v24  ;;  %v1299_v36 = vmul.f32 %v1297_v49, %v1015_v24  ;;  %v1300_v14 = vmul.f32 %v1298_v61, %v1015_v24 }
 0x20b   :  { %v2460_v12 = vmul.f32 %v2249_v37, %v2650_v51  ;;  %v2465_v43 = vmul.f32 %v2253_v25, %v2651_v17  ;;  %v1059_v8 = vmul.f32 %v1057_v39, %v1055_v21  ;;  %v1060_v25 = vmul.f32 %v1058_v22, %v1055_v21  ;;  %v1075_v49 = vpop.permute.xlu2 %1074 }
 0x20c   :  { %v1021_v10 = vadd.f32 %v1019_v35, %v1011_v48  ;;  %v1022_v11 = vadd.f32 %v1020_v54, %v1012_v40  ;;  %v1301_v7 = vadd.f32 %v1299_v36, %v1295_v2  ;;  %v1302_v62 = vadd.f32 %v1300_v14, %v1296_v0 }
 0x20d   :  { %v1321_v48 = vperm.slane %v2435_v15, 7  ;;  %v1322_v40 = vperm.slane %v2439_v19, 7  ;;  %v1087_v24 = vperm.slane %v2460_v12, 2  ;;  %v1088_v3 = vperm.slane %v2465_v43, 2 }
 0x20e   :  { %v1031_v41 = vadd.f32 %v1029_v58, %v1021_v10  ;;  %v1032_v23 = vadd.f32 %v1030_v45, %v1022_v11  ;;  %v1307_v50 = vadd.f32 %v1305_v33, %v1301_v7  ;;  %v1308_v59 = vadd.f32 %v1306_v38, %v1302_v62  ;;  %v1085_v45 = vpop.permute.xlu0 %1084 }
 0x20f   :  { %v1323_v61 = vmul.f32 %v1321_v48, %v1055_v21  ;;  %v1324_v9 = vmul.f32 %v1322_v40, %v1055_v21  ;;  %v1339_v15 = vperm.slane %v2460_v12, 6  ;;  %v1340_v19 = vperm.slane %v2465_v43, 6 }
 0x210   :  { %v1041_v20 = vadd.f32 %v1039_v60, %v1031_v41  ;;  %v1042_v32 = vadd.f32 %v1040_v26, %v1032_v23  ;;  %v1313_v18 = vadd.f32 %v1311_v56, %v1307_v50  ;;  %v1314_v52 = vadd.f32 %v1312_v47, %v1308_v59 }
 0x211   :  { %v1067_v1 = vperm.slane %v2460_v12, 0  ;;  %v1068_v55 = vperm.slane %v2465_v43, 0  ;;  %v1327_v46 = vperm.slane %v2460_v12, 4  ;;  %v1328_v53 = vperm.slane %v2465_v43, 4 }
 0x212   :  { %v1045_v27 = vpop.permute.xlu1 %1044  ;;  %v1077_v35 = vperm.slane %v2460_v12, 1  ;;  %v1078_v54 = vperm.slane %v2465_v43, 1  ;;  %v1333_v36 = vperm.slane %v2460_v12, 5  ;;  %v1334_v14 = vperm.slane %v2465_v43, 5 }
 0x213   :  { %v1049_v31 = vmul.f32 %v1047_v42, %v1045_v27  ;;  %v1050_v57 = vmul.f32 %v1048_v34, %v1045_v27  ;;  %v1317_v6 = vmul.f32 %v1315_v29, %v1045_v27  ;;  %v1318_v4 = vmul.f32 %v1316_v30, %v1045_v27  ;;  %v1105_v34 = vpop.permute.xlu2 %1104  ;;  %v2655_v27 = vld [vmem:[#allocation4_spill] sm:$0xff] }
 0x214   :  { %v1079_v11 = vmul.f32 %v1077_v35, %v1075_v49  ;;  %v1080_v7 = vmul.f32 %v1078_v54, %v1075_v49  ;;  %v1335_v62 = vmul.f32 %v1333_v36, %v1075_v49  ;;  %v1336_v60 = vmul.f32 %v1334_v14, %v1075_v49 }
 0x215   :  { %v1051_v37 = vadd.f32 %v1049_v31, %v1041_v20  ;;  %v1052_v2 = vadd.f32 %v1050_v57, %v1042_v32  ;;  %v1319_v0 = vadd.f32 %v1317_v6, %v1313_v18  ;;  %v1320_v16 = vadd.f32 %v1318_v4, %v1314_v52  ;;  %v2653_v52 = vld [vmem:[#allocation3_spill] sm:$0xff] }
 0x216   :  { %v1089_v23 = vmul.f32 %v1087_v24, %v1085_v45  ;;  %v1090_v50 = vmul.f32 %v1088_v3, %v1085_v45  ;;  %v1341_v59 = vmul.f32 %v1339_v15, %v1085_v45  ;;  %v1342_v42 = vmul.f32 %v1340_v19, %v1085_v45 }
 0x217   :  { %v1061_v63 = vadd.f32 %v1059_v8, %v1051_v37  ;;  %v1062_v44 = vadd.f32 %v1060_v25, %v1052_v2  ;;  %v1325_v5 = vadd.f32 %v1323_v61, %v1319_v0  ;;  %v1326_v28 = vadd.f32 %v1324_v9, %v1320_v16 }
 0x218   :  { %v2652_v18 = vperm.slane %v2021_v13, 0  ;;  %v2654_v17 = vperm.slane %v2021_v13, 1  ;;  %v1097_v22 = vperm.slane %v2460_v12, 3  ;;  %v1098_v48 = vperm.slane %v2465_v43, 3 }
 0x219   :  { %v1345_v40 = vperm.slane %v2460_v12, 7  ;;  %v1346_v37 = vperm.slane %v2465_v43, 7 }
 0x21a   :  { %v2486_v51 = vmul.f32 %v2653_v52, %v2652_v18  ;;  %v2491_v31 = vmul.f32 %v2655_v27, %v2654_v17 }
 0x21b   :  { %v1065_v58 = vpop.permute.xlu1 %1064 }
 0x21c   :  { %v1069_v33 = vmul.f32 %v1067_v1, %v1065_v58  ;;  %v1070_v38 = vmul.f32 %v1068_v55, %v1065_v58  ;;  %v1329_v21 = vmul.f32 %v1327_v46, %v1065_v58  ;;  %v1330_v10 = vmul.f32 %v1328_v53, %v1065_v58  ;;  %v1125_v1 = vpop.permute.xlu2 %1124 }
 0x21d   :  { %v1107_v25 = vperm.slane %v2486_v51, 0  ;;  %v1108_v61 = vperm.slane %v2491_v31, 0  ;;  %v1351_v9 = vperm.slane %v2486_v51, 4  ;;  %v1352_v49 = vperm.slane %v2491_v31, 4 }
 0x21e   :  { %v1071_v26 = vadd.f32 %v1069_v33, %v1061_v63  ;;  %v1072_v56 = vadd.f32 %v1070_v38, %v1062_v44  ;;  %v1331_v47 = vadd.f32 %v1329_v21, %v1325_v5  ;;  %v1332_v41 = vadd.f32 %v1330_v10, %v1326_v28  ;;  %v2656_v10 = vld [vmem:[#allocation2_spill] sm:$0xff] }
 0x21f   :  { %v1109_v12 = vmul.f32 %v1107_v25, %v1105_v34  ;;  %v1110_v24 = vmul.f32 %v1108_v61, %v1105_v34  ;;  %v1353_v43 = vmul.f32 %v1351_v9, %v1105_v34  ;;  %v1354_v3 = vmul.f32 %v1352_v49, %v1105_v34 }
 0x220   :  { %v1081_v29 = vadd.f32 %v1079_v11, %v1071_v26  ;;  %v1082_v30 = vadd.f32 %v1080_v7, %v1072_v56  ;;  %v1337_v20 = vadd.f32 %v1335_v62, %v1331_v47  ;;  %v1338_v32 = vadd.f32 %v1336_v60, %v1332_v41  ;;  %v2658_v7 = vld [vmem:[#allocation5_spill] sm:$0xff]  ;;  %v2660_v26 = vld [vmem:[#allocation6_spill] sm:$0xff] }
 0x221   :  { %v1137_v15 = vperm.slane %v2486_v51, 3  ;;  %v1138_v19 = vperm.slane %v2491_v31, 3  ;;  %v1369_v54 = vperm.slane %v2486_v51, 7  ;;  %v1370_v36 = vperm.slane %v2491_v31, 7 }
 0x222   :  { %v1091_v57 = vadd.f32 %v1089_v23, %v1081_v29  ;;  %v1092_v6 = vadd.f32 %v1090_v50, %v1082_v30  ;;  %v1343_v4 = vadd.f32 %v1341_v59, %v1337_v20  ;;  %v1344_v39 = vadd.f32 %v1342_v42, %v1338_v32  ;;  %v1135_v50 = vpop.permute.xlu0 %1134 }
 0x223   :  { %v1127_v14 = vperm.slane %v2486_v51, 2  ;;  %v1128_v58 = vperm.slane %v2491_v31, 2  ;;  %v1117_v45 = vperm.slane %v2486_v51, 1  ;;  %v1118_v33 = vperm.slane %v2491_v31, 1 }
 0x224   :  { %v1095_v2 = vpop.permute.xlu1 %1094  ;;  %v1357_v38 = vperm.slane %v2486_v51, 5  ;;  %v1358_v21 = vperm.slane %v2491_v31, 5  ;;  %v2657_v11 = vperm.slane %v2656_v10, 0  ;;  %v2659_v60 = vperm.slane %v2656_v10, 1 }
 0x225   :  { %v1099_v0 = vmul.f32 %v1097_v22, %v1095_v2  ;;  %v1100_v16 = vmul.f32 %v1098_v48, %v1095_v2  ;;  %v1347_v8 = vmul.f32 %v1345_v40, %v1095_v2  ;;  %v1348_v13 = vmul.f32 %v1346_v37, %v1095_v2  ;;  %v1155_v37 = vpop.permute.xlu2 %1154 }
 0x226   :  { %v2514_v62 = vmul.f32 %v2658_v7, %v2657_v11  ;;  %v2519_v56 = vmul.f32 %v2660_v26, %v2659_v60  ;;  %v1363_v47 = vperm.slane %v2486_v51, 6  ;;  %v1364_v41 = vperm.slane %v2491_v31, 6 }
 0x227   :  { %v1101_v63 = vadd.f32 %v1099_v0, %v1091_v57  ;;  %v1102_v44 = vadd.f32 %v1100_v16, %v1092_v6  ;;  %v1349_v5 = vadd.f32 %v1347_v8, %v1343_v4  ;;  %v1350_v28 = vadd.f32 %v1348_v13, %v1344_v39 }
 0x228   :  { %v1129_v30 = vmul.f32 %v1127_v14, %v1125_v1  ;;  %v1130_v20 = vmul.f32 %v1128_v58, %v1125_v1  ;;  %v1365_v32 = vmul.f32 %v1363_v47, %v1125_v1  ;;  %v1366_v18 = vmul.f32 %v1364_v41, %v1125_v1 }
 0x229   :  { %v1111_v55 = vadd.f32 %v1109_v12, %v1101_v63  ;;  %v1112_v46 = vadd.f32 %v1110_v24, %v1102_v44  ;;  %v1355_v53 = vadd.f32 %v1353_v43, %v1349_v5  ;;  %v1356_v35 = vadd.f32 %v1354_v3, %v1350_v28 }
 0x22a   :  { %v1139_v6 = vmul.f32 %v1137_v15, %v1135_v50  ;;  %v1140_v4 = vmul.f32 %v1138_v19, %v1135_v50  ;;  %v1371_v39 = vmul.f32 %v1369_v54, %v1135_v50  ;;  %v1372_v51 = vmul.f32 %v1370_v36, %v1135_v50 }
 0x22b   :  { %v1147_v13 = vperm.slane %v2514_v62, 0  ;;  %v1148_v25 = vperm.slane %v2519_v56, 0  ;;  %v1375_v61 = vperm.slane %v2514_v62, 4  ;;  %v1376_v9 = vperm.slane %v2519_v56, 4 }
 0x22c   :  { %v1157_v49 = vperm.slane %v2514_v62, 1  ;;  %v1158_v63 = vperm.slane %v2519_v56, 1  ;;  %v1381_v44 = vperm.slane %v2514_v62, 5  ;;  %v1382_v5 = vperm.slane %v2519_v56, 5 }
 0x22d   :  { %v1115_v23 = vpop.permute.xlu1 %1114  ;;  %v1387_v10 = vperm.slane %v2514_v62, 6  ;;  %v1388_v11 = vperm.slane %v2519_v56, 6  ;;  %v1177_v7 = vperm.slane %v2514_v62, 3  ;;  %v1178_v60 = vperm.slane %v2519_v56, 3 }
 0x22e   :  { %v1119_v59 = vmul.f32 %v1117_v45, %v1115_v23  ;;  %v1120_v42 = vmul.f32 %v1118_v33, %v1115_v23  ;;  %v1359_v34 = vmul.f32 %v1357_v38, %v1115_v23  ;;  %v1360_v29 = vmul.f32 %v1358_v21, %v1115_v23  ;;  %v1175_v33 = vpop.permute.xlu2 %1174 }
 0x22f   :  { %v1159_v15 = vmul.f32 %v1157_v49, %v1155_v37  ;;  %v1160_v19 = vmul.f32 %v1158_v63, %v1155_v37  ;;  %v1383_v1 = vmul.f32 %v1381_v44, %v1155_v37  ;;  %v1167_v38 = vperm.slane %v2514_v62, 2 }
 0x230   :  { %v1121_v52 = vadd.f32 %v1119_v59, %v1111_v55  ;;  %v1122_v17 = vadd.f32 %v1120_v42, %v1112_v46  ;;  %v1361_v27 = vadd.f32 %v1359_v34, %v1355_v53  ;;  %v1362_v57 = vadd.f32 %v1360_v29, %v1356_v35 }
 0x231   :  { %v1384_v55 = vmul.f32 %v1382_v5, %v1155_v37  ;;  %v1168_v21 = vperm.slane %v2519_v56, 2  ;;  %v1393_v26 = vperm.slane %v2514_v62, 7  ;;  %v1394_v47 = vperm.slane %v2519_v56, 7 }
 0x232   :  { %v1131_v22 = vadd.f32 %v1129_v30, %v1121_v52  ;;  %v1132_v31 = vadd.f32 %v1130_v20, %v1122_v17  ;;  %v1367_v48 = vadd.f32 %v1365_v32, %v1361_v27  ;;  %v1368_v40 = vadd.f32 %v1366_v18, %v1362_v57 }
 0x233   :  { %v1179_v34 = vmul.f32 %v1177_v7, %v1175_v33  ;;  %v1180_v29 = vmul.f32 %v1178_v60, %v1175_v33  ;;  %v1395_v30 = vmul.f32 %v1393_v26, %v1175_v33  ;;  %v1396_v20 = vmul.f32 %v1394_v47, %v1175_v33 }
 0x234   :  { %v1141_v2 = vadd.f32 %v1139_v6, %v1131_v22  ;;  %v1142_v0 = vadd.f32 %v1140_v4, %v1132_v31  ;;  %v1373_v16 = vadd.f32 %v1371_v39, %v1367_v48  ;;  %v1374_v8 = vadd.f32 %v1372_v51, %v1368_v40 }
 0x236   :  { %v1145_v28 = vpop.permute.xlu1 %1144 }
 0x237   :  { %v1149_v12 = vmul.f32 %v1147_v13, %v1145_v28  ;;  %v1150_v24 = vmul.f32 %v1148_v25, %v1145_v28  ;;  %v1377_v43 = vmul.f32 %v1375_v61, %v1145_v28  ;;  %v1378_v3 = vmul.f32 %v1376_v9, %v1145_v28 }
 0x239   :  { %v1151_v46 = vadd.f32 %v1149_v12, %v1141_v2  ;;  %v1152_v53 = vadd.f32 %v1150_v24, %v1142_v0  ;;  %v1379_v35 = vadd.f32 %v1377_v43, %v1373_v16  ;;  %v1380_v54 = vadd.f32 %v1378_v3, %v1374_v8 }
 0x23b   :  { %v1161_v36 = vadd.f32 %v1159_v15, %v1151_v46  ;;  %v1162_v14 = vadd.f32 %v1160_v19, %v1152_v53  ;;  %v1385_v58 = vadd.f32 %v1383_v1, %v1379_v35  ;;  %v1386_v45 = vadd.f32 %v1384_v55, %v1380_v54 }
 0x23f   :  { %v1165_v41 = vpop.permute.xlu1 %1164 }
 0x240   :  { %v1169_v23 = vmul.f32 %v1167_v38, %v1165_v41  ;;  %v1170_v50 = vmul.f32 %v1168_v21, %v1165_v41  ;;  %v1389_v59 = vmul.f32 %v1387_v10, %v1165_v41  ;;  %v1390_v42 = vmul.f32 %v1388_v11, %v1165_v41 }
 0x242   :  { %v1171_v32 = vadd.f32 %v1169_v23, %v1161_v36  ;;  %v1172_v18 = vadd.f32 %v1170_v50, %v1162_v14  ;;  %v1391_v52 = vadd.f32 %v1389_v59, %v1385_v58  ;;  %v1392_v17 = vadd.f32 %v1390_v42, %v1386_v45 }
 0x244   :  { %v1181_v27 = vadd.f32 %v1179_v34, %v1171_v32  ;;  %v1182_v57 = vadd.f32 %v1180_v29, %v1172_v18  ;;  %v1397_v6 = vadd.f32 %v1395_v30, %v1391_v52  ;;  %v1398_v4 = vadd.f32 %v1396_v20, %v1392_v17 }
 0x246   :  { %v1401_v62 = vrot.slane %v1397_v6, 4  ;;  %v1402_v39 = vrot.slane %v1398_v4, 4 }
 0x248   :  { %v1405_v56 = vsel %vm744_vm8, %v1181_v27, %v1401_v62  ;;  %v1406_v51 = vsel %vm744_vm8, %v1182_v57, %v1402_v39 }
 0x249   :  { %v1407_v22 = vmax.f32 %v1405_v56, 0.0  ;;  %v1408_v31 = vmax.f32 %v1406_v51, 0.0 }
 0x24b   :  { %1409 = vst [vmem:[%s2553_s6] sm:$0xff] %v1407_v22 }
 0x24c   :  { %1410 = vst [vmem:[%s2553_s6 + $0x8] sm:$0xff] %v1408_v31 }

</bundles_post_ra>
